<compile_context>
chip_gen: v7x
topology: tpu7x:2x2x1
jax: 0.10.0
libtpu: 0.0.40
codegen_flags: <defaults>
</compile_context>

<pallas_src>
import functools

import jax
import jax.numpy as jnp
from jax.experimental import pallas as pl
from jax.experimental.pallas import tpu as pltpu


# ------------------------------ Pallas kernel ------------------------------ #

def dilconv_fused_kernel(x_ref, w_ref, bn_ref, o_ref, cols_ref, *,
                         K, stride, dilation, H_out, W_out, eps):
    """Fused ReLU + (depthwise*pointwise folded) conv + BatchNorm.

    x_ref   : (N, Hp, Wp, C_in)      zero-padded NHWC input (whole batch)
    w_ref   : (C_out, K*K*C_in)      folded depthwise*pointwise weight
    bn_ref  : (C_out, 2)             column 0 = gamma, column 1 = beta
    o_ref   : (C_out, N*H_out*W_out) final BN'd output, lane-dense store
    cols_ref: (N*H_out*W_out, K*K*C_in) VMEM scratch for the im2col matrix
    """
    N, Hp, Wp, C_in = x_ref.shape
    M = N * H_out * W_out

    # ReLU once up front (zero padding is unaffected by ReLU).
    x = jnp.maximum(x_ref[...], 0.0)

    # im2col into VMEM scratch: column block (kh*K + kw) holds the shifted /
    # strided dilated tap so a single MXU matmul against the folded weight
    # computes depthwise + pointwise at once (contraction K*K*C_in).
    for kh in range(K):
        for kw in range(K):
            idx = kh * K + kw
            patch = jax.lax.slice(
                x,
                (0, kh * dilation, kw * dilation, 0),
                (N, kh * dilation + (H_out - 1) * stride + 1,
                 kw * dilation + (W_out - 1) * stride + 1, C_in),
                (1, stride, stride, 1))
            # Only major dims collapse in this reshape (lane dim untouched).
            cols_ref[:, idx * C_in:(idx + 1) * C_in] = patch.reshape(M, C_in)

    # Single MXU matmul, produced transposed so the output lane dim is M
    # (lane-dense, unmasked stores): y_t[co, m] = sum_k w[co, k] * cols[m, k].
    y_t = jax.lax.dot_general(
        w_ref[...], cols_ref[...],
        dimension_numbers=(((1,), (1,)), ((), ())),
        preferred_element_type=jnp.float32)              # (C_out, M)

    # BatchNorm (training-mode batch stats, biased variance), two-pass for
    # numerical robustness; everything stays VMEM-resident.
    inv_m = 1.0 / M
    mean = jnp.sum(y_t, axis=1, keepdims=True) * inv_m    # (C_out, 1)
    d = y_t - mean
    var = jnp.sum(d * d, axis=1, keepdims=True) * inv_m   # (C_out, 1)
    gamma = bn_ref[:, 0:1]
    beta = bn_ref[:, 1:2]
    scale = gamma * jax.lax.rsqrt(var + eps)
    o_ref[...] = d * scale + beta


# ------------------------------ Wrapper (glue) ------------------------------ #

@functools.partial(jax.jit, static_argnames=("kernel_size", "stride", "padding",
                                             "dilation", "eps"))
def dil_conv_forward(x_nchw, w_dw, w_pw, gamma, beta, *,
                     kernel_size, stride, padding, dilation, eps=1e-5):
    N, C_in, H, W = x_nchw.shape
    C_out = w_pw.shape[0]
    K = kernel_size
    H_out = (H + 2 * padding - dilation * (K - 1) - 1) // stride + 1
    W_out = (W + 2 * padding - dilation * (K - 1) - 1) // stride + 1
    M = N * H_out * W_out

    # NCHW -> NHWC + zero pad (single fused XLA pass over the small input).
    # TODO(synk): fold this transpose/pad into the kernel with halo-masked taps.
    x = jnp.transpose(x_nchw, (0, 2, 3, 1)).astype(jnp.float32)
    x_pad = jnp.pad(x, ((0, 0), (padding, padding), (padding, padding), (0, 0)))
    Hp, Wp = x_pad.shape[1], x_pad.shape[2]

    # Fold depthwise into pointwise:
    #   W_eff[co, (kh*K+kw)*C_in + ci] = w_dw[ci, kh, kw] * w_pw[co, ci]
    w_dw_f = w_dw[:, 0, :, :].astype(jnp.float32)          # (C_in, K, K)
    w_pw_f = w_pw[:, :, 0, 0].astype(jnp.float32)          # (C_out, C_in)
    w_eff = w_dw_f[None, :, :, :] * w_pw_f[:, :, None, None]   # (C_out, C_in, K, K)
    w_eff = jnp.transpose(w_eff, (0, 2, 3, 1)).reshape(C_out, K * K * C_in)

    bn = jnp.stack([gamma.astype(jnp.float32), beta.astype(jnp.float32)],
                   axis=1)                                  # (C_out, 2)

    # Single fused pallas_call over the whole (tiny) batch.
    # TODO(synk): for v7x 2-TC scaling, split the M axis across a parallel grid
    # with a cross-core stats reduction; not worth it at these shapes.
    out_t = pl.pallas_call(
        functools.partial(dilconv_fused_kernel, K=K, stride=stride,
                          dilation=dilation, H_out=H_out, W_out=W_out, eps=eps),
        out_shape=jax.ShapeDtypeStruct((C_out, M), jnp.float32),
        grid=(1,),
        in_specs=[
            pl.BlockSpec((N, Hp, Wp, C_in), lambda i: (0, 0, 0, 0)),
            pl.BlockSpec((C_out, K * K * C_in), lambda i: (0, 0)),
            pl.BlockSpec((C_out, 2), lambda i: (0, 0)),
        ],
        out_specs=pl.BlockSpec((C_out, M), lambda i: (0, 0)),
        scratch_shapes=[pltpu.VMEM((M, K * K * C_in), jnp.float32)],
        compiler_params=pltpu.CompilerParams(
            dimension_semantics=("arbitrary",)),
    )(x_pad, w_eff, bn)

    # (C_out, N*H*W) -> (C_out, N, H, W): free contiguous reinterpretation;
    # the final axis swap moves whole H*W-contiguous planes (cheap XLA copy).
    # TODO(synk): running_mean/running_var buffer updates (training-only side
    # effect) are not reproduced; they do not affect the forward output.
    out = out_t.reshape(C_out, N, H_out, W_out)
    return jnp.transpose(out, (1, 0, 2, 3))


# --------------------------- Pure-JAX reference ----------------------------- #

def dil_conv_reference(x, w_dw, w_pw, gamma, beta, *, stride, padding, dilation, eps=1e-5):
    C_in = x.shape[1]
    y = jnp.maximum(x, 0.0)
    y = jax.lax.conv_general_dilated(
        y, w_dw, window_strides=(stride, stride),
        padding=[(padding, padding), (padding, padding)],
        rhs_dilation=(dilation, dilation),
        dimension_numbers=('NCHW', 'OIHW', 'NCHW'),
        feature_group_count=C_in)
    y = jax.lax.conv_general_dilated(
        y, w_pw, (1, 1), 'VALID',
        dimension_numbers=('NCHW', 'OIHW', 'NCHW'))
    mean = y.mean(axis=(0, 2, 3), keepdims=True)
    var = jnp.mean((y - mean) ** 2, axis=(0, 2, 3), keepdims=True)
    return (gamma.reshape(1, -1, 1, 1) * (y - mean) / jnp.sqrt(var + eps)
            + beta.reshape(1, -1, 1, 1))


# ----------------------------------- Main ----------------------------------- #

if __name__ == "__main__":
    # DilConv(C_in=8, C_out=16, kernel_size=3, stride=1, padding=2, dilation=2)
    N, C_in, H, W = 2, 8, 16, 16
    C_out, K, stride, padding, dilation = 16, 3, 1, 2, 2

    key = jax.random.PRNGKey(0)
    kx, kdw, kpw, kg, kb = jax.random.split(key, 5)

    x = jax.random.normal(kx, (N, C_in, H, W), jnp.float32)
    w_dw = jax.random.normal(kdw, (C_in, 1, K, K), jnp.float32) * 0.3   # depthwise, groups=C_in
    w_pw = jax.random.normal(kpw, (C_out, C_in, 1, 1), jnp.float32) * 0.3
    gamma = jax.random.normal(kg, (C_out,), jnp.float32) * 0.1 + 1.0    # BN affine weight
    beta = jax.random.normal(kb, (C_out,), jnp.float32) * 0.1           # BN affine bias

    out = dil_conv_forward(x, w_dw, w_pw, gamma, beta,
                           kernel_size=K, stride=stride, padding=padding,
                           dilation=dilation)
    out = jax.block_until_ready(out)

    ref = dil_conv_reference(x, w_dw, w_pw, gamma, beta,
                             stride=stride, padding=padding, dilation=dilation)
    ref = jax.block_until_ready(ref)

    assert out.shape == ref.shape == (N, C_out, H, W), (out.shape, ref.shape)
    assert jnp.allclose(out, ref, rtol=1e-4, atol=1e-4), float(jnp.max(jnp.abs(out - ref)))

    print("KERNEL_OK")
</pallas_src>

<mosaic_0001>
module attributes {stable_mosaic.version = 11 : i64} {
  func.func @dilconv_fused_kernel(%arg0: i32, %arg1: memref<2x20x20x8xf32, #tpu.memory_space<vmem>>, %arg2: memref<16x72xf32, #tpu.memory_space<vmem>>, %arg3: memref<16x2xf32, #tpu.memory_space<vmem>>, %arg4: memref<16x512xf32, #tpu.memory_space<vmem>>, %arg5: memref<512x72xf32, #tpu.memory_space<vmem>>) attributes {dimension_semantics = [#tpu.dimension_semantics<arbitrary>], iteration_bounds = array<i64: 1>, scalar_prefetch = 0 : i64, scratch_operands = 1 : i64, tpu.core_type = #tpu.core_type<tc>, window_params = [{pipeline_mode = #tpu.pipeline_mode<synchronous>, transform_indices = @transform_0, window_bounds = array<i64: 2, 20, 20, 8>}, {pipeline_mode = #tpu.pipeline_mode<synchronous>, transform_indices = @transform_1, window_bounds = array<i64: 16, 72>}, {pipeline_mode = #tpu.pipeline_mode<synchronous>, transform_indices = @transform_2, window_bounds = array<i64: 16, 2>}, {pipeline_mode = #tpu.pipeline_mode<synchronous>, transform_indices = @transform_3, window_bounds = array<i64: 16, 512>}]} {
    %c0 = arith.constant 0 : index
    %c0_0 = arith.constant 0 : index
    %c0_1 = arith.constant 0 : index
    %c0_2 = arith.constant 0 : index
    %0 = vector.load %arg1[%c0, %c0_0, %c0_1, %c0_2] : memref<2x20x20x8xf32, #tpu.memory_space<vmem>>, vector<2x20x20x8xf32>
    %cst = arith.constant 0.000000e+00 : f32
    %1 = vector.broadcast %cst : f32 to vector<2x20x20x8xf32>
    %2 = arith.maximumf %0, %1 : vector<2x20x20x8xf32>
    %3 = vector.extract_strided_slice %2 {offsets = [0, 0, 0, 0], sizes = [2, 16, 16, 8], strides = [1, 1, 1, 1]} : vector<2x20x20x8xf32> to vector<2x16x16x8xf32>
    %4 = vector.shape_cast %3 : vector<2x16x16x8xf32> to vector<512x8xf32>
    %c0_3 = arith.constant 0 : index
    %c0_4 = arith.constant 0 : index
    %5 = vector.load %arg5[%c0_3, %c0_4] : memref<512x72xf32, #tpu.memory_space<vmem>>, vector<512x8xf32>
    tpu.vector_store %arg5[%c0_3, %c0_4], %4 {strides = array<i32>} : memref<512x72xf32, #tpu.memory_space<vmem>>, vector<512x8xf32>,
    %6 = vector.extract_strided_slice %2 {offsets = [0, 0, 2, 0], sizes = [2, 16, 16, 8], strides = [1, 1, 1, 1]} : vector<2x20x20x8xf32> to vector<2x16x16x8xf32>
    %7 = vector.shape_cast %6 : vector<2x16x16x8xf32> to vector<512x8xf32>
    %c0_5 = arith.constant 0 : index
    %c8 = arith.constant 8 : index
    %8 = vector.load %arg5[%c0_5, %c8] : memref<512x72xf32, #tpu.memory_space<vmem>>, vector<512x8xf32>
    tpu.vector_store %arg5[%c0_5, %c8], %7 {strides = array<i32>} : memref<512x72xf32, #tpu.memory_space<vmem>>, vector<512x8xf32>,
    %9 = vector.extract_strided_slice %2 {offsets = [0, 0, 4, 0], sizes = [2, 16, 16, 8], strides = [1, 1, 1, 1]} : vector<2x20x20x8xf32> to vector<2x16x16x8xf32>
    %10 = vector.shape_cast %9 : vector<2x16x16x8xf32> to vector<512x8xf32>
    %c0_6 = arith.constant 0 : index
    %c16 = arith.constant 16 : index
    %11 = vector.load %arg5[%c0_6, %c16] : memref<512x72xf32, #tpu.memory_space<vmem>>, vector<512x8xf32>
    tpu.vector_store %arg5[%c0_6, %c16], %10 {strides = array<i32>} : memref<512x72xf32, #tpu.memory_space<vmem>>, vector<512x8xf32>,
    %12 = vector.extract_strided_slice %2 {offsets = [0, 2, 0, 0], sizes = [2, 16, 16, 8], strides = [1, 1, 1, 1]} : vector<2x20x20x8xf32> to vector<2x16x16x8xf32>
    %13 = vector.shape_cast %12 : vector<2x16x16x8xf32> to vector<512x8xf32>
    %c0_7 = arith.constant 0 : index
    %c24 = arith.constant 24 : index
    %14 = vector.load %arg5[%c0_7, %c24] : memref<512x72xf32, #tpu.memory_space<vmem>>, vector<512x8xf32>
    tpu.vector_store %arg5[%c0_7, %c24], %13 {strides = array<i32>} : memref<512x72xf32, #tpu.memory_space<vmem>>, vector<512x8xf32>,
    %15 = vector.extract_strided_slice %2 {offsets = [0, 2, 2, 0], sizes = [2, 16, 16, 8], strides = [1, 1, 1, 1]} : vector<2x20x20x8xf32> to vector<2x16x16x8xf32>
    %16 = vector.shape_cast %15 : vector<2x16x16x8xf32> to vector<512x8xf32>
    %c0_8 = arith.constant 0 : index
    %c32 = arith.constant 32 : index
    %17 = vector.load %arg5[%c0_8, %c32] : memref<512x72xf32, #tpu.memory_space<vmem>>, vector<512x8xf32>
    tpu.vector_store %arg5[%c0_8, %c32], %16 {strides = array<i32>} : memref<512x72xf32, #tpu.memory_space<vmem>>, vector<512x8xf32>,
    %18 = vector.extract_strided_slice %2 {offsets = [0, 2, 4, 0], sizes = [2, 16, 16, 8], strides = [1, 1, 1, 1]} : vector<2x20x20x8xf32> to vector<2x16x16x8xf32>
    %19 = vector.shape_cast %18 : vector<2x16x16x8xf32> to vector<512x8xf32>
    %c0_9 = arith.constant 0 : index
    %c40 = arith.constant 40 : index
    %20 = vector.load %arg5[%c0_9, %c40] : memref<512x72xf32, #tpu.memory_space<vmem>>, vector<512x8xf32>
    tpu.vector_store %arg5[%c0_9, %c40], %19 {strides = array<i32>} : memref<512x72xf32, #tpu.memory_space<vmem>>, vector<512x8xf32>,
    %21 = vector.extract_strided_slice %2 {offsets = [0, 4, 0, 0], sizes = [2, 16, 16, 8], strides = [1, 1, 1, 1]} : vector<2x20x20x8xf32> to vector<2x16x16x8xf32>
    %22 = vector.shape_cast %21 : vector<2x16x16x8xf32> to vector<512x8xf32>
    %c0_10 = arith.constant 0 : index
    %c48 = arith.constant 48 : index
    %23 = vector.load %arg5[%c0_10, %c48] : memref<512x72xf32, #tpu.memory_space<vmem>>, vector<512x8xf32>
    tpu.vector_store %arg5[%c0_10, %c48], %22 {strides = array<i32>} : memref<512x72xf32, #tpu.memory_space<vmem>>, vector<512x8xf32>,
    %24 = vector.extract_strided_slice %2 {offsets = [0, 4, 2, 0], sizes = [2, 16, 16, 8], strides = [1, 1, 1, 1]} : vector<2x20x20x8xf32> to vector<2x16x16x8xf32>
    %25 = vector.shape_cast %24 : vector<2x16x16x8xf32> to vector<512x8xf32>
    %c0_11 = arith.constant 0 : index
    %c56 = arith.constant 56 : index
    %26 = vector.load %arg5[%c0_11, %c56] : memref<512x72xf32, #tpu.memory_space<vmem>>, vector<512x8xf32>
    tpu.vector_store %arg5[%c0_11, %c56], %25 {strides = array<i32>} : memref<512x72xf32, #tpu.memory_space<vmem>>, vector<512x8xf32>,
    %27 = vector.extract_strided_slice %2 {offsets = [0, 4, 4, 0], sizes = [2, 16, 16, 8], strides = [1, 1, 1, 1]} : vector<2x20x20x8xf32> to vector<2x16x16x8xf32>
    %28 = vector.shape_cast %27 : vector<2x16x16x8xf32> to vector<512x8xf32>
    %c0_12 = arith.constant 0 : index
    %c64 = arith.constant 64 : index
    %29 = vector.load %arg5[%c0_12, %c64] : memref<512x72xf32, #tpu.memory_space<vmem>>, vector<512x8xf32>
    tpu.vector_store %arg5[%c0_12, %c64], %28 {strides = array<i32>} : memref<512x72xf32, #tpu.memory_space<vmem>>, vector<512x8xf32>,
    %c0_13 = arith.constant 0 : index
    %c0_14 = arith.constant 0 : index
    %30 = vector.load %arg2[%c0_13, %c0_14] : memref<16x72xf32, #tpu.memory_space<vmem>>, vector<16x72xf32>
    %c0_15 = arith.constant 0 : index
    %c0_16 = arith.constant 0 : index
    %31 = vector.load %arg5[%c0_15, %c0_16] : memref<512x72xf32, #tpu.memory_space<vmem>>, vector<512x72xf32>
    %cst_17 = arith.constant dense<0.000000e+00> : vector<16x512xf32>
    %32 = tpu.matmul %30, %31, %cst_17 {dimension_numbers = #tpu.dot_dimension_numbers<[1], [1], [0], [0], [0, 0, 1, 0], [], []>} : vector<16x72xf32>, vector<512x72xf32>, vector<16x512xf32> -> vector<16x512xf32>
    %cst_18 = arith.constant dense<0.000000e+00> : vector<16xf32>
    %33 = vector.multi_reduction <add>, %32, %cst_18 [1] : vector<16x512xf32> to vector<16xf32>
    %34 = vector.shape_cast %33 : vector<16xf32> to vector<16x1xf32>
    %cst_19 = arith.constant 0.001953125 : f32
    %35 = vector.broadcast %cst_19 : f32 to vector<16x1xf32>
    %36 = arith.mulf %34, %35 : vector<16x1xf32>
    %37 = vector.broadcast %36 : vector<16x1xf32> to vector<16x512xf32>
    %38 = arith.subf %32, %37 : vector<16x512xf32>
    %39 = arith.mulf %38, %38 : vector<16x512xf32>
    %cst_20 = arith.constant dense<0.000000e+00> : vector<16xf32>
    %40 = vector.multi_reduction <add>, %39, %cst_20 [1] : vector<16x512xf32> to vector<16xf32>
    %41 = vector.shape_cast %40 : vector<16xf32> to vector<16x1xf32>
    %cst_21 = arith.constant 0.001953125 : f32
    %42 = vector.broadcast %cst_21 : f32 to vector<16x1xf32>
    %43 = arith.mulf %41, %42 : vector<16x1xf32>
    %c0_22 = arith.constant 0 : index
    %c0_23 = arith.constant 0 : index
    %44 = vector.load %arg3[%c0_22, %c0_23] : memref<16x2xf32, #tpu.memory_space<vmem>>, vector<16x1xf32>
    %c0_24 = arith.constant 0 : index
    %c1 = arith.constant 1 : index
    %45 = vector.load %arg3[%c0_24, %c1] : memref<16x2xf32, #tpu.memory_space<vmem>>, vector<16x1xf32>
    %cst_25 = arith.constant 9.99999974E-6 : f32
    %46 = vector.broadcast %cst_25 : f32 to vector<16x1xf32>
    %47 = arith.addf %43, %46 : vector<16x1xf32>
    %48 = math.rsqrt %47 : vector<16x1xf32>
    %49 = arith.mulf %44, %48 : vector<16x1xf32>
    %50 = vector.broadcast %49 : vector<16x1xf32> to vector<16x512xf32>
    %51 = arith.mulf %38, %50 : vector<16x512xf32>
    %52 = vector.broadcast %45 : vector<16x1xf32> to vector<16x512xf32>
    %53 = arith.addf %51, %52 : vector<16x512xf32>
    %c0_26 = arith.constant 0 : index
    %c0_27 = arith.constant 0 : index
    %54 = vector.load %arg4[%c0_26, %c0_27] : memref<16x512xf32, #tpu.memory_space<vmem>>, vector<16x512xf32>
    tpu.vector_store %arg4[%c0_26, %c0_27], %53 {strides = array<i32>} : memref<16x512xf32, #tpu.memory_space<vmem>>, vector<16x512xf32>,
    return
  }
  func.func @transform_0(%arg0: i32) -> (i32, i32, i32, i32) {
    %c0_i32 = arith.constant 0 : i32
    %c0_i32_0 = arith.constant 0 : i32
    %c0_i32_1 = arith.constant 0 : i32
    %c0_i32_2 = arith.constant 0 : i32
    %c0_i32_3 = arith.constant 0 : i32
    return %c0_i32, %c0_i32_0, %c0_i32_1, %c0_i32_2 : i32, i32, i32, i32
  }
  func.func @transform_1(%arg0: i32) -> (i32, i32) {
    %c0_i32 = arith.constant 0 : i32
    %c0_i32_0 = arith.constant 0 : i32
    %c0_i32_1 = arith.constant 0 : i32
    return %c0_i32, %c0_i32_0 : i32, i32
  }
  func.func @transform_2(%arg0: i32) -> (i32, i32) {
    %c0_i32 = arith.constant 0 : i32
    %c0_i32_0 = arith.constant 0 : i32
    %c0_i32_1 = arith.constant 0 : i32
    return %c0_i32, %c0_i32_0 : i32, i32
  }
  func.func @transform_3(%arg0: i32) -> (i32, i32) {
    %c0_i32 = arith.constant 0 : i32
    %c0_i32_0 = arith.constant 0 : i32
    %c0_i32_1 = arith.constant 0 : i32
    return %c0_i32, %c0_i32_0 : i32, i32
  }
}

</mosaic_0001>

<bundles_post_ra>
// kernel: dil_conv_forward.1
= control target key start
LH: loop header
LB: loop body
LE: loop exit
PB: predicated region body
PF: predicated region fallthrough
CT: control target
= control target key end

     0   :  { %vm415_vm0 = vcmask 1045504   ;;  %vm254_vm1 = vcmask 64512   ;;  %s3666_s11 = smov 8   ;;  %vm833_vm2 = vcmask 1043456   ;;  %vm768_vm3 = vcmask 130112   ;;  %s3667_s22 = smov 16   ;;  %s6766_s0 = inlined_call_operand.vmem [shape: f32[2,20,20,8], index: 0, kind: input, shape index: {}]   ;;  %s6767_s1 = inlined_call_operand.vmem [shape: f32[16,72], index: 1, kind: input, shape index: {}]   ;;  %s6768_s2 = inlined_call_operand.vmem [shape: f32[16,2], index: 2, kind: input, shape index: {}]   ;;  %s6769_s3 = inlined_call_operand.vmem [shape: f32[16,512], index: 3, kind: output, shape index: {}]  }
   0x1   :  { %v17_v0 = vld [vmem:[%s6766_s0 + $0x18] sm:$0xff]  ;;  %v18_v1 = vld [vmem:[%s6766_s0 + $0x20] sm:$0xff]  ;;  %v15_v5 = vld [vmem:[%s6766_s0 + $0x8] sm:$0xff]  ;;  %vm1186_vm4 = vcmask 195712   ;;  %vm1451_vm5 = vcmask 261312   ;;  %s3669_s13 = smov 32  }
   0x2   :  { %v14_v2 = vld [vmem:[%s6766_s0] sm:$0xff]  ;;  %v3705_v3 = vmax.f32 %v17_v0, 0.0  ;;  %v3707_v4 = vmax.f32 %v18_v1, 0.0  ;;  %v3717_v7 = vld [vmem:[%s6766_s0 + $0x28] sm:$0xf]  ;;  %v3719_v8 = vmax.f32 %v15_v5, 0.0 }
   0x3   :  { %v3712_v6 = vmax.f32 %v14_v2, 0.0  ;;  %v6776_v9 = vmax.f32 %v3717_v7, 0.0  ;;  %v3725_v10 = vld [vmem:[%s6766_s0 + $0x10] sm:$0xf]  ;;  %v21_v11 = vld [vmem:[%s6766_s0 + $0x38] sm:$0xff]  ;;  %v23_v23 = vld [vmem:[%s6766_s0 + $0x48] sm:$0xff] }
   0x4   :  { %v20_v12 = vld [vmem:[%s6766_s0 + $0x30] sm:$0xff]  ;;  %v421_v13 = vrot.slane %v3705_v3, 2  ;;  %v422_v14 = vrot.slane %v3707_v4, 2  ;;  %v6777_v16 = vmax.f32 %v3725_v10, 0.0  ;;  %v3740_v17 = vld [vmem:[%s6766_s0 + $0x40] sm:$0xf] }
   0x5   :  { %v416_v15 = vrot.slane %v3712_v6, 2  ;;  %257 = vst.msk [vmem:[#allocation2 + $0x10] sm:$0xff] %vm254_vm1, %v3705_v3  ;;  %255 = vst.msk [vmem:[#allocation2] sm:$0xff] %vm254_vm1, %v3712_v6  ;;  %v417_v18 = vrot.slane %v3719_v8, 2  ;;  %v424_v19 = vrot.slane %v6776_v9, 2  ;;  %v3751_v20 = vmax.f32 %v21_v11, 0.0 }
   0x6   :  { %258 = vst.msk [vmem:[#allocation2 + $0x18] sm:$0xff] %vm254_vm1, %v3707_v4  ;;  %v6775_v21 = vmax.f32 %v3740_v17, 0.0  ;;  %v24_v22 = vld [vmem:[%s6766_s0 + $0x50] sm:$0xff]  ;;  %256 = vst.msk [vmem:[#allocation2 + $0x8] sm:$0xff] %vm254_vm1, %v3719_v8  ;;  %v423_v24 = vsel %vm415_vm0, %v421_v13, %v422_v14  ;;  %v419_v25 = vrot.slane %v6777_v16, 2  ;;  %v3765_v26 = vmax.f32 %v20_v12, 0.0 }
   0x7   :  { %v3770_v27 = vld [vmem:[%s6766_s0 + $0x58] sm:$0xf]  ;;  %v3772_v28 = vmax.f32 %v24_v22, 0.0  ;;  %v27_v29 = vld [vmem:[%s6766_s0 + $0x68] sm:$0xff]  ;;  %580 = vrot.lane.b32.xlu1 %v423_v24, %s3666_s11  ;;  %v418_v30 = vsel %vm415_vm0, %v416_v15, %v417_v18  ;;  %v26_v31 = vld [vmem:[%s6766_s0 + $0x60] sm:$0xff]  ;;  %260 = vst.msk [vmem:[#allocation2 + $0x28] sm:$0xff] %vm254_vm1, %v3751_v20  ;;  %v425_v33 = vsel %vm415_vm0, %v422_v14, %v424_v19 }
   0x8   :  { %v30_v32 = vld [vmem:[%s6766_s0 + $0x80] sm:$0xff]  ;;  %576 = vrot.lane.b32.xlu0 %v418_v30, %s3666_s11  ;;  %v427_v34 = vrot.slane %v3751_v20, 2  ;;  %v429_v35 = vrot.slane %v6775_v21, 2  ;;  %v6774_v36 = vmax.f32 %v3770_v27, 0.0  ;;  %259 = vst.msk [vmem:[#allocation2 + $0x20] sm:$0xff] %vm254_vm1, %v3765_v26  ;;  %v420_v37 = vsel %vm415_vm0, %v417_v18, %v419_v25  ;;  %v29_v42 = vld [vmem:[%s6766_s0 + $0x78] sm:$0xff] }
   0x9   :  { %262 = vst.msk [vmem:[#allocation2 + $0x38] sm:$0xff] %vm254_vm1, %v3772_v28  ;;  %v426_v38 = vrot.slane %v3765_v26, 2  ;;  %v3799_v39 = vmax.f32 %v23_v23, 0.0  ;;  %v3804_v40 = vld [vmem:[%s6766_s0 + $0x70] sm:$0xf]  ;;  %v3806_v41 = vmax.f32 %v27_v29, 0.0 }
   0xa   :  { %v3811_v43 = vmax.f32 %v26_v31, 0.0  ;;  %v3813_v44 = vmax.f32 %v30_v32, 0.0  ;;  %v33_v45 = vld [vmem:[%s6766_s0 + $0x98] sm:$0xff]  ;;  %v432_v46 = vrot.slane %v3772_v28, 2  ;;  %v32_v47 = vld [vmem:[%s6766_s0 + $0x90] sm:$0xff]  ;;  %v3829_v48 = vsel %vm415_vm0, %v427_v34, %v429_v35  ;;  %v35_v57 = vld [vmem:[%s6766_s0 + $0xa8] sm:$0xff] }
   0xb   :  { %582 = vrot.lane.b32.xlu1 %v425_v33, %s3666_s11  ;;  %261 = vst.msk [vmem:[#allocation2 + $0x30] sm:$0xff] %vm254_vm1, %v3799_v39  ;;  %264 = vst.msk [vmem:[#allocation2 + $0x48] sm:$0xff] %vm254_vm1, %v3806_v41  ;;  %v434_v49 = vrot.slane %v6774_v36, 2  ;;  %v6773_v50 = vmax.f32 %v3804_v40, 0.0  ;;  %v3834_v51 = vmax.f32 %v29_v42, 0.0  ;;  %v36_v52 = vld [vmem:[%s6766_s0 + $0xb0] sm:$0xff]  ;;  %v3844_v53 = vsel %vm415_vm0, %v426_v38, %v427_v34 }
   0xc   :  { %7082 = vst [vmem:[#allocation3_spill] sm:$0xff] %v3813_v44  ;;  %578 = vrot.lane.b32.xlu0 %v420_v37, %s3666_s11  ;;  %7083 = vst [vmem:[#allocation4_spill] sm:$0xff] %v3829_v48  ;;  %v431_v54 = vrot.slane %v3799_v39, 2  ;;  %v3850_v55 = vld [vmem:[%s6766_s0 + $0x88] sm:$0xf]  ;;  %v3852_v56 = vmax.f32 %v33_v45, 0.0 }
   0xd   :  { %7084 = vst [vmem:[#allocation5_spill] sm:$0xff] %v3834_v51  ;;  %263 = vst.msk [vmem:[#allocation2 + $0x40] sm:$0xff] %vm254_vm1, %v3811_v43  ;;  %v3857_v58 = vmax.f32 %v32_v47, 0.0  ;;  %v39_v59 = vld [vmem:[%s6766_s0 + $0xc8] sm:$0xff]  ;;  %v437_v60 = vrot.slane %v3806_v41, 2  ;;  %v3867_v61 = vmax.f32 %v36_v52, 0.0  ;;  %v3877_v63 = vsel %vm415_vm0, %v432_v46, %v434_v49 }
   0xe   :  { %266 = vst.msk [vmem:[#allocation2 + $0x58] sm:$0xff] %vm254_vm1, %v3813_v44  ;;  %7085 = vst [vmem:[#allocation6_spill] sm:$0xff] %v3844_v53  ;;  %v38_v62 = vld [vmem:[%s6766_s0 + $0xc0] sm:$0xff]  ;;  %v439_v0 = vrot.slane %v6773_v50, 2  ;;  %v6772_v1 = vmax.f32 %v3850_v55, 0.0  ;;  %v3882_v2 = vmax.f32 %v35_v57, 0.0  ;;  %v3890_v11 = vsel %vm415_vm0, %v431_v54, %v432_v46 }
   0xf   :  { %7086 = vst [vmem:[#allocation7_spill] sm:$0xff] %v3850_v55  ;;  %7087 = vst [vmem:[#allocation8_spill] sm:$0xff] %v3852_v56  ;;  %586 = vrot.lane.b32.xlu1 %v3829_v48, %s3666_s11  ;;  %v42_v5 = vld [vmem:[%s6766_s0 + $0xe0] sm:$0xff]  ;;  %v436_v12 = vrot.slane %v3811_v43, 2  ;;  %v3898_v14 = vmax.f32 %v39_v59, 0.0  ;;  %v41_v15 = vld [vmem:[%s6766_s0 + $0xd8] sm:$0xff] }
  0x10   :  { %7088 = vst [vmem:[#allocation9_spill] sm:$0xff] %v3857_v58  ;;  %265 = vst.msk [vmem:[#allocation2 + $0x50] sm:$0xff] %vm254_vm1, %v3834_v51  ;;  %584 = vrot.lane.b32.xlu0 %v3844_v53, %s3666_s11  ;;  %v3896_v13 = vld [vmem:[%s6766_s0 + $0xa0] sm:$0xf]  ;;  %v3905_v18 = vmax.f32 %v38_v62, 0.0  ;;  %v45_v19 = vld [vmem:[%s6766_s0 + $0xf8] sm:$0xff]  ;;  %v3925_v25 = vsel %vm415_vm0, %v437_v60, %v439_v0 }
  0x11   :  { %7089 = vst [vmem:[#allocation10_spill] sm:$0xff] %v3867_v61  ;;  %268 = vst.msk [vmem:[#allocation2 + $0x68] sm:$0xff] %vm254_vm1, %v3852_v56  ;;  %v442_v22 = vrot.slane %v3813_v44, 2  ;;  %v3915_v23 = vmax.f32 %v42_v5, 0.0  ;;  %v44_v24 = vld [vmem:[%s6766_s0 + $0xf0] sm:$0xff]  ;;  %v444_v29 = vrot.slane %v6772_v1, 2  ;;  %v3943_v34 = vsel %vm415_vm0, %v436_v12, %v437_v60 }
  0x12   :  { %7090 = vst [vmem:[#allocation11_spill] sm:$0xff] %v3877_v63  ;;  %7091 = vst [vmem:[#allocation12_spill] sm:$0xff] %v3882_v2  ;;  %v6771_v30 = vmax.f32 %v3896_v13, 0.0  ;;  %v3933_v31 = vld [vmem:[%s6766_s0 + $0xb8] sm:$0xf]  ;;  %v3935_v32 = vmax.f32 %v41_v15, 0.0 }
  0x13   :  { %267 = vst.msk [vmem:[#allocation2 + $0x60] sm:$0xff] %vm254_vm1, %v3857_v58  ;;  %7092 = vst [vmem:[#allocation13_spill] sm:$0xff] %v3890_v11  ;;  %590 = vrot.lane.b32.xlu1 %v3877_v63, %s3666_s11  ;;  %v48_v33 = vld [vmem:[%s6766_s0 + $0x110] sm:$0xff]  ;;  %v441_v35 = vrot.slane %v3834_v51, 2  ;;  %v3946_v37 = vmax.f32 %v45_v19, 0.0  ;;  %v47_v38 = vld [vmem:[%s6766_s0 + $0x108] sm:$0xff]  ;;  %v3973_v52 = vsel %vm415_vm0, %v442_v22, %v444_v29 }
  0x14   :  { %7093 = vst [vmem:[#allocation14_spill] sm:$0xff] %v3896_v13  ;;  %7094 = vst [vmem:[#allocation15_spill] sm:$0xff] %v3898_v14  ;;  %588 = vrot.lane.b32.xlu0 %v3890_v11, %s3666_s11  ;;  %v3953_v42 = vmax.f32 %v44_v24, 0.0  ;;  %v51_v45 = vld [vmem:[%s6766_s0 + $0x128] sm:$0xff]  ;;  %v6770_v46 = vmax.f32 %v3933_v31, 0.0  ;;  %v3963_v47 = vmax.f32 %v48_v33, 0.0 }
  0x15   :  { %270 = vst.msk [vmem:[#allocation2 + $0x78] sm:$0xff] %vm254_vm1, %v3867_v61  ;;  %7095 = vst [vmem:[#allocation16_spill] sm:$0xff] %v3905_v18  ;;  %v50_v49 = vld [vmem:[%s6766_s0 + $0x120] sm:$0xff]  ;;  %v447_v54 = vrot.slane %v3852_v56, 2  ;;  %v449_v57 = vrot.slane %v6771_v30, 2  ;;  %v3978_v59 = vmax.f32 %v47_v38, 0.0  ;;  %v3986_v62 = vsel %vm415_vm0, %v441_v35, %v442_v22 }
  0x16   :  { %269 = vst.msk [vmem:[#allocation2 + $0x70] sm:$0xff] %vm254_vm1, %v3882_v2  ;;  %7096 = vst [vmem:[#allocation17_spill] sm:$0xff] %v3915_v23  ;;  %v54_v60 = vld [vmem:[%s6766_s0 + $0x140] sm:$0xff]  ;;  %v446_v0 = vrot.slane %v3857_v58, 2  ;;  %v3992_v5 = vld [vmem:[%s6766_s0 + $0xd0] sm:$0xf] }
  0x17   :  { %272 = vst.msk [vmem:[#allocation2 + $0x88] sm:$0xff] %vm254_vm1, %v3898_v14  ;;  %7097 = vst [vmem:[#allocation18_spill] sm:$0xff] %v3925_v25  ;;  %594 = vrot.lane.b32.xlu1 %v3925_v25, %s3666_s11  ;;  %v3994_v12 = vmax.f32 %v51_v45, 0.0  ;;  %v53_v15 = vld [vmem:[%s6766_s0 + $0x138] sm:$0xff]  ;;  %v4001_v19 = vmax.f32 %v50_v49, 0.0  ;;  %v452_v24 = vrot.slane %v3867_v61, 2  ;;  %v4023_v38 = vsel %vm415_vm0, %v447_v54, %v449_v57 }
  0x18   :  { %7098 = vst [vmem:[#allocation19_spill] sm:$0xff] %v3933_v31  ;;  %7099 = vst [vmem:[#allocation20_spill] sm:$0xff] %v3935_v32  ;;  %592 = vrot.lane.b32.xlu0 %v3943_v34, %s3666_s11  ;;  %v57_v22 = vld [vmem:[%s6766_s0 + $0x158] sm:$0xff]  ;;  %v454_v29 = vrot.slane %v6770_v46, 2  ;;  %v4013_v33 = vmax.f32 %v54_v60, 0.0  ;;  %v56_v35 = vld [vmem:[%s6766_s0 + $0x150] sm:$0xff]  ;;  %v4034_v46 = vsel %vm415_vm0, %v446_v0, %v447_v54 }
  0x19   :  { %271 = vst.msk [vmem:[#allocation2 + $0x80] sm:$0xff] %vm254_vm1, %v3905_v18  ;;  %7100 = vst [vmem:[#allocation21_spill] sm:$0xff] %v3943_v34  ;;  %v6784_v45 = vmax.f32 %v3992_v5, 0.0  ;;  %v4026_v49 = vmax.f32 %v53_v15, 0.0  ;;  %v60_v60 = vld [vmem:[%s6766_s0 + $0x170] sm:$0xff]  ;;  %v451_v30 = vrot.slane %v3882_v2, 2 }
  0x1a   :  { %7101 = vst [vmem:[#allocation22_spill] sm:$0xff] %v3946_v37  ;;  %274 = vst.msk [vmem:[#allocation2 + $0x98] sm:$0xff] %vm254_vm1, %v3915_v23  ;;  %v4040_v57 = vld [vmem:[%s6766_s0 + $0xe8] sm:$0xf]  ;;  %v4042_v1 = vmax.f32 %v57_v22, 0.0  ;;  %v4049_v50 = vmax.f32 %v56_v35, 0.0  ;;  %v4059_v0 = vsel %vm415_vm0, %v452_v24, %v454_v29 }
  0x1b   :  { %7102 = vst [vmem:[#allocation23_spill] sm:$0xff] %v3953_v42  ;;  %273 = vst.msk [vmem:[#allocation2 + $0x90] sm:$0xff] %vm254_vm1, %v3935_v32  ;;  %598 = vrot.lane.b32.xlu1 %v3973_v52, %s3666_s11  ;;  %v59_v15 = vld [vmem:[%s6766_s0 + $0x168] sm:$0xff]  ;;  %v4064_v22 = vld [vmem:[%s6766_s0 + $0x100] sm:$0xf]  ;;  %v4066_v35 = vmax.f32 %v60_v60, 0.0 }
  0x1c   :  { %7103 = vst [vmem:[#allocation24_spill] sm:$0xff] %v3963_v47  ;;  %276 = vst.msk [vmem:[#allocation2 + $0xa8] sm:$0xff] %vm254_vm1, %v3946_v37  ;;  %596 = vrot.lane.b32.xlu0 %v3986_v62, %s3666_s11  ;;  %v75_v54 = vld [vmem:[%s6766_s0 + $0x1e8] sm:$0xff]  ;;  %v74_v36 = vld [vmem:[%s6766_s0 + $0x1e0] sm:$0xff]  ;;  %v457_v29 = vrot.slane %v3898_v14, 2  ;;  %v459_v21 = vrot.slane %v6784_v45, 2 }
  0x1d   :  { %7104 = vst [vmem:[#allocation25_spill] sm:$0xff] %v3973_v52  ;;  %7105 = vst [vmem:[#allocation26_spill] sm:$0xff] %v3978_v59  ;;  %v4079_v16 = vmax.f32 %v59_v15, 0.0  ;;  %v78_v60 = vld [vmem:[%s6766_s0 + $0x200] sm:$0xff]  ;;  %v77_v45 = vld [vmem:[%s6766_s0 + $0x1f8] sm:$0xff]  ;;  %v4097_v15 = vmax.f32 %v74_v36, 0.0 }
  0x1e   :  { %275 = vst.msk [vmem:[#allocation2 + $0xa0] sm:$0xff] %vm254_vm1, %v3953_v42  ;;  %7106 = vst [vmem:[#allocation27_spill] sm:$0xff] %v3986_v62  ;;  %v4090_v62 = vmax.f32 %v75_v54, 0.0  ;;  %v81_v9 = vld [vmem:[%s6766_s0 + $0x218] sm:$0xff]  ;;  %v80_v54 = vld [vmem:[%s6766_s0 + $0x210] sm:$0xff]  ;;  %v4117_v36 = vsel %vm415_vm0, %v457_v29, %v459_v21  ;;  %v462_v52 = vrot.slane %v3915_v23, 2 }
  0x1f   :  { %7107 = vst [vmem:[#allocation28_spill] sm:$0xff] %v3992_v5  ;;  %7108 = vst [vmem:[#allocation29_spill] sm:$0xff] %v3994_v12  ;;  %602 = vrot.lane.b32.xlu1 %v4023_v38, %s3666_s11  ;;  %v84_v34 = vld [vmem:[%s6766_s0 + $0x230] sm:$0xff]  ;;  %v461_v21 = vrot.slane %v3935_v32, 2  ;;  %v4145_v11 = vmax.f32 %v80_v54, 0.0  ;;  %v86_v54 = vld [vmem:[%s6766_s0 + $0x240] sm:$0xff] }
  0x20   :  { %278 = vst.msk [vmem:[#allocation2 + $0xb8] sm:$0xff] %vm254_vm1, %v3963_v47  ;;  %7109 = vst [vmem:[#allocation30_spill] sm:$0xff] %v4001_v19  ;;  %600 = vrot.lane.b32.xlu0 %v4034_v46, %s3666_s11  ;;  %v4157_v53 = vmax.f32 %v84_v34, 0.0  ;;  %v90_v34 = vld [vmem:[%s6766_s0 + $0x260] sm:$0xff]  ;;  %v496_v56 = vrot.slane %v4097_v15, 2  ;;  %v840_v51 = vrot.slane %v3707_v4, 4 }
  0x21   :  { %277 = vst.msk [vmem:[#allocation2 + $0xb0] sm:$0xff] %vm254_vm1, %v3978_v59  ;;  %7110 = vst [vmem:[#allocation31_spill] sm:$0xff] %v4013_v33  ;;  %v7168_v55 = vmax.f32 %v3717_v7, 0.0  ;;  %v4494_v7 = vld [vmem:[%s6766_s0 + $0x238] sm:$0xf]  ;;  %s3670_s18 = smov 40  }
  0x22   :  { %280 = vst.msk [vmem:[#allocation2 + $0xc8] sm:$0xff] %vm254_vm1, %v3994_v12  ;;  %7111 = vst [vmem:[#allocation32_spill] sm:$0xff] %v4023_v38  ;;  %v4087_v38 = vsel %vm415_vm0, %v451_v30, %v452_v24  ;;  %v4107_v24 = vmax.f32 %v78_v60, 0.0  ;;  %v4122_v60 = vmax.f32 %v77_v45, 0.0  ;;  %v83_v45 = vld [vmem:[%s6766_s0 + $0x228] sm:$0xff]  ;;  %s3671_s19 = smov 48  }
  0x23   :  { %7112 = vst [vmem:[#allocation33_spill] sm:$0xff] %v4026_v49  ;;  %279 = vst.msk [vmem:[#allocation2 + $0xc0] sm:$0xff] %vm254_vm1, %v4001_v19  ;;  %606 = vrot.lane.b32.xlu1 %v4059_v0, %s3666_s11  ;;  %vm1732_vm6 = vcmask 326912   ;;  %s3672_s20 = smov 56   ;;  %s3673_s21 = smov 64   ;;  %vm2009_vm7 = vcmask 392512  }
  0x24   :  { %7113 = vst [vmem:[#allocation34_spill] sm:$0xff] %v4034_v46  ;;  %7114 = vst [vmem:[#allocation35_spill] sm:$0xff] %v4040_v57  ;;  %v456_v46 = vrot.slane %v3905_v18, 2  ;;  %604 = vrot.lane.b32.xlu0 %v4087_v38, %s3666_s11  ;;  %v501_v4 = vrot.slane %v4122_v60, 2  ;;  %vm2274_vm8 = vcmask 458112   ;;  %vm2555_vm9 = vcmask 523712  }
  0x25   :  { %7115 = vst [vmem:[#allocation36_spill] sm:$0xff] %v4042_v1  ;;  %282 = vst.msk [vmem:[#allocation2 + $0xd8] sm:$0xff] %vm254_vm1, %v4013_v33  ;;  %vm2832_vm10 = vcmask 589312   ;;  %vm2963_vm11 = vcmask 588800  }
  0x26   :  { %7116 = vst [vmem:[#allocation37_spill] sm:$0xff] %v4049_v50  ;;  %281 = vst.msk [vmem:[#allocation2 + $0xd0] sm:$0xff] %vm254_vm1, %v4026_v49  ;;  %v4130_v25 = vsel %vm415_vm0, %v456_v46, %v457_v29  ;;  %v87_v46 = vld [vmem:[%s6766_s0 + $0x248] sm:$0xff]  ;;  %v7126_v29 = vmax.f32 %v4064_v22, 0.0 }
  0x27   :  { %7117 = vst [vmem:[#allocation38_spill] sm:$0xff] %v4059_v0  ;;  %7118 = vst [vmem:[#allocation39_spill] sm:$0xff] %v4064_v22  ;;  %v7123_v0 = vmax.f32 %v4040_v57, 0.0  ;;  %610 = vrot.lane.b32.xlu1 %v4117_v36, %s3666_s11  ;;  %v466_v22 = vrot.slane %v3953_v42, 2  ;;  %v92_v42 = vld [vmem:[%s6766_s0 + $0x270] sm:$0xff]  ;;  %v99_v57 = vld [vmem:[%s6766_s0 + $0x2a8] sm:$0xff] }
  0x28   :  { %7119 = vst [vmem:[#allocation40_spill] sm:$0xff] %v4066_v35  ;;  %284 = vst.msk [vmem:[#allocation2 + $0xe8] sm:$0xff] %vm254_vm1, %v4042_v1  ;;  %v469_v63 = vrot.slane %v7126_v29, 2  ;;  %608 = vrot.lane.b32.xlu0 %v4130_v25, %s3666_s11  ;;  %v4178_v29 = vsel %vm415_vm0, %v461_v21, %v462_v52 }
  0x29   :  { %7120 = vst [vmem:[#allocation41_spill] sm:$0xff] %v4079_v16  ;;  %283 = vst.msk [vmem:[#allocation2 + $0xe0] sm:$0xff] %vm254_vm1, %v4049_v50  ;;  %v464_v30 = vrot.slane %v7123_v0, 2  ;;  %v4138_v0 = vmax.f32 %v81_v9, 0.0  ;;  %v467_v9 = vrot.slane %v3946_v37, 2  ;;  %v4170_v37 = vmax.f32 %v83_v45, 0.0 }
  0x2a   :  { %7121 = vst [vmem:[#allocation42_spill] sm:$0xff] %v4087_v38  ;;  %286 = vst.msk [vmem:[#allocation2 + $0xf8] sm:$0xff] %vm254_vm1, %v4066_v35  ;;  %v4136_v38 = vld [vmem:[%s6766_s0 + $0x118] sm:$0xf] }
  0x2b   :  { %285 = vst.msk [vmem:[#allocation2 + $0xf0] sm:$0xff] %vm254_vm1, %v4079_v16  ;;  %288 = vst.msk [vmem:[#allocation2 + $0x108] sm:$0xff] %vm254_vm1, %v4090_v62  ;;  %v4167_v48 = vsel %vm415_vm0, %v462_v52, %v464_v30  ;;  %v4184_v30 = vld [vmem:[%s6766_s0 + $0x130] sm:$0xf]  ;;  %v89_v45 = vld [vmem:[%s6766_s0 + $0x258] sm:$0xff]  ;;  %v4203_v21 = vsel %vm415_vm0, %v467_v9, %v469_v63  ;;  %v472_v63 = vrot.slane %v3963_v47, 2  ;;  %v4231_v18 = vsel %vm415_vm0, %v466_v22, %v467_v9 }
  0x2c   :  { %7122 = vst [vmem:[#allocation43_spill] sm:$0xff] %v4117_v36  ;;  %287 = vst.msk [vmem:[#allocation2 + $0x100] sm:$0xff] %vm254_vm1, %v4097_v15  ;;  %v4186_v36 = vmax.f32 %v87_v46, 0.0  ;;  %v93_v52 = vld [vmem:[%s6766_s0 + $0x278] sm:$0xff]  ;;  %614 = vrot.lane.b32.xlu1 %v4167_v48, %s3666_s11  ;;  %v4208_v46 = vld [vmem:[%s6766_s0 + $0x148] sm:$0xf]  ;;  %612 = vrot.lane.b32.xlu0 %v4178_v29, %s3666_s11 }
  0x2d   :  { %7124 = vst [vmem:[#allocation44_spill] sm:$0xff] %v4130_v25  ;;  %7125 = vst [vmem:[#allocation45_spill] sm:$0xff] %v4136_v38  ;;  %v4193_v25 = vmax.f32 %v86_v54, 0.0  ;;  %v4210_v54 = vmax.f32 %v90_v34, 0.0  ;;  %v4223_v23 = vmax.f32 %v89_v45, 0.0  ;;  %v96_v34 = vld [vmem:[%s6766_s0 + $0x290] sm:$0xff] }
  0x2e   :  { %290 = vst.msk [vmem:[#allocation2 + $0x118] sm:$0xff] %vm254_vm1, %v4107_v24  ;;  %289 = vst.msk [vmem:[#allocation2 + $0x110] sm:$0xff] %vm254_vm1, %v4122_v60  ;;  %v4234_v47 = vmax.f32 %v93_v52, 0.0  ;;  %v4241_v45 = vmax.f32 %v92_v42, 0.0  ;;  %v4251_v9 = vmax.f32 %v96_v34, 0.0  ;;  %v98_v52 = vld [vmem:[%s6766_s0 + $0x2a0] sm:$0xff] }
  0x2f   :  { %292 = vst.msk [vmem:[#allocation2 + $0x128] sm:$0xff] %vm254_vm1, %v4138_v0  ;;  %7127 = vst [vmem:[#allocation46_spill] sm:$0xff] %v4167_v48  ;;  %v7134_v48 = vmax.f32 %v4136_v38, 0.0  ;;  %v102_v38 = vld [vmem:[%s6766_s0 + $0x2c0] sm:$0xff] }
  0x30   :  { %291 = vst.msk [vmem:[#allocation2 + $0x120] sm:$0xff] %vm254_vm1, %v4145_v11  ;;  %7128 = vst [vmem:[#allocation47_spill] sm:$0xff] %v4178_v29  ;;  %v471_v29 = vrot.slane %v3978_v59, 2  ;;  %618 = vrot.lane.b32.xlu1 %v4203_v21, %s3666_s11  ;;  %616 = vrot.lane.b32.xlu0 %v4231_v18, %s3666_s11  ;;  %v477_v59 = vrot.slane %v3994_v12, 2  ;;  %v4301_v12 = vmax.f32 %v102_v38, 0.0  ;;  %v108_v38 = vld [vmem:[%s6766_s0 + $0x2f0] sm:$0xff] }
  0x31   :  { %7129 = vst [vmem:[#allocation48_spill] sm:$0xff] %v4184_v30  ;;  %294 = vst.msk [vmem:[#allocation2 + $0x138] sm:$0xff] %vm254_vm1, %v4157_v53  ;;  %v474_v32 = vrot.slane %v7134_v48, 2  ;;  %v95_v48 = vld [vmem:[%s6766_s0 + $0x288] sm:$0xff] }
  0x32   :  { %7130 = vst [vmem:[#allocation49_spill] sm:$0xff] %v4193_v25  ;;  %293 = vst.msk [vmem:[#allocation2 + $0x130] sm:$0xff] %vm254_vm1, %v4170_v37  ;;  %v4266_v34 = vmax.f32 %v95_v48, 0.0  ;;  %v4274_v5 = vsel %vm415_vm0, %v471_v29, %v472_v63  ;;  %v101_v48 = vld [vmem:[%s6766_s0 + $0x2b8] sm:$0xff] }
  0x33   :  { %7131 = vst [vmem:[#allocation50_spill] sm:$0xff] %v4203_v21  ;;  %7132 = vst [vmem:[#allocation51_spill] sm:$0xff] %v4208_v46  ;;  %v4261_v42 = vsel %vm415_vm0, %v472_v63, %v474_v32  ;;  %v7138_v21 = vmax.f32 %v4184_v30, 0.0  ;;  %v476_v32 = vrot.slane %v4001_v19, 2  ;;  %v4289_v30 = vmax.f32 %v98_v52, 0.0  ;;  %v105_v29 = vld [vmem:[%s6766_s0 + $0x2d8] sm:$0xff] }
  0x34   :  { %7133 = vst [vmem:[#allocation52_spill] sm:$0xff] %v4210_v54  ;;  %296 = vst.msk [vmem:[#allocation2 + $0x148] sm:$0xff] %vm254_vm1, %v4186_v36  ;;  %622 = vrot.lane.b32.xlu1 %v4261_v42, %s3666_s11  ;;  %v7144_v63 = vmax.f32 %v4208_v46, 0.0  ;;  %v104_v52 = vld [vmem:[%s6766_s0 + $0x2d0] sm:$0xff]  ;;  %620 = vrot.lane.b32.xlu0 %v4274_v5, %s3666_s11  ;;  %v481_v46 = vrot.slane %v4026_v49, 2  ;;  %v110_v49 = vld [vmem:[%s6766_s0 + $0x300] sm:$0xff] }
  0x35   :  { %295 = vst.msk [vmem:[#allocation2 + $0x140] sm:$0xff] %vm254_vm1, %v4193_v25  ;;  %7135 = vst [vmem:[#allocation53_spill] sm:$0xff] %v4231_v18  ;;  %v479_v22 = vrot.slane %v7138_v21, 2  ;;  %v4280_v18 = vld [vmem:[%s6766_s0 + $0x160] sm:$0xf]  ;;  %v4282_v21 = vmax.f32 %v99_v57, 0.0 }
  0x36   :  { %298 = vst.msk [vmem:[#allocation2 + $0x158] sm:$0xff] %vm254_vm1, %v4210_v54  ;;  %297 = vst.msk [vmem:[#allocation2 + $0x150] sm:$0xff] %vm254_vm1, %v4223_v23  ;;  %v482_v57 = vrot.slane %v4013_v33, 2  ;;  %v484_v19 = vrot.slane %v7144_v63, 2  ;;  %v4314_v33 = vmax.f32 %v101_v48, 0.0  ;;  %v4322_v63 = vsel %vm415_vm0, %v476_v32, %v477_v59  ;;  %v107_v48 = vld [vmem:[%s6766_s0 + $0x2e8] sm:$0xff] }
  0x37   :  { %7136 = vst [vmem:[#allocation54_spill] sm:$0xff] %v4251_v9  ;;  %300 = vst.msk [vmem:[#allocation2 + $0x168] sm:$0xff] %vm254_vm1, %v4234_v47  ;;  %v4311_v14 = vsel %vm415_vm0, %v477_v59, %v479_v22  ;;  %v4328_v22 = vld [vmem:[%s6766_s0 + $0x178] sm:$0xf]  ;;  %v111_v59 = vld [vmem:[%s6766_s0 + $0x308] sm:$0xff]  ;;  %v4367_v61 = vmax.f32 %v107_v48, 0.0 }
  0x38   :  { %7137 = vst [vmem:[#allocation55_spill] sm:$0xff] %v4261_v42  ;;  %7139 = vst [vmem:[#allocation56_spill] sm:$0xff] %v4266_v34  ;;  %v4330_v42 = vmax.f32 %v105_v29, 0.0  ;;  %626 = vrot.lane.b32.xlu1 %v4311_v14, %s3666_s11  ;;  %v4347_v32 = vsel %vm415_vm0, %v482_v57, %v484_v19  ;;  %v4352_v29 = vld [vmem:[%s6766_s0 + $0x1f0] sm:$0xf]  ;;  %624 = vrot.lane.b32.xlu0 %v4322_v63, %s3666_s11  ;;  %v487_v19 = vrot.slane %v4042_v1, 2 }
  0x39   :  { %299 = vst.msk [vmem:[#allocation2 + $0x160] sm:$0xff] %vm254_vm1, %v4241_v45  ;;  %7140 = vst [vmem:[#allocation57_spill] sm:$0xff] %v4274_v5  ;;  %v4337_v5 = vmax.f32 %v104_v52, 0.0  ;;  %v4354_v52 = vmax.f32 %v108_v38, 0.0  ;;  %v114_v38 = vld [vmem:[%s6766_s0 + $0x320] sm:$0xff]  ;;  %v4375_v58 = vsel %vm415_vm0, %v481_v46, %v482_v57  ;;  %v4378_v1 = vmax.f32 %v111_v59, 0.0 }
  0x3a   :  { %7141 = vst [vmem:[#allocation58_spill] sm:$0xff] %v4280_v18  ;;  %7142 = vst [vmem:[#allocation59_spill] sm:$0xff] %v4282_v21  ;;  %v4386_v31 = vmax.f32 %v110_v49, 0.0  ;;  %v117_v46 = vld [vmem:[%s6766_s0 + $0x338] sm:$0xff]  ;;  %v4397_v57 = vmax.f32 %v114_v38, 0.0  ;;  %v116_v49 = vld [vmem:[%s6766_s0 + $0x330] sm:$0xff] }
  0x3b   :  { %302 = vst.msk [vmem:[#allocation2 + $0x178] sm:$0xff] %vm254_vm1, %v4251_v9  ;;  %7143 = vst [vmem:[#allocation60_spill] sm:$0xff] %v4289_v30  ;;  %v492_v48 = vrot.slane %v4066_v35, 2 }
  0x3c   :  { %301 = vst.msk [vmem:[#allocation2 + $0x170] sm:$0xff] %vm254_vm1, %v4266_v34  ;;  %7145 = vst [vmem:[#allocation61_spill] sm:$0xff] %v4301_v12  ;;  %630 = vrot.lane.b32.xlu1 %v4347_v32, %s3666_s11  ;;  %628 = vrot.lane.b32.xlu0 %v4375_v58, %s3666_s11 }
  0x3d   :  { %304 = vst.msk [vmem:[#allocation2 + $0x188] sm:$0xff] %vm254_vm1, %v4282_v21  ;;  %7146 = vst [vmem:[#allocation62_spill] sm:$0xff] %v4311_v14  ;;  %v7154_v14 = vmax.f32 %v4280_v18, 0.0  ;;  %v120_v18 = vld [vmem:[%s6766_s0 + $0x350] sm:$0xff] }
  0x3e   :  { %7147 = vst [vmem:[#allocation63_spill] sm:$0xff] %v4314_v33  ;;  %303 = vst.msk [vmem:[#allocation2 + $0x180] sm:$0xff] %vm254_vm1, %v4289_v30 }
  0x3f   :  { %7148 = vst [vmem:[#allocation64_spill] sm:$0xff] %v4322_v63  ;;  %7149 = vst [vmem:[#allocation65_spill] sm:$0xff] %v4328_v22  ;;  %v489_v2 = vrot.slane %v7154_v14, 2  ;;  %v486_v63 = vrot.slane %v4049_v50, 2  ;;  %v113_v14 = vld [vmem:[%s6766_s0 + $0x318] sm:$0xff]  ;;  %v7159_v50 = vmax.f32 %v4328_v22, 0.0 }
  0x40   :  { %7150 = vst [vmem:[#allocation66_spill] sm:$0xff] %v4330_v42  ;;  %306 = vst.msk [vmem:[#allocation2 + $0x198] sm:$0xff] %vm254_vm1, %v4301_v12  ;;  %v4412_v38 = vmax.f32 %v113_v14, 0.0  ;;  %v119_v14 = vld [vmem:[%s6766_s0 + $0x348] sm:$0xff]  ;;  %v497_v22 = vrot.slane %v4090_v62, 2 }
  0x41   :  { %7151 = vst [vmem:[#allocation67_spill] sm:$0xff] %v4337_v5  ;;  %305 = vst.msk [vmem:[#allocation2 + $0x190] sm:$0xff] %vm254_vm1, %v4314_v33  ;;  %v4405_v59 = vsel %vm415_vm0, %v487_v19, %v489_v2  ;;  %v4418_v13 = vsel %vm415_vm0, %v486_v63, %v487_v19  ;;  %v491_v2 = vrot.slane %v4079_v16, 2  ;;  %v7162_v63 = vmax.f32 %v4352_v29, 0.0 }
  0x42   :  { %7152 = vst [vmem:[#allocation68_spill] sm:$0xff] %v4347_v32  ;;  %7153 = vst [vmem:[#allocation69_spill] sm:$0xff] %v4354_v52  ;;  %v494_v32 = vrot.slane %v7159_v50, 2  ;;  %v4428_v50 = vmax.f32 %v117_v46, 0.0  ;;  %v4438_v16 = vmax.f32 %v116_v49, 0.0  ;;  %634 = vrot.lane.b32.xlu1 %v4405_v59, %s3666_s11  ;;  %v4444_v46 = vmax.f32 %v120_v18, 0.0  ;;  %632 = vrot.lane.b32.xlu0 %v4418_v13, %s3666_s11 }
  0x43   :  { %308 = vst.msk [vmem:[#allocation2 + $0x1a8] sm:$0xff] %vm254_vm1, %v4330_v42  ;;  %7155 = vst [vmem:[#allocation70_spill] sm:$0xff] %v4367_v61  ;;  %v499_v19 = vrot.slane %v7162_v63, 2  ;;  %v4454_v49 = vmax.f32 %v119_v14, 0.0  ;;  %v4463_v18 = vld [vmem:[%s6766_s0 + $0x220] sm:$0xf] }
  0x44   :  { %307 = vst.msk [vmem:[#allocation2 + $0x1a0] sm:$0xff] %vm254_vm1, %v4337_v5  ;;  %7156 = vst [vmem:[#allocation71_spill] sm:$0xff] %v4375_v58  ;;  %v4424_v58 = vld [vmem:[%s6766_s0 + $0x208] sm:$0xf]  ;;  %v4449_v35 = vsel %vm415_vm0, %v492_v48, %v494_v32  ;;  %v835_v32 = vrot.slane %v3719_v8, 4  ;;  %v502_v14 = vrot.slane %v4107_v24, 2 }
  0x45   :  { %310 = vst.msk [vmem:[#allocation2 + $0x1b8] sm:$0xff] %vm254_vm1, %v4354_v52  ;;  %7157 = vst [vmem:[#allocation72_spill] sm:$0xff] %v4386_v31  ;;  %v500_v63 = vsel %vm415_vm0, %v497_v22, %v499_v19  ;;  %v842_v8 = vrot.slane %v7168_v55, 4  ;;  %v7169_v19 = vmax.f32 %v4424_v58, 0.0 }
  0x46   :  { %309 = vst.msk [vmem:[#allocation2 + $0x1b0] sm:$0xff] %vm254_vm1, %v4367_v61  ;;  %312 = vst.msk [vmem:[#allocation2 + $0x1c8] sm:$0xff] %vm254_vm1, %v4378_v1  ;;  %638 = vrot.lane.b32.xlu1 %v4449_v35, %s3666_s11 }
  0x47   :  { %7158 = vst [vmem:[#allocation73_spill] sm:$0xff] %v4405_v59  ;;  %311 = vst.msk [vmem:[#allocation2 + $0x1c0] sm:$0xff] %vm254_vm1, %v4386_v31  ;;  %v4457_v59 = vsel %vm415_vm0, %v491_v2, %v492_v48  ;;  %v7167_v48 = vmax.f32 %v3725_v10, 0.0  ;;  %v504_v44 = vrot.slane %v7169_v19, 2  ;;  %v6885_v10 = vmax.f32 %v4463_v18, 0.0 }
  0x48   :  { %7160 = vst [vmem:[#allocation74_spill] sm:$0xff] %v4412_v38  ;;  %7161 = vst [vmem:[#allocation75_spill] sm:$0xff] %v4418_v13  ;;  %v834_v13 = vrot.slane %v3712_v6, 4  ;;  %636 = vrot.lane.b32.xlu0 %v4457_v59, %s3666_s11  ;;  %v498_v6 = vsel %vm415_vm0, %v496_v56, %v497_v22  ;;  %v4500_v19 = vsel %vm833_vm2, %v840_v51, %v842_v8  ;;  %v507_v56 = vrot.slane %v4138_v0, 2 }
  0x49   :  { %314 = vst.msk [vmem:[#allocation2 + $0x1d8] sm:$0xff] %vm254_vm1, %v4397_v57  ;;  %313 = vst.msk [vmem:[#allocation2 + $0x1d0] sm:$0xff] %vm254_vm1, %v4412_v38  ;;  %v837_v2 = vrot.slane %v7167_v48, 4  ;;  %v509_v22 = vrot.slane %v6885_v10, 2  ;;  %v506_v8 = vrot.slane %v4145_v11, 2 }
  0x4a   :  { %316 = vst.msk [vmem:[#allocation2 + $0x1e8] sm:$0xff] %vm254_vm1, %v4428_v50  ;;  %7163 = vst [vmem:[#allocation76_spill] sm:$0xff] %v4444_v46  ;;  %v4497_v55 = vsel %vm833_vm2, %v834_v13, %v835_v32  ;;  %642 = vrot.lane.b32.xlu1 %v500_v63, %s3666_s11  ;;  %v6884_v13 = vmax.f32 %v4494_v7, 0.0 }
  0x4b   :  { %7164 = vst [vmem:[#allocation77_spill] sm:$0xff] %v4449_v35  ;;  %315 = vst.msk [vmem:[#allocation2 + $0x1e0] sm:$0xff] %vm254_vm1, %v4438_v16  ;;  %v4486_v48 = vsel %vm833_vm2, %v835_v32, %v837_v2  ;;  %v839_v35 = vrot.slane %v3705_v3, 4  ;;  %v505_v3 = vsel %vm415_vm0, %v502_v14, %v504_v44  ;;  %v503_v32 = vsel %vm415_vm0, %v501_v4, %v502_v14 }
  0x4c   :  { %7165 = vst [vmem:[#allocation78_spill] sm:$0xff] %v4454_v49  ;;  %7166 = vst [vmem:[#allocation79_spill] sm:$0xff] %v4457_v59  ;;  %640 = vrot.lane.b32.xlu0 %v498_v6, %s3666_s11  ;;  %v4522_v44 = vsel %vm415_vm0, %v507_v56, %v509_v22  ;;  %v514_v63 = vrot.slane %v6884_v13, 2  ;;  %v4529_v6 = vsel %vm415_vm0, %v506_v8, %v507_v56  ;;  %v511_v4 = vrot.slane %v4170_v37, 2  ;;  %v4551_v13 = vld [vmem:[%s6766_s0 + $0x280] sm:$0xf] }
  0x4d   :  { %318 = vst.msk [vmem:[#allocation2 + $0x1f8] sm:$0xff] %vm254_vm1, %v4444_v46  ;;  %317 = vst.msk [vmem:[#allocation2 + $0x1f0] sm:$0xff] %vm254_vm1, %v4454_v49  ;;  %v4503_v2 = vsel %vm833_vm2, %v839_v35, %v840_v51  ;;  %v4517_v51 = vld [vmem:[%s6766_s0 + $0x250] sm:$0xf]  ;;  %v512_v35 = vrot.slane %v4157_v53, 2  ;;  %v522_v8 = vrot.slane %v4210_v54, 2 }
  0x4e   :  { %646 = vrot.lane.b32.xlu1 %v505_v3, %s3666_s11  ;;  %7170 = vst [vmem:[#allocation80_spill] sm:$0xff] %v4522_v44  ;;  %v6887_v14 = vmax.f32 %v4517_v51, 0.0  ;;  %7171 = vst [vmem:[#allocation81_spill] sm:$0xff] %v4529_v6  ;;  %v4535_v3 = vld [vmem:[%s6766_s0 + $0x268] sm:$0xf] }
  0x4f   :  { %7172 = vst [vmem:[#allocation82_spill] sm:$0xff] %v4535_v3  ;;  %v4542_v22 = vsel %vm415_vm0, %v512_v35, %v514_v63  ;;  %v4554_v10 = vsel %vm415_vm0, %v511_v4, %v512_v35  ;;  %v4571_v35 = vld [vmem:[%s6766_s0 + $0x298] sm:$0xf]  ;;  %v521_v63 = vrot.slane %v4223_v23, 2  ;;  %vm5923_vm12 = vmpackc.low %vm2963_vm11, %vm2963_vm11 }
  0x50   :  { %644 = vrot.lane.b32.xlu0 %v503_v32, %s3666_s11  ;;  %7173 = vst [vmem:[#allocation83_spill] sm:$0xff] %v4542_v22  ;;  %v517_v32 = vrot.slane %v4186_v36, 2  ;;  %v519_v56 = vrot.slane %v6887_v14, 2  ;;  %7174 = vst [vmem:[#allocation84_spill] sm:$0xff] %v4554_v10 }
  0x52   :  { %650 = vrot.lane.b32.xlu1 %v4522_v44, %s3666_s11  ;;  %v4563_v14 = vsel %vm415_vm0, %v517_v32, %v519_v56  ;;  %v7176_v44 = vmax.f32 %v4535_v3, 0.0  ;;  %v915_v56 = vrot.slane %v4090_v62, 4 }
  0x53   :  { %7175 = vst [vmem:[#allocation85_spill] sm:$0xff] %v4563_v14 }
  0x54   :  { %648 = vrot.lane.b32.xlu0 %v4529_v6, %s3666_s11  ;;  %v516_v6 = vrot.slane %v4193_v25, 2  ;;  %v524_v59 = vrot.slane %v7176_v44, 2  ;;  %v7179_v44 = vmax.f32 %v4551_v13, 0.0  ;;  %v4600_v25 = vsel %vm415_vm0, %v521_v63, %v522_v8 }
  0x55   :  { %7182 = vst [vmem:[#allocation88_spill] sm:$0xff] %v4600_v25  ;;  %v7184_v63 = vmax.f32 %v4571_v35, 0.0 }
  0x56   :  { %654 = vrot.lane.b32.xlu1 %v4542_v22, %s3666_s11  ;;  %v4574_v4 = vsel %vm415_vm0, %v516_v6, %v517_v32  ;;  %v7178_v22 = vmax.f32 %v4352_v29, 0.0  ;;  %v529_v3 = vrot.slane %v7179_v44, 2  ;;  %v914_v6 = vrot.slane %v4097_v15, 4 }
  0x57   :  { %7177 = vst [vmem:[#allocation86_spill] sm:$0xff] %v4574_v4  ;;  %v920_v32 = vrot.slane %v4107_v24, 4  ;;  %v4591_v62 = vsel %vm415_vm0, %v522_v8, %v524_v59  ;;  %v919_v44 = vrot.slane %v4122_v60, 4  ;;  %v526_v15 = vrot.slane %v4241_v45, 2  ;;  %v4606_v24 = vld [vmem:[%s6766_s0 + $0x2b0] sm:$0xf] }
  0x58   :  { %652 = vrot.lane.b32.xlu0 %v4554_v10, %s3666_s11  ;;  %v527_v10 = vrot.slane %v4234_v47, 2  ;;  %v917_v54 = vrot.slane %v7178_v22, 4  ;;  %7180 = vst [vmem:[#allocation87_spill] sm:$0xff] %v4591_v62  ;;  %v7181_v22 = vmax.f32 %v4424_v58, 0.0  ;;  %v4609_v59 = vsel %vm833_vm2, %v914_v6, %v915_v56 }
  0x59   :  { %v4615_v58 = vsel %vm833_vm2, %v919_v44, %v920_v32  ;;  %v532_v8 = vrot.slane %v4251_v9, 2  ;;  %v537_v44 = vrot.slane %v4282_v21, 2 }
  0x5a   :  { %658 = vrot.lane.b32.xlu1 %v4563_v14, %s3666_s11  ;;  %v4594_v29 = vsel %vm833_vm2, %v915_v56, %v917_v54  ;;  %v922_v14 = vrot.slane %v7181_v22, 4  ;;  %v4622_v60 = vsel %vm415_vm0, %v527_v10, %v529_v3  ;;  %v534_v56 = vrot.slane %v7184_v63, 2  ;;  %v4635_v22 = vld [vmem:[%s6766_s0 + $0x2c8] sm:$0xf] }
  0x5b   :  { %7183 = vst [vmem:[#allocation89_spill] sm:$0xff] %v4622_v60  ;;  %v4629_v6 = vsel %vm415_vm0, %v526_v15, %v527_v10  ;;  %v6911_v15 = vmax.f32 %v4635_v22, 0.0 }
  0x5c   :  { %656 = vrot.lane.b32.xlu0 %v4574_v4, %s3666_s11  ;;  %v4612_v54 = vsel %vm833_vm2, %v920_v32, %v922_v14  ;;  %v6904_v14 = vmax.f32 %v4606_v24, 0.0  ;;  %7185 = vst [vmem:[#allocation90_spill] sm:$0xff] %v4629_v6  ;;  %v531_v32 = vrot.slane %v4266_v34, 2  ;;  %v4642_v3 = vsel %vm415_vm0, %v532_v8, %v534_v56 }
  0x5d   :  { %7186 = vst [vmem:[#allocation91_spill] sm:$0xff] %v4642_v3  ;;  %v546_v4 = vrot.slane %v4337_v5, 2  ;;  %v551_v5 = vrot.slane %v4367_v61, 2  ;;  %v556_v61 = vrot.slane %v4386_v31, 2  ;;  %v561_v31 = vrot.slane %v4412_v38, 2 }
  0x5e   :  { %662 = vrot.lane.b32.xlu1 %v4591_v62, %s3666_s11  ;;  %v539_v10 = vrot.slane %v6904_v14, 2  ;;  %v4649_v63 = vsel %vm415_vm0, %v531_v32, %v532_v8  ;;  %v542_v14 = vrot.slane %v4301_v12, 2  ;;  %v544_v8 = vrot.slane %v6911_v15, 2 }
  0x5f   :  { %7187 = vst [vmem:[#allocation92_spill] sm:$0xff] %v4649_v63  ;;  %v541_v62 = vrot.slane %v4314_v33, 2  ;;  %v547_v15 = vrot.slane %v4330_v42, 2 }
  0x60   :  { %660 = vrot.lane.b32.xlu0 %v4600_v25, %s3666_s11  ;;  %v536_v25 = vrot.slane %v4289_v30, 2  ;;  %v4662_v56 = vsel %vm415_vm0, %v537_v44, %v539_v10  ;;  %v4682_v10 = vsel %vm415_vm0, %v542_v14, %v544_v8 }
  0x61   :  { %7188 = vst [vmem:[#allocation93_spill] sm:$0xff] %v4662_v56  ;;  %7190 = vst [vmem:[#allocation95_spill] sm:$0xff] %v4682_v10 }
  0x62   :  { %666 = vrot.lane.b32.xlu1 %v4622_v60, %s3666_s11  ;;  %v4655_v60 = vld [vmem:[%s6766_s0 + $0x2e0] sm:$0xf] }
  0x63   :  { %v6918_v32 = vmax.f32 %v4655_v60, 0.0 }
  0x64   :  { %664 = vrot.lane.b32.xlu0 %v4629_v6, %s3666_s11  ;;  %v4669_v6 = vsel %vm415_vm0, %v536_v25, %v537_v44 }
  0x65   :  { %7189 = vst [vmem:[#allocation94_spill] sm:$0xff] %v4669_v6  ;;  %v549_v25 = vrot.slane %v6918_v32, 2  ;;  %v552_v32 = vrot.slane %v4354_v52, 2 }
  0x66   :  { %670 = vrot.lane.b32.xlu1 %v4642_v3, %s3666_s11  ;;  %v4675_v3 = vld [vmem:[%s6766_s0 + $0x2f8] sm:$0xf] }
  0x67   :  { %v6925_v44 = vmax.f32 %v4675_v3, 0.0  ;;  %v4702_v8 = vsel %vm415_vm0, %v547_v15, %v549_v25 }
  0x68   :  { %668 = vrot.lane.b32.xlu0 %v4649_v63, %s3666_s11  ;;  %v4689_v63 = vsel %vm415_vm0, %v541_v62, %v542_v14  ;;  %7192 = vst [vmem:[#allocation97_spill] sm:$0xff] %v4702_v8 }
  0x69   :  { %7191 = vst [vmem:[#allocation96_spill] sm:$0xff] %v4689_v63  ;;  %v554_v62 = vrot.slane %v6925_v44, 2  ;;  %v557_v44 = vrot.slane %v4378_v1, 2 }
  0x6a   :  { %674 = vrot.lane.b32.xlu1 %v4662_v56, %s3666_s11  ;;  %v4695_v56 = vld [vmem:[%s6766_s0 + $0x310] sm:$0xf] }
  0x6b   :  { %v6932_v14 = vmax.f32 %v4695_v56, 0.0  ;;  %v4722_v25 = vsel %vm415_vm0, %v552_v32, %v554_v62 }
  0x6c   :  { %672 = vrot.lane.b32.xlu0 %v4669_v6, %s3666_s11  ;;  %v4709_v6 = vsel %vm415_vm0, %v546_v4, %v547_v15  ;;  %7195 = vst [vmem:[#allocation100_spill] sm:$0xff] %v4722_v25 }
  0x6d   :  { %7193 = vst [vmem:[#allocation98_spill] sm:$0xff] %v4709_v6  ;;  %v559_v4 = vrot.slane %v6932_v14, 2  ;;  %v562_v14 = vrot.slane %v4397_v57, 2 }
  0x6e   :  { %678 = vrot.lane.b32.xlu1 %v4682_v10, %s3666_s11  ;;  %v4715_v10 = vld [vmem:[%s6766_s0 + $0x328] sm:$0xf] }
  0x6f   :  { %7194 = vst [vmem:[#allocation99_spill] sm:$0xff] %v4715_v10  ;;  %v6939_v15 = vmax.f32 %v4715_v10, 0.0  ;;  %v4742_v62 = vsel %vm415_vm0, %v557_v44, %v559_v4  ;;  %v4769_v38 = vsel %vm415_vm0, %v561_v31, %v562_v14 }
  0x70   :  { %676 = vrot.lane.b32.xlu0 %v4689_v63, %s3666_s11  ;;  %v4729_v63 = vsel %vm415_vm0, %v551_v5, %v552_v32  ;;  %7197 = vst [vmem:[#allocation102_spill] sm:$0xff] %v4742_v62  ;;  %7200 = vst [vmem:[#allocation105_spill] sm:$0xff] %v4769_v38 }
  0x71   :  { %7196 = vst [vmem:[#allocation101_spill] sm:$0xff] %v4729_v63  ;;  %v564_v5 = vrot.slane %v6939_v15, 2 }
  0x72   :  { %682 = vrot.lane.b32.xlu1 %v4702_v8, %s3666_s11  ;;  %v4735_v8 = vld [vmem:[%s6766_s0 + $0x340] sm:$0xf] }
  0x73   :  { %v6947_v32 = vmax.f32 %v4735_v8, 0.0  ;;  %v4762_v4 = vsel %vm415_vm0, %v562_v14, %v564_v5 }
  0x74   :  { %680 = vrot.lane.b32.xlu0 %v4709_v6, %s3666_s11  ;;  %v4749_v6 = vsel %vm415_vm0, %v556_v61, %v557_v44  ;;  %7199 = vst [vmem:[#allocation104_spill] sm:$0xff] %v4762_v4  ;;  %v567_v61 = vrot.slane %v4428_v50, 2 }
  0x75   :  { %7198 = vst [vmem:[#allocation103_spill] sm:$0xff] %v4749_v6  ;;  %v569_v44 = vrot.slane %v6947_v32, 2  ;;  %v572_v32 = vrot.slane %v4444_v46, 2 }
  0x76   :  { %686 = vrot.lane.b32.xlu1 %v4722_v25, %s3666_s11  ;;  %v4755_v25 = vld [vmem:[%s6766_s0 + $0x358] sm:$0xf] }
  0x77   :  { %v6950_v15 = vmax.f32 %v4755_v25, 0.0  ;;  %v4779_v5 = vsel %vm415_vm0, %v567_v61, %v569_v44 }
  0x78   :  { %684 = vrot.lane.b32.xlu0 %v4729_v63, %s3666_s11  ;;  %7201 = vst [vmem:[#allocation106_spill] sm:$0xff] %v4779_v5 }
  0x79   :  { %v581_v63 = vpop.permute.xlu1 %580  ;;  %v574_v31 = vrot.slane %v6950_v15, 2 }
  0x7a   :  { %690 = vrot.lane.b32.xlu1 %v4742_v62, %s3666_s11  ;;  %v566_v62 = vrot.slane %v4438_v16, 2  ;;  %771 = vst.msk [vmem:[#allocation2 + $0x10] sm:$0xff] %vm768_vm3, %v581_v63  ;;  %v577_v10 = vpop.permute.xlu0 %576 }
  0x7b   :  { %769 = vst.msk [vmem:[#allocation2] sm:$0xff] %vm768_vm3, %v577_v10  ;;  %v571_v10 = vrot.slane %v4454_v49, 2  ;;  %v4795_v44 = vsel %vm415_vm0, %v572_v32, %v574_v31 }
  0x7c   :  { %688 = vrot.lane.b32.xlu0 %v4749_v6, %s3666_s11  ;;  %v4785_v63 = vsel %vm415_vm0, %v566_v62, %v567_v61  ;;  %7203 = vst [vmem:[#allocation108_spill] sm:$0xff] %v4795_v44 }
  0x7d   :  { %v583_v14 = vpop.permute.xlu1 %582  ;;  %7202 = vst [vmem:[#allocation107_spill] sm:$0xff] %v4785_v63  ;;  %v4798_v62 = vsel %vm415_vm0, %v571_v10, %v572_v32  ;;  %v7205_v32 = vmax.f32 %v3740_v17, 0.0  ;;  %v850_v17 = vrot.slane %v3772_v28, 4 }
  0x7e   :  { %694 = vrot.lane.b32.xlu1 %v4762_v4, %s3666_s11  ;;  %772 = vst.msk [vmem:[#allocation2 + $0x18] sm:$0xff] %vm768_vm3, %v583_v14  ;;  %v579_v4 = vpop.permute.xlu0 %578  ;;  %7204 = vst [vmem:[#allocation109_spill] sm:$0xff] %v4798_v62 }
  0x7f   :  { %770 = vst.msk [vmem:[#allocation2 + $0x8] sm:$0xff] %vm768_vm3, %v579_v4  ;;  %v847_v14 = vrot.slane %v7205_v32, 4 }
  0x80   :  { %692 = vrot.lane.b32.xlu0 %v4769_v38, %s3666_s11 }
  0x81   :  { %v587_v15 = vpop.permute.xlu1 %586 }
  0x82   :  { %698 = vrot.lane.b32.xlu1 %v4779_v5, %s3666_s11  ;;  %774 = vst.msk [vmem:[#allocation2 + $0x28] sm:$0xff] %vm768_vm3, %v587_v15  ;;  %v585_v61 = vpop.permute.xlu0 %584  ;;  %v845_v15 = vrot.slane %v3751_v20, 4 }
  0x83   :  { %773 = vst.msk [vmem:[#allocation2 + $0x20] sm:$0xff] %vm768_vm3, %v585_v61  ;;  %v844_v61 = vrot.slane %v3765_v26, 4 }
  0x84   :  { %696 = vrot.lane.b32.xlu0 %v4785_v63, %s3666_s11  ;;  %v7217_v63 = vld [vmem:[#allocation5_spill] sm:$0xff] }
  0x85   :  { %v591_v4 = vpop.permute.xlu1 %590 }
  0x86   :  { %702 = vrot.lane.b32.xlu1 %v4795_v44, %s3666_s11  ;;  %776 = vst.msk [vmem:[#allocation2 + $0x38] sm:$0xff] %vm768_vm3, %v591_v4  ;;  %v589_v31 = vpop.permute.xlu0 %588 }
  0x87   :  { %775 = vst.msk [vmem:[#allocation2 + $0x30] sm:$0xff] %vm768_vm3, %v589_v31 }
  0x88   :  { %700 = vrot.lane.b32.xlu0 %v4798_v62, %s3666_s11  ;;  %s3668_s11 = smov 24  }
  0x89   :  { %v595_v10 = vpop.permute.xlu1 %594 }
  0x8a   :  { %996 = vrot.lane.b32.xlu1 %v4486_v48, %s3667_s22  ;;  %778 = vst.msk [vmem:[#allocation2 + $0x48] sm:$0xff] %vm768_vm3, %v595_v10  ;;  %v593_v4 = vpop.permute.xlu0 %592  ;;  %v4823_v48 = vsel %vm833_vm2, %v845_v15, %v847_v14  ;;  %v4829_v10 = vsel %vm833_vm2, %v844_v61, %v845_v15  ;;  %v7210_v15 = vmax.f32 %v3804_v40, 0.0 }
  0x8b   :  { %777 = vst.msk [vmem:[#allocation2 + $0x40] sm:$0xff] %vm768_vm3, %v593_v4  ;;  %7206 = vst [vmem:[#allocation110_spill] sm:$0xff] %v4823_v48  ;;  %v849_v4 = vrot.slane %v3799_v39, 4 }
  0x8c   :  { %994 = vrot.lane.b32.xlu0 %v4497_v55, %s3667_s22  ;;  %v7207_v55 = vmax.f32 %v3770_v27, 0.0  ;;  %7208 = vst [vmem:[#allocation111_spill] sm:$0xff] %v4829_v10  ;;  %v857_v14 = vrot.slane %v7210_v15, 4 }
  0x8d   :  { %v599_v32 = vpop.permute.xlu1 %598 }
  0x8e   :  { %1000 = vrot.lane.b32.xlu1 %v4500_v19, %s3667_s22  ;;  %v852_v31 = vrot.slane %v7207_v55, 4  ;;  %780 = vst.msk [vmem:[#allocation2 + $0x58] sm:$0xff] %vm768_vm3, %v599_v32  ;;  %v597_v19 = vpop.permute.xlu0 %596  ;;  %v4845_v55 = vsel %vm833_vm2, %v849_v4, %v850_v17  ;;  %v854_v32 = vrot.slane %v3811_v43, 4 }
  0x8f   :  { %779 = vst.msk [vmem:[#allocation2 + $0x50] sm:$0xff] %vm768_vm3, %v597_v19  ;;  %7211 = vst [vmem:[#allocation113_spill] sm:$0xff] %v4845_v55 }
  0x90   :  { %998 = vrot.lane.b32.xlu0 %v4503_v2, %s3667_s22  ;;  %v4839_v27 = vsel %vm833_vm2, %v850_v17, %v852_v31  ;;  %v855_v2 = vrot.slane %v3806_v41, 4  ;;  %v7213_v31 = vld [vmem:[#allocation3_spill] sm:$0xff] }
  0x91   :  { %7209 = vst [vmem:[#allocation112_spill] sm:$0xff] %v4839_v27  ;;  %v603_v61 = vpop.permute.xlu1 %602  ;;  %v860_v15 = vrot.slane %v7213_v31, 4  ;;  %v7214_v17 = vld [vmem:[#allocation7_spill] sm:$0xff] }
  0x92   :  { %1004 = vrot.lane.b32.xlu1 %v4823_v48, %s3667_s22  ;;  %782 = vst.msk [vmem:[#allocation2 + $0x68] sm:$0xff] %vm768_vm3, %v603_v61  ;;  %v601_v19 = vpop.permute.xlu0 %600  ;;  %v4855_v40 = vsel %vm833_vm2, %v855_v2, %v857_v14  ;;  %v7215_v4 = vmax.f32 %v7214_v17, 0.0  ;;  %v4861_v61 = vsel %vm833_vm2, %v854_v32, %v855_v2  ;;  %v7219_v17 = vld [vmem:[#allocation8_spill] sm:$0xff]  ;;  %v7220_v2 = vld [vmem:[#allocation14_spill] sm:$0xff] }
  0x93   :  { %781 = vst.msk [vmem:[#allocation2 + $0x60] sm:$0xff] %vm768_vm3, %v601_v19  ;;  %7212 = vst [vmem:[#allocation114_spill] sm:$0xff] %v4855_v40  ;;  %v859_v19 = vrot.slane %v7217_v63, 4  ;;  %v7221_v32 = vmax.f32 %v7220_v2, 0.0  ;;  %v7225_v2 = vld [vmem:[#allocation10_spill] sm:$0xff] }
  0x94   :  { %1002 = vrot.lane.b32.xlu0 %v4829_v10, %s3667_s22  ;;  %v862_v62 = vrot.slane %v7215_v4, 4  ;;  %7216 = vst [vmem:[#allocation3_spill] sm:$0xff] %v4861_v61  ;;  %v865_v4 = vrot.slane %v7219_v17, 4  ;;  %v7229_v10 = vld [vmem:[#allocation12_spill] sm:$0xff] }
  0x95   :  { %v607_v44 = vpop.permute.xlu1 %606  ;;  %v867_v38 = vrot.slane %v7221_v32, 4  ;;  %v870_v32 = vrot.slane %v7225_v2, 4 }
  0x96   :  { %1008 = vrot.lane.b32.xlu1 %v4839_v27, %s3667_s22  ;;  %784 = vst.msk [vmem:[#allocation2 + $0x78] sm:$0xff] %vm768_vm3, %v607_v44  ;;  %v605_v5 = vpop.permute.xlu0 %604  ;;  %v4871_v14 = vsel %vm833_vm2, %v860_v15, %v862_v62  ;;  %v4877_v44 = vsel %vm833_vm2, %v859_v19, %v860_v15  ;;  %v7223_v27 = vld [vmem:[#allocation9_spill] sm:$0xff]  ;;  %v7226_v15 = vld [vmem:[#allocation19_spill] sm:$0xff] }
  0x97   :  { %783 = vst.msk [vmem:[#allocation2 + $0x70] sm:$0xff] %vm768_vm3, %v605_v5  ;;  %7218 = vst [vmem:[#allocation7_spill] sm:$0xff] %v4871_v14  ;;  %v864_v5 = vrot.slane %v7223_v27, 4  ;;  %v4887_v62 = vsel %vm833_vm2, %v865_v4, %v867_v38  ;;  %v7227_v19 = vmax.f32 %v7226_v15, 0.0  ;;  %v7231_v15 = vld [vmem:[#allocation15_spill] sm:$0xff] }
  0x98   :  { %1006 = vrot.lane.b32.xlu0 %v4845_v55, %s3667_s22  ;;  %7222 = vst [vmem:[#allocation5_spill] sm:$0xff] %v4877_v44  ;;  %7224 = vst [vmem:[#allocation8_spill] sm:$0xff] %v4887_v62 }
  0x99   :  { %v611_v55 = vpop.permute.xlu1 %610 }
  0x9a   :  { %1012 = vrot.lane.b32.xlu1 %v4855_v40, %s3667_s22  ;;  %786 = vst.msk [vmem:[#allocation2 + $0x88] sm:$0xff] %vm768_vm3, %v611_v55  ;;  %v609_v6 = vpop.permute.xlu0 %608  ;;  %v4893_v55 = vsel %vm833_vm2, %v864_v5, %v865_v4  ;;  %v7232_v4 = vld [vmem:[#allocation28_spill] sm:$0xff] }
  0x9b   :  { %785 = vst.msk [vmem:[#allocation2 + $0x80] sm:$0xff] %vm768_vm3, %v609_v6  ;;  %7228 = vst [vmem:[#allocation14_spill] sm:$0xff] %v4893_v55  ;;  %v869_v6 = vrot.slane %v7229_v10, 4  ;;  %v7233_v5 = vmax.f32 %v7232_v4, 0.0  ;;  %v7235_v10 = vld [vmem:[#allocation16_spill] sm:$0xff]  ;;  %v7237_v4 = vld [vmem:[#allocation17_spill] sm:$0xff] }
  0x9c   :  { %1010 = vrot.lane.b32.xlu0 %v4861_v61, %s3667_s22  ;;  %v872_v61 = vrot.slane %v7227_v19, 4  ;;  %v875_v19 = vrot.slane %v7231_v15, 4  ;;  %v7241_v15 = vld [vmem:[#allocation20_spill] sm:$0xff] }
  0x9e   :  { %1016 = vrot.lane.b32.xlu1 %v4871_v14, %s3667_s22  ;;  %v615_v40 = vpop.permute.xlu1 %614  ;;  %v613_v14 = vpop.permute.xlu0 %612  ;;  %v4903_v38 = vsel %vm833_vm2, %v870_v32, %v872_v61 }
  0x9f   :  { %788 = vst.msk [vmem:[#allocation2 + $0x98] sm:$0xff] %vm768_vm3, %v615_v40  ;;  %787 = vst.msk [vmem:[#allocation2 + $0x90] sm:$0xff] %vm768_vm3, %v613_v14  ;;  %v4909_v40 = vsel %vm833_vm2, %v869_v6, %v870_v32  ;;  %v874_v14 = vrot.slane %v7235_v10, 4  ;;  %v7238_v32 = vld [vmem:[#allocation35_spill] sm:$0xff] }
  0xa0   :  { %1014 = vrot.lane.b32.xlu0 %v4877_v44, %s3667_s22  ;;  %7230 = vst [vmem:[#allocation9_spill] sm:$0xff] %v4903_v38  ;;  %v877_v44 = vrot.slane %v7233_v5, 4  ;;  %7234 = vst [vmem:[#allocation19_spill] sm:$0xff] %v4909_v40  ;;  %v880_v5 = vrot.slane %v7237_v4, 4  ;;  %v7239_v6 = vmax.f32 %v7238_v32, 0.0  ;;  %v7243_v32 = vld [vmem:[#allocation22_spill] sm:$0xff] }
  0xa1   :  { %v7247_v4 = vld [vmem:[#allocation23_spill] sm:$0xff] }
  0xa2   :  { %1020 = vrot.lane.b32.xlu1 %v4887_v62, %s3667_s22  ;;  %v619_v48 = vpop.permute.xlu1 %618  ;;  %v617_v62 = vpop.permute.xlu0 %616  ;;  %v4919_v61 = vsel %vm833_vm2, %v875_v19, %v877_v44 }
  0xa3   :  { %790 = vst.msk [vmem:[#allocation2 + $0xa8] sm:$0xff] %vm768_vm3, %v619_v48  ;;  %789 = vst.msk [vmem:[#allocation2 + $0xa0] sm:$0xff] %vm768_vm3, %v617_v62  ;;  %v4925_v48 = vsel %vm833_vm2, %v874_v14, %v875_v19  ;;  %v879_v62 = vrot.slane %v7241_v15, 4  ;;  %v7244_v19 = vld [vmem:[#allocation39_spill] sm:$0xff] }
  0xa4   :  { %1018 = vrot.lane.b32.xlu0 %v4893_v55, %s3667_s22  ;;  %7236 = vst [vmem:[#allocation28_spill] sm:$0xff] %v4919_v61  ;;  %v882_v55 = vrot.slane %v7239_v6, 4  ;;  %7240 = vst [vmem:[#allocation35_spill] sm:$0xff] %v4925_v48  ;;  %v885_v6 = vrot.slane %v7243_v32, 4  ;;  %v7245_v14 = vmax.f32 %v7244_v19, 0.0  ;;  %v7249_v19 = vld [vmem:[#allocation24_spill] sm:$0xff] }
  0xa5   :  { %v7253_v32 = vld [vmem:[#allocation26_spill] sm:$0xff] }
  0xa6   :  { %1024 = vrot.lane.b32.xlu1 %v4903_v38, %s3667_s22  ;;  %v623_v10 = vpop.permute.xlu1 %622  ;;  %v621_v38 = vpop.permute.xlu0 %620  ;;  %v4935_v44 = vsel %vm833_vm2, %v880_v5, %v882_v55 }
  0xa7   :  { %792 = vst.msk [vmem:[#allocation2 + $0xb8] sm:$0xff] %vm768_vm3, %v623_v10  ;;  %791 = vst.msk [vmem:[#allocation2 + $0xb0] sm:$0xff] %vm768_vm3, %v621_v38  ;;  %v4941_v10 = vsel %vm833_vm2, %v879_v62, %v880_v5  ;;  %v884_v38 = vrot.slane %v7247_v4, 4  ;;  %v7250_v5 = vld [vmem:[#allocation45_spill] sm:$0xff] }
  0xa8   :  { %1022 = vrot.lane.b32.xlu0 %v4909_v40, %s3667_s22  ;;  %7242 = vst [vmem:[#allocation115_spill] sm:$0xff] %v4935_v44  ;;  %v887_v40 = vrot.slane %v7245_v14, 4  ;;  %7246 = vst [vmem:[#allocation39_spill] sm:$0xff] %v4941_v10  ;;  %v890_v14 = vrot.slane %v7249_v19, 4  ;;  %v7251_v62 = vmax.f32 %v7250_v5, 0.0  ;;  %v7255_v5 = vld [vmem:[#allocation29_spill] sm:$0xff] }
  0xa9   :  { %v7259_v19 = vld [vmem:[#allocation30_spill] sm:$0xff] }
  0xaa   :  { %1028 = vrot.lane.b32.xlu1 %v4919_v61, %s3667_s22  ;;  %v627_v15 = vpop.permute.xlu1 %626  ;;  %v625_v61 = vpop.permute.xlu0 %624  ;;  %v4951_v55 = vsel %vm833_vm2, %v885_v6, %v887_v40 }
  0xab   :  { %794 = vst.msk [vmem:[#allocation2 + $0xc8] sm:$0xff] %vm768_vm3, %v627_v15  ;;  %793 = vst.msk [vmem:[#allocation2 + $0xc0] sm:$0xff] %vm768_vm3, %v625_v61  ;;  %v4957_v15 = vsel %vm833_vm2, %v884_v38, %v885_v6  ;;  %v889_v61 = vrot.slane %v7253_v32, 4  ;;  %v7256_v6 = vld [vmem:[#allocation48_spill] sm:$0xff] }
  0xac   :  { %1026 = vrot.lane.b32.xlu0 %v4925_v48, %s3667_s22  ;;  %7248 = vst [vmem:[#allocation116_spill] sm:$0xff] %v4951_v55  ;;  %v892_v48 = vrot.slane %v7251_v62, 4  ;;  %7252 = vst [vmem:[#allocation45_spill] sm:$0xff] %v4957_v15  ;;  %v895_v62 = vrot.slane %v7255_v5, 4  ;;  %v7257_v38 = vmax.f32 %v7256_v6, 0.0  ;;  %v7261_v6 = vld [vmem:[#allocation31_spill] sm:$0xff] }
  0xad   :  { %v7265_v5 = vld [vmem:[#allocation33_spill] sm:$0xff] }
  0xae   :  { %1032 = vrot.lane.b32.xlu1 %v4935_v44, %s3667_s22  ;;  %v631_v4 = vpop.permute.xlu1 %630  ;;  %v629_v44 = vpop.permute.xlu0 %628  ;;  %v4967_v40 = vsel %vm833_vm2, %v890_v14, %v892_v48 }
  0xaf   :  { %796 = vst.msk [vmem:[#allocation2 + $0xd8] sm:$0xff] %vm768_vm3, %v631_v4  ;;  %795 = vst.msk [vmem:[#allocation2 + $0xd0] sm:$0xff] %vm768_vm3, %v629_v44  ;;  %v4973_v4 = vsel %vm833_vm2, %v889_v61, %v890_v14  ;;  %v894_v44 = vrot.slane %v7259_v19, 4  ;;  %v7262_v14 = vld [vmem:[#allocation51_spill] sm:$0xff] }
  0xb0   :  { %1030 = vrot.lane.b32.xlu0 %v4941_v10, %s3667_s22  ;;  %7254 = vst [vmem:[#allocation117_spill] sm:$0xff] %v4967_v40  ;;  %v897_v10 = vrot.slane %v7257_v38, 4  ;;  %7258 = vst [vmem:[#allocation48_spill] sm:$0xff] %v4973_v4  ;;  %v900_v38 = vrot.slane %v7261_v6, 4  ;;  %v7263_v61 = vmax.f32 %v7262_v14, 0.0  ;;  %v7267_v14 = vld [vmem:[#allocation36_spill] sm:$0xff] }
  0xb1   :  { %v7271_v6 = vld [vmem:[#allocation37_spill] sm:$0xff] }
  0xb2   :  { %1036 = vrot.lane.b32.xlu1 %v4951_v55, %s3667_s22  ;;  %v4983_v48 = vsel %vm833_vm2, %v895_v62, %v897_v10 }
  0xb3   :  { %7260 = vst [vmem:[#allocation118_spill] sm:$0xff] %v4983_v48 }
  0xb4   :  { %1034 = vrot.lane.b32.xlu0 %v4957_v15, %s3667_s22  ;;  %v635_v32 = vpop.permute.xlu1 %634  ;;  %v633_v55 = vpop.permute.xlu0 %632  ;;  %v902_v15 = vrot.slane %v7263_v61, 4  ;;  %v905_v61 = vrot.slane %v7267_v14, 4  ;;  %v7277_v14 = vld [vmem:[#allocation41_spill] sm:$0xff] }
  0xb5   :  { %798 = vst.msk [vmem:[#allocation2 + $0xe8] sm:$0xff] %vm768_vm3, %v635_v32  ;;  %797 = vst.msk [vmem:[#allocation2 + $0xe0] sm:$0xff] %vm768_vm3, %v633_v55  ;;  %v4989_v32 = vsel %vm833_vm2, %v894_v44, %v895_v62  ;;  %v899_v55 = vrot.slane %v7265_v5, 4  ;;  %v7268_v62 = vld [vmem:[#allocation58_spill] sm:$0xff] }
  0xb6   :  { %1040 = vrot.lane.b32.xlu1 %v4967_v40, %s3667_s22  ;;  %7264 = vst [vmem:[#allocation51_spill] sm:$0xff] %v4989_v32  ;;  %v4999_v10 = vsel %vm833_vm2, %v900_v38, %v902_v15  ;;  %v7269_v44 = vmax.f32 %v7268_v62, 0.0  ;;  %v7273_v62 = vld [vmem:[#allocation40_spill] sm:$0xff] }
  0xb7   :  { %7266 = vst [vmem:[#allocation119_spill] sm:$0xff] %v4999_v10 }
  0xb8   :  { %1038 = vrot.lane.b32.xlu0 %v4973_v4, %s3667_s22  ;;  %v639_v19 = vpop.permute.xlu1 %638  ;;  %v907_v4 = vrot.slane %v7269_v44, 4  ;;  %v910_v44 = vrot.slane %v7273_v62, 4 }
  0xb9   :  { %800 = vst.msk [vmem:[#allocation2 + $0xf8] sm:$0xff] %vm768_vm3, %v639_v19  ;;  %v5005_v19 = vsel %vm833_vm2, %v899_v55, %v900_v38  ;;  %v7274_v38 = vld [vmem:[#allocation65_spill] sm:$0xff] }
  0xba   :  { %v637_v40 = vpop.permute.xlu0 %636  ;;  %1044 = vrot.lane.b32.xlu1 %v4983_v48, %s3667_s22  ;;  %7270 = vst [vmem:[#allocation58_spill] sm:$0xff] %v5005_v19  ;;  %v5015_v15 = vsel %vm833_vm2, %v905_v61, %v907_v4  ;;  %v7275_v55 = vmax.f32 %v7274_v38, 0.0 }
  0xbb   :  { %799 = vst.msk [vmem:[#allocation2 + $0xf0] sm:$0xff] %vm768_vm3, %v637_v40  ;;  %v904_v40 = vrot.slane %v7271_v6, 4  ;;  %7272 = vst [vmem:[#allocation120_spill] sm:$0xff] %v5015_v15 }
  0xbc   :  { %1042 = vrot.lane.b32.xlu0 %v4989_v32, %s3667_s22  ;;  %v643_v5 = vpop.permute.xlu1 %642  ;;  %v912_v32 = vrot.slane %v7275_v55, 4 }
  0xbd   :  { %802 = vst.msk [vmem:[#allocation2 + $0x108] sm:$0xff] %vm768_vm3, %v643_v5  ;;  %v5021_v5 = vsel %vm833_vm2, %v904_v40, %v905_v61 }
  0xbe   :  { %v641_v48 = vpop.permute.xlu0 %640  ;;  %1048 = vrot.lane.b32.xlu1 %v4999_v10, %s3667_s22  ;;  %7276 = vst [vmem:[#allocation65_spill] sm:$0xff] %v5021_v5  ;;  %v5031_v4 = vsel %vm833_vm2, %v910_v44, %v912_v32 }
  0xbf   :  { %801 = vst.msk [vmem:[#allocation2 + $0x100] sm:$0xff] %vm768_vm3, %v641_v48  ;;  %v909_v48 = vrot.slane %v7277_v14, 4  ;;  %7278 = vst [vmem:[#allocation121_spill] sm:$0xff] %v5031_v4 }
  0xc0   :  { %1046 = vrot.lane.b32.xlu0 %v5005_v19, %s3667_s22  ;;  %v647_v6 = vpop.permute.xlu1 %646 }
  0xc1   :  { %804 = vst.msk [vmem:[#allocation2 + $0x118] sm:$0xff] %vm768_vm3, %v647_v6  ;;  %v5034_v61 = vsel %vm833_vm2, %v909_v48, %v910_v44  ;;  %v7280_v44 = vmax.f32 %v4463_v18, 0.0  ;;  %v930_v18 = vrot.slane %v4157_v53, 4 }
  0xc2   :  { %v645_v10 = vpop.permute.xlu0 %644  ;;  %1052 = vrot.lane.b32.xlu1 %v5015_v15, %s3667_s22  ;;  %7279 = vst [vmem:[#allocation122_spill] sm:$0xff] %v5034_v61 }
  0xc3   :  { %803 = vst.msk [vmem:[#allocation2 + $0x110] sm:$0xff] %vm768_vm3, %v645_v10  ;;  %v925_v10 = vrot.slane %v4138_v0, 4  ;;  %v927_v55 = vrot.slane %v7280_v44, 4 }
  0xc4   :  { %1050 = vrot.lane.b32.xlu0 %v5021_v5, %s3667_s22  ;;  %v651_v38 = vpop.permute.xlu1 %650 }
  0xc5   :  { %806 = vst.msk [vmem:[#allocation2 + $0x128] sm:$0xff] %vm768_vm3, %v651_v38  ;;  %v924_v38 = vrot.slane %v4145_v11, 4 }
  0xc6   :  { %v649_v40 = vpop.permute.xlu0 %648  ;;  %1056 = vrot.lane.b32.xlu1 %v5031_v4, %s3667_s22 }
  0xc7   :  { %805 = vst.msk [vmem:[#allocation2 + $0x120] sm:$0xff] %vm768_vm3, %v649_v40  ;;  %v5065_v44 = vsel %vm833_vm2, %v924_v38, %v925_v10 }
  0xc8   :  { %1054 = vrot.lane.b32.xlu0 %v5034_v61, %s3667_s22  ;;  %v655_v6 = vpop.permute.xlu1 %654 }
  0xc9   :  { %808 = vst.msk [vmem:[#allocation2 + $0x138] sm:$0xff] %vm768_vm3, %v655_v6 }
  0xca   :  { %v653_v32 = vpop.permute.xlu0 %652  ;;  %1060 = vrot.lane.b32.xlu1 %v4594_v29, %s3667_s22  ;;  %v5059_v29 = vsel %vm833_vm2, %v925_v10, %v927_v55  ;;  %v7283_v10 = vmax.f32 %v4517_v51, 0.0 }
  0xcb   :  { %807 = vst.msk [vmem:[#allocation2 + $0x130] sm:$0xff] %vm768_vm3, %v653_v32 }
  0xcc   :  { %1058 = vrot.lane.b32.xlu0 %v4609_v59, %s3667_s22  ;;  %v659_v48 = vpop.permute.xlu1 %658  ;;  %v7281_v59 = vmax.f32 %v4494_v7, 0.0  ;;  %v937_v55 = vrot.slane %v7283_v10, 4 }
  0xcd   :  { %810 = vst.msk [vmem:[#allocation2 + $0x148] sm:$0xff] %vm768_vm3, %v659_v48  ;;  %v929_v48 = vrot.slane %v4170_v37, 4 }
  0xce   :  { %v657_v40 = vpop.permute.xlu0 %656  ;;  %1064 = vrot.lane.b32.xlu1 %v4612_v54, %s3667_s22  ;;  %v932_v6 = vrot.slane %v7281_v59, 4  ;;  %v7285_v59 = vld [vmem:[#allocation49_spill] sm:$0xff] }
  0xcf   :  { %809 = vst.msk [vmem:[#allocation2 + $0x140] sm:$0xff] %vm768_vm3, %v657_v40  ;;  %v5081_v40 = vsel %vm833_vm2, %v929_v48, %v930_v18 }
  0xd0   :  { %1062 = vrot.lane.b32.xlu0 %v4615_v58, %s3667_s22  ;;  %v663_v32 = vpop.permute.xlu1 %662  ;;  %v5075_v7 = vsel %vm833_vm2, %v930_v18, %v932_v6  ;;  %v935_v58 = vrot.slane %v4186_v36, 4  ;;  %7284 = vst [vmem:[#allocation124_spill] sm:$0xff] %v5081_v40  ;;  %v7286_v6 = vld [vmem:[#allocation52_spill] sm:$0xff]  ;;  %v7287_v18 = vld [vmem:[#allocation82_spill] sm:$0xff] }
  0xd1   :  { %812 = vst.msk [vmem:[#allocation2 + $0x158] sm:$0xff] %vm768_vm3, %v663_v32  ;;  %7282 = vst [vmem:[#allocation123_spill] sm:$0xff] %v5075_v7  ;;  %v934_v32 = vrot.slane %v7285_v59, 4  ;;  %v940_v10 = vrot.slane %v7286_v6, 4  ;;  %v7288_v48 = vmax.f32 %v7287_v18, 0.0  ;;  %v945_v18 = vrot.slane %v4234_v47, 4 }
  0xd2   :  { %v661_v54 = vpop.permute.xlu0 %660  ;;  %1068 = vrot.lane.b32.xlu1 %v5059_v29, %s3667_s22  ;;  %v5091_v51 = vsel %vm833_vm2, %v935_v58, %v937_v55 }
  0xd3   :  { %811 = vst.msk [vmem:[#allocation2 + $0x150] sm:$0xff] %vm768_vm3, %v661_v54  ;;  %v942_v61 = vrot.slane %v7288_v48, 4 }
  0xd4   :  { %1066 = vrot.lane.b32.xlu0 %v5065_v44, %s3667_s22  ;;  %v667_v38 = vpop.permute.xlu1 %666 }
  0xd5   :  { %814 = vst.msk [vmem:[#allocation2 + $0x168] sm:$0xff] %vm768_vm3, %v667_v38  ;;  %v5097_v38 = vsel %vm833_vm2, %v934_v32, %v935_v58  ;;  %v5107_v55 = vsel %vm833_vm2, %v940_v10, %v942_v61  ;;  %v7290_v58 = vmax.f32 %v4551_v13, 0.0  ;;  %v950_v61 = vrot.slane %v4251_v9, 4 }
  0xd6   :  { %v665_v54 = vpop.permute.xlu0 %664  ;;  %1072 = vrot.lane.b32.xlu1 %v5075_v7, %s3667_s22  ;;  %7289 = vst [vmem:[#allocation49_spill] sm:$0xff] %v5107_v55 }
  0xd7   :  { %813 = vst.msk [vmem:[#allocation2 + $0x160] sm:$0xff] %vm768_vm3, %v665_v54  ;;  %v939_v54 = vrot.slane %v4223_v23, 4  ;;  %v947_v32 = vrot.slane %v7290_v58, 4 }
  0xd8   :  { %1070 = vrot.lane.b32.xlu0 %v5081_v40, %s3667_s22  ;;  %v671_v4 = vpop.permute.xlu1 %670  ;;  %v7311_v40 = vld [vmem:[#allocation74_spill] sm:$0xff] }
  0xd9   :  { %816 = vst.msk [vmem:[#allocation2 + $0x178] sm:$0xff] %vm768_vm3, %v671_v4  ;;  %v5113_v4 = vsel %vm833_vm2, %v939_v54, %v940_v10  ;;  %v5123_v13 = vsel %vm833_vm2, %v945_v18, %v947_v32  ;;  %v7293_v10 = vmax.f32 %v4571_v35, 0.0  ;;  %v955_v32 = vrot.slane %v4282_v21, 4 }
  0xda   :  { %v669_v5 = vpop.permute.xlu0 %668  ;;  %1076 = vrot.lane.b32.xlu1 %v5091_v51, %s3667_s22  ;;  %7291 = vst [vmem:[#allocation52_spill] sm:$0xff] %v5113_v4  ;;  %7292 = vst [vmem:[#allocation82_spill] sm:$0xff] %v5123_v13 }
  0xdb   :  { %815 = vst.msk [vmem:[#allocation2 + $0x170] sm:$0xff] %vm768_vm3, %v669_v5  ;;  %v944_v5 = vrot.slane %v4241_v45, 4  ;;  %v952_v54 = vrot.slane %v7293_v10, 4 }
  0xdc   :  { %1074 = vrot.lane.b32.xlu0 %v5097_v38, %s3667_s22  ;;  %v675_v48 = vpop.permute.xlu1 %674 }
  0xdd   :  { %818 = vst.msk [vmem:[#allocation2 + $0x188] sm:$0xff] %vm768_vm3, %v675_v48  ;;  %v5129_v48 = vsel %vm833_vm2, %v944_v5, %v945_v18  ;;  %v5139_v35 = vsel %vm833_vm2, %v950_v61, %v952_v54  ;;  %v7296_v18 = vmax.f32 %v4606_v24, 0.0  ;;  %v960_v54 = vrot.slane %v4301_v12, 4 }
  0xde   :  { %v673_v15 = vpop.permute.xlu0 %672  ;;  %1080 = vrot.lane.b32.xlu1 %v5107_v55, %s3667_s22  ;;  %7294 = vst [vmem:[#allocation125_spill] sm:$0xff] %v5129_v48  ;;  %7295 = vst [vmem:[#allocation126_spill] sm:$0xff] %v5139_v35 }
  0xdf   :  { %817 = vst.msk [vmem:[#allocation2 + $0x180] sm:$0xff] %vm768_vm3, %v673_v15  ;;  %v949_v15 = vrot.slane %v4266_v34, 4  ;;  %v957_v5 = vrot.slane %v7296_v18, 4 }
  0xe0   :  { %1078 = vrot.lane.b32.xlu0 %v5113_v4, %s3667_s22  ;;  %v679_v58 = vpop.permute.xlu1 %678 }
  0xe1   :  { %820 = vst.msk [vmem:[#allocation2 + $0x198] sm:$0xff] %vm768_vm3, %v679_v58  ;;  %v5145_v58 = vsel %vm833_vm2, %v949_v15, %v950_v61  ;;  %v5155_v24 = vsel %vm833_vm2, %v955_v32, %v957_v5  ;;  %v7299_v61 = vmax.f32 %v4635_v22, 0.0  ;;  %v965_v5 = vrot.slane %v4330_v42, 4 }
  0xe2   :  { %v677_v55 = vpop.permute.xlu0 %676  ;;  %1084 = vrot.lane.b32.xlu1 %v5123_v13, %s3667_s22  ;;  %7297 = vst [vmem:[#allocation127_spill] sm:$0xff] %v5145_v58  ;;  %7298 = vst [vmem:[#allocation128_spill] sm:$0xff] %v5155_v24 }
  0xe3   :  { %819 = vst.msk [vmem:[#allocation2 + $0x190] sm:$0xff] %vm768_vm3, %v677_v55  ;;  %v954_v55 = vrot.slane %v4289_v30, 4  ;;  %v962_v15 = vrot.slane %v7299_v61, 4 }
  0xe4   :  { %1082 = vrot.lane.b32.xlu0 %v5129_v48, %s3667_s22  ;;  %v683_v10 = vpop.permute.xlu1 %682 }
  0xe5   :  { %822 = vst.msk [vmem:[#allocation2 + $0x1a8] sm:$0xff] %vm768_vm3, %v683_v10  ;;  %v5161_v10 = vsel %vm833_vm2, %v954_v55, %v955_v32  ;;  %v5171_v22 = vsel %vm833_vm2, %v960_v54, %v962_v15  ;;  %v7302_v32 = vmax.f32 %v4655_v60, 0.0  ;;  %v970_v15 = vrot.slane %v4354_v52, 4 }
  0xe6   :  { %v681_v13 = vpop.permute.xlu0 %680  ;;  %1088 = vrot.lane.b32.xlu1 %v5139_v35, %s3667_s22  ;;  %7300 = vst [vmem:[#allocation129_spill] sm:$0xff] %v5161_v10  ;;  %7301 = vst [vmem:[#allocation130_spill] sm:$0xff] %v5171_v22 }
  0xe7   :  { %821 = vst.msk [vmem:[#allocation2 + $0x1a0] sm:$0xff] %vm768_vm3, %v681_v13  ;;  %v959_v13 = vrot.slane %v4314_v33, 4  ;;  %v967_v55 = vrot.slane %v7302_v32, 4 }
  0xe8   :  { %1086 = vrot.lane.b32.xlu0 %v5145_v58, %s3667_s22  ;;  %v687_v18 = vpop.permute.xlu1 %686  ;;  %v7304_v58 = vld [vmem:[#allocation67_spill] sm:$0xff] }
  0xe9   :  { %824 = vst.msk [vmem:[#allocation2 + $0x1b8] sm:$0xff] %vm768_vm3, %v687_v18  ;;  %v5177_v18 = vsel %vm833_vm2, %v959_v13, %v960_v54  ;;  %v5187_v60 = vsel %vm833_vm2, %v965_v5, %v967_v55  ;;  %v7305_v54 = vmax.f32 %v4675_v3, 0.0  ;;  %v975_v55 = vrot.slane %v4378_v1, 4 }
  0xea   :  { %v685_v35 = vpop.permute.xlu0 %684  ;;  %1092 = vrot.lane.b32.xlu1 %v5155_v24, %s3667_s22  ;;  %7303 = vst [vmem:[#allocation131_spill] sm:$0xff] %v5177_v18 }
  0xeb   :  { %823 = vst.msk [vmem:[#allocation2 + $0x1b0] sm:$0xff] %vm768_vm3, %v685_v35  ;;  %v964_v35 = vrot.slane %v7304_v58, 4  ;;  %v972_v13 = vrot.slane %v7305_v54, 4 }
  0xec   :  { %1090 = vrot.lane.b32.xlu0 %v5161_v10, %s3667_s22  ;;  %v691_v61 = vpop.permute.xlu1 %690  ;;  %v7306_v10 = vld [vmem:[#allocation70_spill] sm:$0xff] }
  0xed   :  { %826 = vst.msk [vmem:[#allocation2 + $0x1c8] sm:$0xff] %vm768_vm3, %v691_v61  ;;  %v5193_v61 = vsel %vm833_vm2, %v964_v35, %v965_v5  ;;  %v5203_v3 = vsel %vm833_vm2, %v970_v15, %v972_v13  ;;  %v7307_v5 = vmax.f32 %v4695_v56, 0.0  ;;  %v980_v13 = vrot.slane %v4397_v57, 4 }
  0xee   :  { %v689_v24 = vpop.permute.xlu0 %688  ;;  %1096 = vrot.lane.b32.xlu1 %v5171_v22, %s3667_s22 }
  0xef   :  { %825 = vst.msk [vmem:[#allocation2 + $0x1c0] sm:$0xff] %vm768_vm3, %v689_v24  ;;  %v969_v24 = vrot.slane %v7306_v10, 4  ;;  %v977_v35 = vrot.slane %v7307_v5, 4 }
  0xf0   :  { %1094 = vrot.lane.b32.xlu0 %v5177_v18, %s3667_s22  ;;  %v695_v32 = vpop.permute.xlu1 %694  ;;  %v7308_v18 = vld [vmem:[#allocation72_spill] sm:$0xff] }
  0xf1   :  { %828 = vst.msk [vmem:[#allocation2 + $0x1d8] sm:$0xff] %vm768_vm3, %v695_v32  ;;  %v5209_v32 = vsel %vm833_vm2, %v969_v24, %v970_v15  ;;  %v5219_v56 = vsel %vm833_vm2, %v975_v55, %v977_v35  ;;  %v7309_v15 = vld [vmem:[#allocation99_spill] sm:$0xff] }
  0xf2   :  { %v693_v22 = vpop.permute.xlu0 %692  ;;  %1100 = vrot.lane.b32.xlu1 %v5187_v60, %s3667_s22  ;;  %v7310_v24 = vmax.f32 %v7309_v15, 0.0 }
  0xf3   :  { %827 = vst.msk [vmem:[#allocation2 + $0x1d0] sm:$0xff] %vm768_vm3, %v693_v22  ;;  %v974_v22 = vrot.slane %v7308_v18, 4 }
  0xf4   :  { %1098 = vrot.lane.b32.xlu0 %v5193_v61, %s3667_s22  ;;  %v699_v54 = vpop.permute.xlu1 %698  ;;  %v982_v5 = vrot.slane %v7310_v24, 4 }
  0xf5   :  { %830 = vst.msk [vmem:[#allocation2 + $0x1e8] sm:$0xff] %vm768_vm3, %v699_v54  ;;  %v5225_v54 = vsel %vm833_vm2, %v974_v22, %v975_v55  ;;  %v985_v55 = vrot.slane %v4428_v50, 4  ;;  %v7313_v22 = vmax.f32 %v4735_v8, 0.0 }
  0xf6   :  { %v697_v48 = vpop.permute.xlu0 %696  ;;  %1104 = vrot.lane.b32.xlu1 %v5203_v3, %s3667_s22  ;;  %v5235_v35 = vsel %vm833_vm2, %v980_v13, %v982_v5  ;;  %v990_v5 = vrot.slane %v4444_v46, 4 }
  0xf7   :  { %829 = vst.msk [vmem:[#allocation2 + $0x1e0] sm:$0xff] %vm768_vm3, %v697_v48  ;;  %v979_v48 = vrot.slane %v7311_v40, 4  ;;  %7312 = vst [vmem:[#allocation72_spill] sm:$0xff] %v5235_v35  ;;  %v987_v15 = vrot.slane %v7313_v22, 4 }
  0xf8   :  { %1102 = vrot.lane.b32.xlu0 %v5209_v32, %s3667_s22  ;;  %v703_v4 = vpop.permute.xlu1 %702 }
  0xf9   :  { %832 = vst.msk [vmem:[#allocation2 + $0x1f8] sm:$0xff] %vm768_vm3, %v703_v4  ;;  %v5241_v4 = vsel %vm833_vm2, %v979_v48, %v980_v13  ;;  %v5251_v8 = vsel %vm833_vm2, %v985_v55, %v987_v15  ;;  %v7314_v13 = vmax.f32 %v4755_v25, 0.0 }
  0xfa   :  { %v701_v7 = vpop.permute.xlu0 %700  ;;  %1108 = vrot.lane.b32.xlu1 %v5219_v56, %s3667_s22 }
  0xfb   :  { %831 = vst.msk [vmem:[#allocation2 + $0x1f0] sm:$0xff] %vm768_vm3, %v701_v7  ;;  %v984_v7 = vrot.slane %v4438_v16, 4  ;;  %v992_v48 = vrot.slane %v7314_v13, 4 }
  0xfc   :  { %1106 = vrot.lane.b32.xlu0 %v5225_v54, %s3667_s22  ;;  %v997_v24 = vpop.permute.xlu1 %996 }
  0xfd   :  { %1188 = vst.msk [vmem:[#allocation2 + $0x8] sm:$0xff] %vm1186_vm4, %v997_v24  ;;  %v5257_v24 = vsel %vm833_vm2, %v984_v7, %v985_v55  ;;  %v5267_v25 = vsel %vm833_vm2, %v990_v5, %v992_v48 }
  0xfe   :  { %v995_v19 = vpop.permute.xlu0 %994  ;;  %1112 = vrot.lane.b32.xlu1 %v5235_v35, %s3667_s22  ;;  %7315 = vst [vmem:[#allocation99_spill] sm:$0xff] %v5267_v25 }
  0xff   :  { %1187 = vst.msk [vmem:[#allocation2] sm:$0xff] %vm1186_vm4, %v995_v19  ;;  %v989_v19 = vrot.slane %v4454_v49, 4 }
 0x100   :  { %1110 = vrot.lane.b32.xlu0 %v5241_v4, %s3667_s22  ;;  %v1001_v22 = vpop.permute.xlu1 %1000 }
 0x101   :  { %1190 = vst.msk [vmem:[#allocation2 + $0x18] sm:$0xff] %vm1186_vm4, %v1001_v22  ;;  %v5270_v55 = vsel %vm833_vm2, %v989_v19, %v990_v5 }
 0x102   :  { %v999_v35 = vpop.permute.xlu0 %998  ;;  %1116 = vrot.lane.b32.xlu1 %v5251_v8, %s3667_s22  ;;  %7316 = vst [vmem:[#allocation74_spill] sm:$0xff] %v5270_v55 }
 0x103   :  { %1189 = vst.msk [vmem:[#allocation2 + $0x10] sm:$0xff] %vm1186_vm4, %v999_v35 }
 0x104   :  { %1114 = vrot.lane.b32.xlu0 %v5257_v24, %s3667_s22  ;;  %v1005_v15 = vpop.permute.xlu1 %1004 }
 0x105   :  { %1192 = vst.msk [vmem:[#allocation2 + $0x28] sm:$0xff] %vm1186_vm4, %v1005_v15 }
 0x106   :  { %v1003_v7 = vpop.permute.xlu0 %1002  ;;  %1120 = vrot.lane.b32.xlu1 %v5267_v25, %s3667_s22  ;;  %v66_v25 = vld [vmem:[%s6766_s0 + $0x1a0] sm:$0xff] }
 0x107   :  { %1191 = vst.msk [vmem:[#allocation2 + $0x20] sm:$0xff] %vm1186_vm4, %v1003_v7 }
 0x108   :  { %1118 = vrot.lane.b32.xlu0 %v5270_v55, %s3667_s22  ;;  %v1009_v35 = vpop.permute.xlu1 %1008 }
 0x109   :  { %1194 = vst.msk [vmem:[#allocation2 + $0x38] sm:$0xff] %vm1186_vm4, %v1009_v35  ;;  %v7317_v35 = vld [vmem:[#allocation12_spill] sm:$0xff] }
 0x10a   :  { %v1007_v13 = vpop.permute.xlu0 %1006  ;;  %1261 = vrot.lane.b32.xlu1 %v3751_v20, %s3668_s11 }
 0x10b   :  { %1193 = vst.msk [vmem:[#allocation2 + $0x30] sm:$0xff] %vm1186_vm4, %v1007_v13 }
 0x10c   :  { %1259 = vrot.lane.b32.xlu0 %v3765_v26, %s3668_s11  ;;  %v1013_v5 = vpop.permute.xlu1 %1012 }
 0x10d   :  { %1196 = vst.msk [vmem:[#allocation2 + $0x48] sm:$0xff] %vm1186_vm4, %v1013_v5 }
 0x10e   :  { %v1011_v48 = vpop.permute.xlu0 %1010  ;;  %1265 = vrot.lane.b32.xlu1 %v3772_v28, %s3668_s11 }
 0x10f   :  { %1195 = vst.msk [vmem:[#allocation2 + $0x40] sm:$0xff] %vm1186_vm4, %v1011_v48  ;;  %v7318_v48 = vld [vmem:[#allocation15_spill] sm:$0xff] }
 0x110   :  { %1263 = vrot.lane.b32.xlu0 %v3799_v39, %s3668_s11  ;;  %v1017_v22 = vpop.permute.xlu1 %1016 }
 0x111   :  { %1198 = vst.msk [vmem:[#allocation2 + $0x58] sm:$0xff] %vm1186_vm4, %v1017_v22  ;;  %v7319_v22 = vld [vmem:[#allocation16_spill] sm:$0xff] }
 0x112   :  { %v1015_v19 = vpop.permute.xlu0 %1014  ;;  %1269 = vrot.lane.b32.xlu1 %v3806_v41, %s3668_s11 }
 0x113   :  { %1197 = vst.msk [vmem:[#allocation2 + $0x50] sm:$0xff] %vm1186_vm4, %v1015_v19 }
 0x114   :  { %1267 = vrot.lane.b32.xlu0 %v3811_v43, %s3668_s11  ;;  %v1021_v20 = vpop.permute.xlu1 %1020 }
 0x115   :  { %1200 = vst.msk [vmem:[#allocation2 + $0x68] sm:$0xff] %vm1186_vm4, %v1021_v20 }
 0x116   :  { %v1019_v26 = vpop.permute.xlu0 %1018  ;;  %1273 = vrot.lane.b32.xlu1 %v7213_v31, %s3668_s11 }
 0x117   :  { %1199 = vst.msk [vmem:[#allocation2 + $0x60] sm:$0xff] %vm1186_vm4, %v1019_v26  ;;  %v7320_v26 = vld [vmem:[#allocation17_spill] sm:$0xff] }
 0x118   :  { %1271 = vrot.lane.b32.xlu0 %v7217_v63, %s3668_s11  ;;  %v1025_v28 = vpop.permute.xlu1 %1024 }
 0x119   :  { %1202 = vst.msk [vmem:[#allocation2 + $0x78] sm:$0xff] %vm1186_vm4, %v1025_v28  ;;  %v7321_v28 = vld [vmem:[#allocation20_spill] sm:$0xff] }
 0x11a   :  { %v1023_v39 = vpop.permute.xlu0 %1022  ;;  %1277 = vrot.lane.b32.xlu1 %v7219_v17, %s3668_s11 }
 0x11b   :  { %1201 = vst.msk [vmem:[#allocation2 + $0x70] sm:$0xff] %vm1186_vm4, %v1023_v39 }
 0x11c   :  { %1275 = vrot.lane.b32.xlu0 %v7223_v27, %s3668_s11  ;;  %v1029_v15 = vpop.permute.xlu1 %1028 }
 0x11d   :  { %1204 = vst.msk [vmem:[#allocation2 + $0x88] sm:$0xff] %vm1186_vm4, %v1029_v15 }
 0x11e   :  { %v1027_v7 = vpop.permute.xlu0 %1026  ;;  %1281 = vrot.lane.b32.xlu1 %v7225_v2, %s3668_s11 }
 0x11f   :  { %1203 = vst.msk [vmem:[#allocation2 + $0x80] sm:$0xff] %vm1186_vm4, %v1027_v7  ;;  %v7322_v7 = vld [vmem:[#allocation22_spill] sm:$0xff] }
 0x120   :  { %1279 = vrot.lane.b32.xlu0 %v7317_v35, %s3668_s11  ;;  %v1033_v13 = vpop.permute.xlu1 %1032 }
 0x121   :  { %1206 = vst.msk [vmem:[#allocation2 + $0x98] sm:$0xff] %vm1186_vm4, %v1033_v13  ;;  %v7323_v13 = vld [vmem:[#allocation23_spill] sm:$0xff] }
 0x122   :  { %v1031_v5 = vpop.permute.xlu0 %1030  ;;  %1285 = vrot.lane.b32.xlu1 %v7318_v48, %s3668_s11  ;;  %v62_v48 = vld [vmem:[%s6766_s0 + $0x180] sm:$0xff] }
 0x123   :  { %1205 = vst.msk [vmem:[#allocation2 + $0x90] sm:$0xff] %vm1186_vm4, %v1031_v5  ;;  %v5370_v55 = vmax.f32 %v62_v48, 0.0 }
 0x124   :  { %1283 = vrot.lane.b32.xlu0 %v7319_v22, %s3668_s11  ;;  %v1037_v19 = vpop.permute.xlu1 %1036 }
 0x125   :  { %1208 = vst.msk [vmem:[#allocation2 + $0xa8] sm:$0xff] %vm1186_vm4, %v1037_v19 }
 0x126   :  { %v1035_v20 = vpop.permute.xlu0 %1034  ;;  %1289 = vrot.lane.b32.xlu1 %v7320_v26, %s3668_s11  ;;  %v7330_v26 = vld [vmem:[#allocation36_spill] sm:$0xff] }
 0x127   :  { %1207 = vst.msk [vmem:[#allocation2 + $0xa0] sm:$0xff] %vm1186_vm4, %v1035_v20  ;;  %v7324_v20 = vld [vmem:[#allocation24_spill] sm:$0xff] }
 0x128   :  { %1287 = vrot.lane.b32.xlu0 %v7321_v28, %s3668_s11  ;;  %v1041_v39 = vpop.permute.xlu1 %1040 }
 0x129   :  { %1210 = vst.msk [vmem:[#allocation2 + $0xb8] sm:$0xff] %vm1186_vm4, %v1041_v39  ;;  %v7325_v39 = vld [vmem:[#allocation26_spill] sm:$0xff] }
 0x12a   :  { %v1039_v15 = vpop.permute.xlu0 %1038  ;;  %1293 = vrot.lane.b32.xlu1 %v7322_v7, %s3668_s11 }
 0x12b   :  { %1209 = vst.msk [vmem:[#allocation2 + $0xb0] sm:$0xff] %vm1186_vm4, %v1039_v15 }
 0x12c   :  { %1291 = vrot.lane.b32.xlu0 %v7323_v13, %s3668_s11  ;;  %v1045_v5 = vpop.permute.xlu1 %1044  ;;  %v7326_v13 = vld [vmem:[#allocation29_spill] sm:$0xff] }
 0x12d   :  { %1212 = vst.msk [vmem:[#allocation2 + $0xc8] sm:$0xff] %vm1186_vm4, %v1045_v5  ;;  %v7327_v5 = vld [vmem:[#allocation30_spill] sm:$0xff] }
 0x12e   :  { %v1043_v19 = vpop.permute.xlu0 %1042  ;;  %1297 = vrot.lane.b32.xlu1 %v7324_v20, %s3668_s11  ;;  %7333 = vst [vmem:[#allocation30_spill] sm:$0xff] %v5370_v55 }
 0x12f   :  { %1211 = vst.msk [vmem:[#allocation2 + $0xc0] sm:$0xff] %vm1186_vm4, %v1043_v19 }
 0x130   :  { %1295 = vrot.lane.b32.xlu0 %v7325_v39, %s3668_s11  ;;  %v1049_v28 = vpop.permute.xlu1 %1048  ;;  %v7328_v39 = vld [vmem:[#allocation31_spill] sm:$0xff] }
 0x131   :  { %1214 = vst.msk [vmem:[#allocation2 + $0xd8] sm:$0xff] %vm1186_vm4, %v1049_v28  ;;  %v7329_v28 = vld [vmem:[#allocation33_spill] sm:$0xff] }
 0x132   :  { %v1047_v15 = vpop.permute.xlu0 %1046  ;;  %1301 = vrot.lane.b32.xlu1 %v7326_v13, %s3668_s11 }
 0x133   :  { %1213 = vst.msk [vmem:[#allocation2 + $0xd0] sm:$0xff] %vm1186_vm4, %v1047_v15 }
 0x134   :  { %1299 = vrot.lane.b32.xlu0 %v7327_v5, %s3668_s11  ;;  %v1053_v7 = vpop.permute.xlu1 %1052 }
 0x135   :  { %1216 = vst.msk [vmem:[#allocation2 + $0xe8] sm:$0xff] %vm1186_vm4, %v1053_v7  ;;  %v7331_v7 = vld [vmem:[#allocation37_spill] sm:$0xff] }
 0x136   :  { %v1051_v19 = vpop.permute.xlu0 %1050  ;;  %1305 = vrot.lane.b32.xlu1 %v7328_v39, %s3668_s11 }
 0x137   :  { %1215 = vst.msk [vmem:[#allocation2 + $0xe0] sm:$0xff] %vm1186_vm4, %v1051_v19  ;;  %v63_v19 = vld [vmem:[%s6766_s0 + $0x188] sm:$0xff] }
 0x138   :  { %1303 = vrot.lane.b32.xlu0 %v7329_v28, %s3668_s11  ;;  %v1057_v20 = vpop.permute.xlu1 %1056 }
 0x139   :  { %1218 = vst.msk [vmem:[#allocation2 + $0xf8] sm:$0xff] %vm1186_vm4, %v1057_v20 }
 0x13a   :  { %v1055_v15 = vpop.permute.xlu0 %1054  ;;  %1309 = vrot.lane.b32.xlu1 %v7330_v26, %s3668_s11 }
 0x13b   :  { %1217 = vst.msk [vmem:[#allocation2 + $0xf0] sm:$0xff] %vm1186_vm4, %v1055_v15  ;;  %v5366_v15 = vmax.f32 %v63_v19, 0.0  ;;  %v5382_v19 = vmax.f32 %v66_v25, 0.0 }
 0x13c   :  { %1307 = vrot.lane.b32.xlu0 %v7331_v7, %s3668_s11  ;;  %v1061_v22 = vpop.permute.xlu1 %1060 }
 0x13d   :  { %1220 = vst.msk [vmem:[#allocation2 + $0x108] sm:$0xff] %vm1186_vm4, %v1061_v22  ;;  %7332 = vst [vmem:[#allocation29_spill] sm:$0xff] %v5366_v15  ;;  %v65_v22 = vld [vmem:[%s6766_s0 + $0x198] sm:$0xff] }
 0x13e   :  { %v1059_v20 = vpop.permute.xlu0 %1058  ;;  %1313 = vrot.lane.b32.xlu1 %v7273_v62, %s3668_s11  ;;  %7334 = vst [vmem:[#allocation31_spill] sm:$0xff] %v5382_v19  ;;  %v5386_v48 = vmax.f32 %v65_v22, 0.0  ;;  %v7369_v62 = vld [vmem:[#allocation79_spill] sm:$0xff] }
 0x13f   :  { %1219 = vst.msk [vmem:[#allocation2 + $0x100] sm:$0xff] %vm1186_vm4, %v1059_v20 }
 0x140   :  { %1311 = vrot.lane.b32.xlu0 %v7277_v14, %s3668_s11  ;;  %v1065_v35 = vpop.permute.xlu1 %1064  ;;  %7335 = vst [vmem:[#allocation33_spill] sm:$0xff] %v5386_v48 }
 0x141   :  { %1222 = vst.msk [vmem:[#allocation2 + $0x118] sm:$0xff] %vm1186_vm4, %v1065_v35 }
 0x142   :  { %v1063_v20 = vpop.permute.xlu0 %1062  ;;  %1317 = vrot.lane.b32.xlu1 %v5366_v15, %s3668_s11 }
 0x143   :  { %1221 = vst.msk [vmem:[#allocation2 + $0x110] sm:$0xff] %vm1186_vm4, %v1063_v20 }
 0x144   :  { %1315 = vrot.lane.b32.xlu0 %v5370_v55, %s3668_s11  ;;  %v1069_v2 = vpop.permute.xlu1 %1068 }
 0x145   :  { %1224 = vst.msk [vmem:[#allocation2 + $0x128] sm:$0xff] %vm1186_vm4, %v1069_v2 }
 0x146   :  { %v1067_v14 = vpop.permute.xlu0 %1066  ;;  %1321 = vrot.lane.b32.xlu1 %v5382_v19, %s3668_s11 }
 0x147   :  { %1223 = vst.msk [vmem:[#allocation2 + $0x120] sm:$0xff] %vm1186_vm4, %v1067_v14 }
 0x148   :  { %1319 = vrot.lane.b32.xlu0 %v5386_v48, %s3668_s11  ;;  %v1073_v35 = vpop.permute.xlu1 %1072 }
 0x149   :  { %1226 = vst.msk [vmem:[#allocation2 + $0x138] sm:$0xff] %vm1186_vm4, %v1073_v35 }
 0x14a   :  { %v1071_v25 = vpop.permute.xlu0 %1070  ;;  %1325 = vrot.lane.b32.xlu1 %v4138_v0, %s3668_s11 }
 0x14b   :  { %1225 = vst.msk [vmem:[#allocation2 + $0x130] sm:$0xff] %vm1186_vm4, %v1071_v25 }
 0x14c   :  { %1323 = vrot.lane.b32.xlu0 %v4145_v11, %s3668_s11  ;;  %v1077_v2 = vpop.permute.xlu1 %1076 }
 0x14d   :  { %1228 = vst.msk [vmem:[#allocation2 + $0x148] sm:$0xff] %vm1186_vm4, %v1077_v2 }
 0x14e   :  { %v1075_v14 = vpop.permute.xlu0 %1074  ;;  %1329 = vrot.lane.b32.xlu1 %v4157_v53, %s3668_s11 }
 0x14f   :  { %1227 = vst.msk [vmem:[#allocation2 + $0x140] sm:$0xff] %vm1186_vm4, %v1075_v14 }
 0x150   :  { %1327 = vrot.lane.b32.xlu0 %v4170_v37, %s3668_s11  ;;  %v1081_v22 = vpop.permute.xlu1 %1080 }
 0x151   :  { %1230 = vst.msk [vmem:[#allocation2 + $0x158] sm:$0xff] %vm1186_vm4, %v1081_v22 }
 0x152   :  { %v1079_v20 = vpop.permute.xlu0 %1078  ;;  %1333 = vrot.lane.b32.xlu1 %v4186_v36, %s3668_s11 }
 0x153   :  { %1229 = vst.msk [vmem:[#allocation2 + $0x150] sm:$0xff] %vm1186_vm4, %v1079_v20 }
 0x154   :  { %1331 = vrot.lane.b32.xlu0 %v7285_v59, %s3668_s11  ;;  %v1085_v11 = vpop.permute.xlu1 %1084 }
 0x155   :  { %1232 = vst.msk [vmem:[#allocation2 + $0x168] sm:$0xff] %vm1186_vm4, %v1085_v11 }
 0x156   :  { %v1083_v0 = vpop.permute.xlu0 %1082  ;;  %1337 = vrot.lane.b32.xlu1 %v7286_v6, %s3668_s11 }
 0x157   :  { %1231 = vst.msk [vmem:[#allocation2 + $0x160] sm:$0xff] %vm1186_vm4, %v1083_v0 }
 0x158   :  { %1335 = vrot.lane.b32.xlu0 %v4223_v23, %s3668_s11  ;;  %v1089_v53 = vpop.permute.xlu1 %1088 }
 0x159   :  { %1234 = vst.msk [vmem:[#allocation2 + $0x178] sm:$0xff] %vm1186_vm4, %v1089_v53 }
 0x15a   :  { %v1087_v37 = vpop.permute.xlu0 %1086  ;;  %1341 = vrot.lane.b32.xlu1 %v4234_v47, %s3668_s11 }
 0x15b   :  { %1233 = vst.msk [vmem:[#allocation2 + $0x170] sm:$0xff] %vm1186_vm4, %v1087_v37 }
 0x15c   :  { %1339 = vrot.lane.b32.xlu0 %v4241_v45, %s3668_s11  ;;  %v1093_v35 = vpop.permute.xlu1 %1092 }
 0x15d   :  { %1236 = vst.msk [vmem:[#allocation2 + $0x188] sm:$0xff] %vm1186_vm4, %v1093_v35 }
 0x15e   :  { %v1091_v25 = vpop.permute.xlu0 %1090  ;;  %1345 = vrot.lane.b32.xlu1 %v4251_v9, %s3668_s11  ;;  %v1521_v9 = vrot.slane %v5366_v15, 2 }
 0x15f   :  { %1235 = vst.msk [vmem:[#allocation2 + $0x180] sm:$0xff] %vm1186_vm4, %v1091_v25 }
 0x160   :  { %1343 = vrot.lane.b32.xlu0 %v4266_v34, %s3668_s11  ;;  %v1097_v2 = vpop.permute.xlu1 %1096  ;;  %v7367_v34 = vld [vmem:[#allocation75_spill] sm:$0xff] }
 0x161   :  { %1238 = vst.msk [vmem:[#allocation2 + $0x198] sm:$0xff] %vm1186_vm4, %v1097_v2 }
 0x162   :  { %v1095_v14 = vpop.permute.xlu0 %1094  ;;  %1349 = vrot.lane.b32.xlu1 %v4282_v21, %s3668_s11 }
 0x163   :  { %1237 = vst.msk [vmem:[#allocation2 + $0x190] sm:$0xff] %vm1186_vm4, %v1095_v14 }
 0x164   :  { %1347 = vrot.lane.b32.xlu0 %v4289_v30, %s3668_s11  ;;  %v1101_v22 = vpop.permute.xlu1 %1100  ;;  %v7354_v30 = vld [vmem:[#allocation46_spill] sm:$0xff] }
 0x165   :  { %1240 = vst.msk [vmem:[#allocation2 + $0x1a8] sm:$0xff] %vm1186_vm4, %v1101_v22 }
 0x166   :  { %v1099_v20 = vpop.permute.xlu0 %1098  ;;  %1353 = vrot.lane.b32.xlu1 %v4301_v12, %s3668_s11 }
 0x167   :  { %1239 = vst.msk [vmem:[#allocation2 + $0x1a0] sm:$0xff] %vm1186_vm4, %v1099_v20 }
 0x168   :  { %1351 = vrot.lane.b32.xlu0 %v4314_v33, %s3668_s11  ;;  %v1105_v11 = vpop.permute.xlu1 %1104  ;;  %v7350_v33 = vld [vmem:[#allocation38_spill] sm:$0xff] }
 0x169   :  { %1242 = vst.msk [vmem:[#allocation2 + $0x1b8] sm:$0xff] %vm1186_vm4, %v1105_v11  ;;  %v123_v11 = vld [vmem:[%s6766_s0 + $0x368] sm:$0xff] }
 0x16a   :  { %v1103_v0 = vpop.permute.xlu0 %1102  ;;  %1357 = vrot.lane.b32.xlu1 %v4330_v42, %s3668_s11 }
 0x16b   :  { %1241 = vst.msk [vmem:[#allocation2 + $0x1b0] sm:$0xff] %vm1186_vm4, %v1103_v0 }
 0x16c   :  { %1355 = vrot.lane.b32.xlu0 %v7304_v58, %s3668_s11  ;;  %v1109_v53 = vpop.permute.xlu1 %1108  ;;  %v7348_v58 = vld [vmem:[#allocation32_spill] sm:$0xff] }
 0x16d   :  { %1244 = vst.msk [vmem:[#allocation2 + $0x1c8] sm:$0xff] %vm1186_vm4, %v1109_v53  ;;  %v122_v53 = vld [vmem:[%s6766_s0 + $0x360] sm:$0xff] }
 0x16e   :  { %v1107_v37 = vpop.permute.xlu0 %1106  ;;  %1361 = vrot.lane.b32.xlu1 %v4354_v52, %s3668_s11 }
 0x16f   :  { %1243 = vst.msk [vmem:[#allocation2 + $0x1c0] sm:$0xff] %vm1186_vm4, %v1107_v37 }
 0x170   :  { %1359 = vrot.lane.b32.xlu0 %v7306_v10, %s3668_s11  ;;  %v1113_v35 = vpop.permute.xlu1 %1112  ;;  %v7342_v10 = vld [vmem:[#allocation11_spill] sm:$0xff] }
 0x171   :  { %1246 = vst.msk [vmem:[#allocation2 + $0x1d8] sm:$0xff] %vm1186_vm4, %v1113_v35  ;;  %v5482_v35 = vmax.f32 %v123_v11, 0.0 }
 0x172   :  { %v1111_v25 = vpop.permute.xlu0 %1110  ;;  %1365 = vrot.lane.b32.xlu1 %v4378_v1, %s3668_s11 }
 0x173   :  { %1245 = vst.msk [vmem:[#allocation2 + $0x1d0] sm:$0xff] %vm1186_vm4, %v1111_v25  ;;  %7336 = vst [vmem:[#allocation36_spill] sm:$0xff] %v5482_v35  ;;  %v5486_v25 = vmax.f32 %v122_v53, 0.0 }
 0x174   :  { %1363 = vrot.lane.b32.xlu0 %v7308_v18, %s3668_s11  ;;  %v1117_v2 = vpop.permute.xlu1 %1116 }
 0x175   :  { %1248 = vst.msk [vmem:[#allocation2 + $0x1e8] sm:$0xff] %vm1186_vm4, %v1117_v2  ;;  %7337 = vst [vmem:[#allocation37_spill] sm:$0xff] %v5486_v25  ;;  %v126_v2 = vld [vmem:[%s6766_s0 + $0x380] sm:$0xff] }
 0x176   :  { %v1115_v14 = vpop.permute.xlu0 %1114  ;;  %1369 = vrot.lane.b32.xlu1 %v4397_v57, %s3668_s11  ;;  %v5498_v11 = vmax.f32 %v126_v2, 0.0 }
 0x177   :  { %1247 = vst.msk [vmem:[#allocation2 + $0x1e0] sm:$0xff] %vm1186_vm4, %v1115_v14 }
 0x178   :  { %1367 = vrot.lane.b32.xlu0 %v7311_v40, %s3668_s11  ;;  %v1121_v22 = vpop.permute.xlu1 %1120  ;;  %7338 = vst [vmem:[#allocation132_spill] sm:$0xff] %v5498_v11 }
 0x179   :  { %1250 = vst.msk [vmem:[#allocation2 + $0x1f8] sm:$0xff] %vm1186_vm4, %v1121_v22  ;;  %v125_v22 = vld [vmem:[%s6766_s0 + $0x378] sm:$0xff] }
 0x17a   :  { %v1119_v20 = vpop.permute.xlu0 %1118  ;;  %1373 = vrot.lane.b32.xlu1 %v4428_v50, %s3668_s11 }
 0x17b   :  { %1249 = vst.msk [vmem:[#allocation2 + $0x1f0] sm:$0xff] %vm1186_vm4, %v1119_v20 }
 0x17c   :  { %1371 = vrot.lane.b32.xlu0 %v4438_v16, %s3668_s11  ;;  %v1262_v0 = vpop.permute.xlu1 %1261 }
 0x17d   :  { %1453 = vst.msk [vmem:[#allocation2 + $0x8] sm:$0xff] %vm1451_vm5, %v1262_v0  ;;  %v5502_v0 = vmax.f32 %v125_v22, 0.0  ;;  %v7340_v22 = vld [vmem:[#allocation4_spill] sm:$0xff] }
 0x17e   :  { %v1260_v37 = vpop.permute.xlu0 %1259  ;;  %1377 = vrot.lane.b32.xlu1 %v4444_v46, %s3668_s11 }
 0x17f   :  { %1452 = vst.msk [vmem:[#allocation2] sm:$0xff] %vm1451_vm5, %v1260_v37  ;;  %7339 = vst [vmem:[#allocation133_spill] sm:$0xff] %v5502_v0 }
 0x180   :  { %1375 = vrot.lane.b32.xlu0 %v4454_v49, %s3668_s11  ;;  %v1266_v14 = vpop.permute.xlu1 %1265 }
 0x181   :  { %1455 = vst.msk [vmem:[#allocation2 + $0x18] sm:$0xff] %vm1451_vm5, %v1266_v14 }
 0x182   :  { %v1264_v20 = vpop.permute.xlu0 %1263  ;;  %1381 = vrot.lane.b32.xlu1 %v5482_v35, %s3668_s11 }
 0x183   :  { %1454 = vst.msk [vmem:[#allocation2 + $0x10] sm:$0xff] %vm1451_vm5, %v1264_v20  ;;  %v7341_v20 = vld [vmem:[#allocation6_spill] sm:$0xff] }
 0x184   :  { %1379 = vrot.lane.b32.xlu0 %v5486_v25, %s3668_s11  ;;  %v1270_v53 = vpop.permute.xlu1 %1269  ;;  %v7356_v25 = vld [vmem:[#allocation50_spill] sm:$0xff] }
 0x185   :  { %1457 = vst.msk [vmem:[#allocation2 + $0x28] sm:$0xff] %vm1451_vm5, %v1270_v53 }
 0x186   :  { %v1268_v37 = vpop.permute.xlu0 %1267  ;;  %1385 = vrot.lane.b32.xlu1 %v5498_v11, %s3668_s11 }
 0x187   :  { %1456 = vst.msk [vmem:[#allocation2 + $0x20] sm:$0xff] %vm1451_vm5, %v1268_v37 }
 0x188   :  { %1383 = vrot.lane.b32.xlu0 %v5502_v0, %s3668_s11  ;;  %v1274_v14 = vpop.permute.xlu1 %1273  ;;  %v7352_v0 = vld [vmem:[#allocation43_spill] sm:$0xff] }
 0x189   :  { %1459 = vst.msk [vmem:[#allocation2 + $0x38] sm:$0xff] %vm1451_vm5, %v1274_v14  ;;  %v7343_v14 = vld [vmem:[#allocation13_spill] sm:$0xff] }
 0x18a   :  { %v1272_v2 = vpop.permute.xlu0 %1271  ;;  %1542 = vrot.lane.b32.xlu1 %v7340_v22, %s3669_s13  ;;  %v7344_v22 = vld [vmem:[#allocation18_spill] sm:$0xff] }
 0x18b   :  { %1458 = vst.msk [vmem:[#allocation2 + $0x30] sm:$0xff] %vm1451_vm5, %v1272_v2 }
 0x18c   :  { %1540 = vrot.lane.b32.xlu0 %v7341_v20, %s3669_s13  ;;  %v1278_v53 = vpop.permute.xlu1 %1277  ;;  %v7345_v20 = vld [vmem:[#allocation21_spill] sm:$0xff] }
 0x18d   :  { %1461 = vst.msk [vmem:[#allocation2 + $0x48] sm:$0xff] %vm1451_vm5, %v1278_v53 }
 0x18e   :  { %v1276_v37 = vpop.permute.xlu0 %1275  ;;  %1546 = vrot.lane.b32.xlu1 %v7342_v10, %s3669_s13  ;;  %v7346_v10 = vld [vmem:[#allocation25_spill] sm:$0xff] }
 0x18f   :  { %1460 = vst.msk [vmem:[#allocation2 + $0x40] sm:$0xff] %vm1451_vm5, %v1276_v37 }
 0x190   :  { %1544 = vrot.lane.b32.xlu0 %v7343_v14, %s3669_s13  ;;  %v1282_v2 = vpop.permute.xlu1 %1281  ;;  %v7347_v14 = vld [vmem:[#allocation27_spill] sm:$0xff] }
 0x191   :  { %1463 = vst.msk [vmem:[#allocation2 + $0x58] sm:$0xff] %vm1451_vm5, %v1282_v2 }
 0x192   :  { %v1280_v52 = vpop.permute.xlu0 %1279  ;;  %1550 = vrot.lane.b32.xlu1 %v7344_v22, %s3669_s13 }
 0x193   :  { %1462 = vst.msk [vmem:[#allocation2 + $0x50] sm:$0xff] %vm1451_vm5, %v1280_v52 }
 0x194   :  { %1548 = vrot.lane.b32.xlu0 %v7345_v20, %s3669_s13  ;;  %v1286_v53 = vpop.permute.xlu1 %1285 }
 0x195   :  { %1465 = vst.msk [vmem:[#allocation2 + $0x68] sm:$0xff] %vm1451_vm5, %v1286_v53  ;;  %v7349_v53 = vld [vmem:[#allocation34_spill] sm:$0xff] }
 0x196   :  { %v1284_v37 = vpop.permute.xlu0 %1283  ;;  %1554 = vrot.lane.b32.xlu1 %v7346_v10, %s3669_s13 }
 0x197   :  { %1464 = vst.msk [vmem:[#allocation2 + $0x60] sm:$0xff] %vm1451_vm5, %v1284_v37 }
 0x198   :  { %1552 = vrot.lane.b32.xlu0 %v7347_v14, %s3669_s13  ;;  %v1290_v2 = vpop.permute.xlu1 %1289 }
 0x199   :  { %1467 = vst.msk [vmem:[#allocation2 + $0x78] sm:$0xff] %vm1451_vm5, %v1290_v2  ;;  %v7351_v2 = vld [vmem:[#allocation42_spill] sm:$0xff] }
 0x19a   :  { %v1288_v52 = vpop.permute.xlu0 %1287  ;;  %1558 = vrot.lane.b32.xlu1 %v7348_v58, %s3669_s13 }
 0x19b   :  { %1466 = vst.msk [vmem:[#allocation2 + $0x70] sm:$0xff] %vm1451_vm5, %v1288_v52 }
 0x19c   :  { %1556 = vrot.lane.b32.xlu0 %v7349_v53, %s3669_s13  ;;  %v1294_v42 = vpop.permute.xlu1 %1293 }
 0x19d   :  { %1469 = vst.msk [vmem:[#allocation2 + $0x88] sm:$0xff] %vm1451_vm5, %v1294_v42  ;;  %v7353_v42 = vld [vmem:[#allocation44_spill] sm:$0xff] }
 0x19e   :  { %v1292_v37 = vpop.permute.xlu0 %1291  ;;  %1562 = vrot.lane.b32.xlu1 %v7350_v33, %s3669_s13  ;;  %v1520_v33 = vrot.slane %v5370_v55, 2 }
 0x19f   :  { %1468 = vst.msk [vmem:[#allocation2 + $0x80] sm:$0xff] %vm1451_vm5, %v1292_v37 }
 0x1a0   :  { %1560 = vrot.lane.b32.xlu0 %v7351_v2, %s3669_s13  ;;  %v1298_v12 = vpop.permute.xlu1 %1297 }
 0x1a1   :  { %1471 = vst.msk [vmem:[#allocation2 + $0x98] sm:$0xff] %vm1451_vm5, %v1298_v12  ;;  %v7355_v12 = vld [vmem:[#allocation47_spill] sm:$0xff] }
 0x1a2   :  { %v1296_v52 = vpop.permute.xlu0 %1295  ;;  %1566 = vrot.lane.b32.xlu1 %v7352_v0, %s3669_s13  ;;  %v5591_v0 = vld [vmem:[%s6766_s0 + $0x1a8] sm:$0xf] }
 0x1a3   :  { %1470 = vst.msk [vmem:[#allocation2 + $0x90] sm:$0xff] %vm1451_vm5, %v1296_v52  ;;  %7365 = vst [vmem:[#allocation6_spill] sm:$0xff] %v5591_v0  ;;  %v7072_v46 = vmax.f32 %v5591_v0, 0.0 }
 0x1a4   :  { %1564 = vrot.lane.b32.xlu0 %v7353_v42, %s3669_s13  ;;  %v1302_v11 = vpop.permute.xlu1 %1301 }
 0x1a5   :  { %1473 = vst.msk [vmem:[#allocation2 + $0xa8] sm:$0xff] %vm1451_vm5, %v1302_v11  ;;  %v7357_v11 = vld [vmem:[#allocation53_spill] sm:$0xff] }
 0x1a6   :  { %v1300_v37 = vpop.permute.xlu0 %1299  ;;  %1570 = vrot.lane.b32.xlu1 %v7354_v30, %s3669_s13 }
 0x1a7   :  { %1472 = vst.msk [vmem:[#allocation2 + $0xa0] sm:$0xff] %vm1451_vm5, %v1300_v37 }
 0x1a8   :  { %1568 = vrot.lane.b32.xlu0 %v7355_v12, %s3669_s13  ;;  %v1306_v21 = vpop.permute.xlu1 %1305  ;;  %v7358_v12 = vld [vmem:[#allocation55_spill] sm:$0xff] }
 0x1a9   :  { %1475 = vst.msk [vmem:[#allocation2 + $0xb8] sm:$0xff] %vm1451_vm5, %v1306_v21  ;;  %v7359_v21 = vld [vmem:[#allocation57_spill] sm:$0xff] }
 0x1aa   :  { %v1304_v52 = vpop.permute.xlu0 %1303  ;;  %1574 = vrot.lane.b32.xlu1 %v7356_v25, %s3669_s13 }
 0x1ab   :  { %1474 = vst.msk [vmem:[#allocation2 + $0xb0] sm:$0xff] %vm1451_vm5, %v1304_v52 }
 0x1ac   :  { %1572 = vrot.lane.b32.xlu0 %v7357_v11, %s3669_s13  ;;  %v1310_v35 = vpop.permute.xlu1 %1309  ;;  %v7360_v11 = vld [vmem:[#allocation62_spill] sm:$0xff] }
 0x1ad   :  { %1477 = vst.msk [vmem:[#allocation2 + $0xc8] sm:$0xff] %vm1451_vm5, %v1310_v35  ;;  %v7361_v35 = vld [vmem:[#allocation64_spill] sm:$0xff] }
 0x1ae   :  { %v1308_v37 = vpop.permute.xlu0 %1307  ;;  %1578 = vrot.lane.b32.xlu1 %v7358_v12, %s3669_s13 }
 0x1af   :  { %1476 = vst.msk [vmem:[#allocation2 + $0xc0] sm:$0xff] %vm1451_vm5, %v1308_v37  ;;  %v5579_v37 = vld [vmem:[%s6766_s0 + $0x190] sm:$0xf] }
 0x1b0   :  { %1576 = vrot.lane.b32.xlu0 %v7359_v21, %s3669_s13  ;;  %v1314_v30 = vpop.permute.xlu1 %1313  ;;  %7362 = vst [vmem:[#allocation4_spill] sm:$0xff] %v5579_v37  ;;  %v7068_v12 = vmax.f32 %v5579_v37, 0.0  ;;  %v1528_v37 = vrot.slane %v7072_v46, 2 }
 0x1b1   :  { %1479 = vst.msk [vmem:[#allocation2 + $0xd8] sm:$0xff] %vm1451_vm5, %v1314_v30  ;;  %v7363_v30 = vld [vmem:[#allocation68_spill] sm:$0xff] }
 0x1b2   :  { %v1312_v52 = vpop.permute.xlu0 %1311  ;;  %1582 = vrot.lane.b32.xlu1 %v7360_v11, %s3669_s13  ;;  %v1523_v49 = vrot.slane %v7068_v12, 2  ;;  %v1526_v12 = vrot.slane %v5382_v19, 2 }
 0x1b3   :  { %1478 = vst.msk [vmem:[#allocation2 + $0xd0] sm:$0xff] %vm1451_vm5, %v1312_v52  ;;  %v7364_v52 = vld [vmem:[#allocation71_spill] sm:$0xff] }
 0x1b4   :  { %1580 = vrot.lane.b32.xlu0 %v7361_v35, %s3669_s13  ;;  %v1318_v25 = vpop.permute.xlu1 %1317  ;;  %v5611_v15 = vsel %vm415_vm0, %v1521_v9, %v1523_v49  ;;  %v5627_v49 = vsel %vm415_vm0, %v1526_v12, %v1528_v37 }
 0x1b5   :  { %1481 = vst.msk [vmem:[#allocation2 + $0xe8] sm:$0xff] %vm1451_vm5, %v1318_v25  ;;  %7370 = vst [vmem:[#allocation11_spill] sm:$0xff] %v5611_v15 }
 0x1b6   :  { %v1316_v21 = vpop.permute.xlu0 %1315  ;;  %1586 = vrot.lane.b32.xlu1 %v7363_v30, %s3669_s13  ;;  %7372 = vst [vmem:[#allocation18_spill] sm:$0xff] %v5627_v49 }
 0x1b7   :  { %1480 = vst.msk [vmem:[#allocation2 + $0xe0] sm:$0xff] %vm1451_vm5, %v1316_v21  ;;  %v7366_v21 = vld [vmem:[#allocation73_spill] sm:$0xff] }
 0x1b8   :  { %1584 = vrot.lane.b32.xlu0 %v7364_v52, %s3669_s13  ;;  %v1322_v42 = vpop.permute.xlu1 %1321 }
 0x1b9   :  { %1483 = vst.msk [vmem:[#allocation2 + $0xf8] sm:$0xff] %vm1451_vm5, %v1322_v42 }
 0x1ba   :  { %v1320_v25 = vpop.permute.xlu0 %1319  ;;  %1590 = vrot.lane.b32.xlu1 %v7366_v21, %s3669_s13 }
 0x1bb   :  { %1482 = vst.msk [vmem:[#allocation2 + $0xf0] sm:$0xff] %vm1451_vm5, %v1320_v25  ;;  %v7368_v25 = vld [vmem:[#allocation77_spill] sm:$0xff] }
 0x1bc   :  { %1588 = vrot.lane.b32.xlu0 %v7367_v34, %s3669_s13  ;;  %v1326_v2 = vpop.permute.xlu1 %1325 }
 0x1bd   :  { %1485 = vst.msk [vmem:[#allocation2 + $0x108] sm:$0xff] %vm1451_vm5, %v1326_v2  ;;  %v5617_v2 = vsel %vm415_vm0, %v1520_v33, %v1521_v9 }
 0x1be   :  { %v1324_v42 = vpop.permute.xlu0 %1323  ;;  %1594 = vrot.lane.b32.xlu1 %v7368_v25, %s3669_s13  ;;  %7371 = vst [vmem:[#allocation13_spill] sm:$0xff] %v5617_v2 }
 0x1bf   :  { %1484 = vst.msk [vmem:[#allocation2 + $0x100] sm:$0xff] %vm1451_vm5, %v1324_v42  ;;  %v1525_v42 = vrot.slane %v5386_v48, 2  ;;  %v7384_v48 = vld [vmem:[#allocation91_spill] sm:$0xff] }
 0x1c0   :  { %1592 = vrot.lane.b32.xlu0 %v7369_v62, %s3669_s13  ;;  %v1330_v55 = vpop.permute.xlu1 %1329 }
 0x1c1   :  { %1487 = vst.msk [vmem:[#allocation2 + $0x118] sm:$0xff] %vm1451_vm5, %v1330_v55  ;;  %v5630_v33 = vsel %vm415_vm0, %v1525_v42, %v1526_v12  ;;  %v7374_v12 = vld [vmem:[#allocation80_spill] sm:$0xff] }
 0x1c2   :  { %v1328_v25 = vpop.permute.xlu0 %1327  ;;  %1598 = vrot.lane.b32.xlu1 %v5611_v15, %s3669_s13  ;;  %7373 = vst [vmem:[#allocation21_spill] sm:$0xff] %v5630_v33 }
 0x1c3   :  { %1486 = vst.msk [vmem:[#allocation2 + $0x110] sm:$0xff] %vm1451_vm5, %v1328_v25 }
 0x1c4   :  { %1596 = vrot.lane.b32.xlu0 %v5617_v2, %s3669_s13  ;;  %v1334_v46 = vpop.permute.xlu1 %1333  ;;  %v7386_v2 = vld [vmem:[#allocation93_spill] sm:$0xff] }
 0x1c5   :  { %1489 = vst.msk [vmem:[#allocation2 + $0x128] sm:$0xff] %vm1451_vm5, %v1334_v46  ;;  %v7375_v46 = vld [vmem:[#allocation81_spill] sm:$0xff] }
 0x1c6   :  { %v1332_v9 = vpop.permute.xlu0 %1331  ;;  %1602 = vrot.lane.b32.xlu1 %v5627_v49, %s3669_s13 }
 0x1c7   :  { %1488 = vst.msk [vmem:[#allocation2 + $0x120] sm:$0xff] %vm1451_vm5, %v1332_v9  ;;  %v7376_v9 = vld [vmem:[#allocation83_spill] sm:$0xff] }
 0x1c8   :  { %1600 = vrot.lane.b32.xlu0 %v5630_v33, %s3669_s13  ;;  %v1338_v55 = vpop.permute.xlu1 %1337  ;;  %v7382_v33 = vld [vmem:[#allocation89_spill] sm:$0xff] }
 0x1c9   :  { %1491 = vst.msk [vmem:[#allocation2 + $0x138] sm:$0xff] %vm1451_vm5, %v1338_v55  ;;  %v7377_v55 = vld [vmem:[#allocation84_spill] sm:$0xff] }
 0x1ca   :  { %v1336_v37 = vpop.permute.xlu0 %1335  ;;  %1606 = vrot.lane.b32.xlu1 %v7374_v12, %s3669_s13  ;;  %v7378_v12 = vld [vmem:[#allocation85_spill] sm:$0xff] }
 0x1cb   :  { %1490 = vst.msk [vmem:[#allocation2 + $0x130] sm:$0xff] %vm1451_vm5, %v1336_v37 }
 0x1cc   :  { %1604 = vrot.lane.b32.xlu0 %v7375_v46, %s3669_s13  ;;  %v1342_v25 = vpop.permute.xlu1 %1341  ;;  %v7379_v46 = vld [vmem:[#allocation86_spill] sm:$0xff] }
 0x1cd   :  { %1493 = vst.msk [vmem:[#allocation2 + $0x148] sm:$0xff] %vm1451_vm5, %v1342_v25 }
 0x1ce   :  { %v1340_v42 = vpop.permute.xlu0 %1339  ;;  %1610 = vrot.lane.b32.xlu1 %v7376_v9, %s3669_s13  ;;  %v7380_v9 = vld [vmem:[#allocation87_spill] sm:$0xff] }
 0x1cf   :  { %1492 = vst.msk [vmem:[#allocation2 + $0x140] sm:$0xff] %vm1451_vm5, %v1340_v42 }
 0x1d0   :  { %1608 = vrot.lane.b32.xlu0 %v7377_v55, %s3669_s13  ;;  %v1346_v0 = vpop.permute.xlu1 %1345 }
 0x1d1   :  { %1495 = vst.msk [vmem:[#allocation2 + $0x158] sm:$0xff] %vm1451_vm5, %v1346_v0  ;;  %v7381_v0 = vld [vmem:[#allocation88_spill] sm:$0xff] }
 0x1d2   :  { %v1344_v37 = vpop.permute.xlu0 %1343  ;;  %1614 = vrot.lane.b32.xlu1 %v7378_v12, %s3669_s13 }
 0x1d3   :  { %1494 = vst.msk [vmem:[#allocation2 + $0x150] sm:$0xff] %vm1451_vm5, %v1344_v37 }
 0x1d4   :  { %1612 = vrot.lane.b32.xlu0 %v7379_v46, %s3669_s13  ;;  %v1350_v25 = vpop.permute.xlu1 %1349 }
 0x1d5   :  { %1497 = vst.msk [vmem:[#allocation2 + $0x168] sm:$0xff] %vm1451_vm5, %v1350_v25  ;;  %v7383_v25 = vld [vmem:[#allocation90_spill] sm:$0xff] }
 0x1d6   :  { %v1348_v42 = vpop.permute.xlu0 %1347  ;;  %1618 = vrot.lane.b32.xlu1 %v7380_v9, %s3669_s13 }
 0x1d7   :  { %1496 = vst.msk [vmem:[#allocation2 + $0x160] sm:$0xff] %vm1451_vm5, %v1348_v42 }
 0x1d8   :  { %1616 = vrot.lane.b32.xlu0 %v7381_v0, %s3669_s13  ;;  %v1354_v55 = vpop.permute.xlu1 %1353 }
 0x1d9   :  { %1499 = vst.msk [vmem:[#allocation2 + $0x178] sm:$0xff] %vm1451_vm5, %v1354_v55  ;;  %v7385_v55 = vld [vmem:[#allocation92_spill] sm:$0xff] }
 0x1da   :  { %v1352_v37 = vpop.permute.xlu0 %1351  ;;  %1622 = vrot.lane.b32.xlu1 %v7382_v33, %s3669_s13 }
 0x1db   :  { %1498 = vst.msk [vmem:[#allocation2 + $0x170] sm:$0xff] %vm1451_vm5, %v1352_v37 }
 0x1dc   :  { %1620 = vrot.lane.b32.xlu0 %v7383_v25, %s3669_s13  ;;  %v1358_v49 = vpop.permute.xlu1 %1357 }
 0x1dd   :  { %1501 = vst.msk [vmem:[#allocation2 + $0x188] sm:$0xff] %vm1451_vm5, %v1358_v49  ;;  %v7387_v49 = vld [vmem:[#allocation94_spill] sm:$0xff] }
 0x1de   :  { %v1356_v42 = vpop.permute.xlu0 %1355  ;;  %1626 = vrot.lane.b32.xlu1 %v7384_v48, %s3669_s13 }
 0x1df   :  { %1500 = vst.msk [vmem:[#allocation2 + $0x180] sm:$0xff] %vm1451_vm5, %v1356_v42 }
 0x1e0   :  { %1624 = vrot.lane.b32.xlu0 %v7385_v55, %s3669_s13  ;;  %v1362_v19 = vpop.permute.xlu1 %1361  ;;  %v7388_v55 = vld [vmem:[#allocation95_spill] sm:$0xff] }
 0x1e1   :  { %1503 = vst.msk [vmem:[#allocation2 + $0x198] sm:$0xff] %vm1451_vm5, %v1362_v19  ;;  %v7389_v19 = vld [vmem:[#allocation96_spill] sm:$0xff] }
 0x1e2   :  { %v1360_v37 = vpop.permute.xlu0 %1359  ;;  %1630 = vrot.lane.b32.xlu1 %v7386_v2, %s3669_s13 }
 0x1e3   :  { %1502 = vst.msk [vmem:[#allocation2 + $0x190] sm:$0xff] %vm1451_vm5, %v1360_v37 }
 0x1e4   :  { %1628 = vrot.lane.b32.xlu0 %v7387_v49, %s3669_s13  ;;  %v1366_v15 = vpop.permute.xlu1 %1365  ;;  %v7390_v49 = vld [vmem:[#allocation116_spill] sm:$0xff] }
 0x1e5   :  { %1505 = vst.msk [vmem:[#allocation2 + $0x1a8] sm:$0xff] %vm1451_vm5, %v1366_v15  ;;  %v7391_v15 = vld [vmem:[#allocation45_spill] sm:$0xff] }
 0x1e6   :  { %v1364_v42 = vpop.permute.xlu0 %1363  ;;  %1634 = vrot.lane.b32.xlu1 %v7388_v55, %s3669_s13 }
 0x1e7   :  { %1504 = vst.msk [vmem:[#allocation2 + $0x1a0] sm:$0xff] %vm1451_vm5, %v1364_v42 }
 0x1e8   :  { %1632 = vrot.lane.b32.xlu0 %v7389_v19, %s3669_s13  ;;  %v1370_v48 = vpop.permute.xlu1 %1369  ;;  %v7392_v19 = vld [vmem:[#allocation110_spill] sm:$0xff] }
 0x1e9   :  { %1507 = vst.msk [vmem:[#allocation2 + $0x1b8] sm:$0xff] %vm1451_vm5, %v1370_v48  ;;  %v7393_v48 = vld [vmem:[#allocation111_spill] sm:$0xff] }
 0x1ea   :  { %v1368_v37 = vpop.permute.xlu0 %1367  ;;  %1851 = vrot.lane.b32.xlu1 %v7390_v49, %s3670_s18 }
 0x1eb   :  { %1506 = vst.msk [vmem:[#allocation2 + $0x1b0] sm:$0xff] %vm1451_vm5, %v1368_v37 }
 0x1ec   :  { %1849 = vrot.lane.b32.xlu0 %v7391_v15, %s3670_s18  ;;  %v1374_v42 = vpop.permute.xlu1 %1373 }
 0x1ed   :  { %1509 = vst.msk [vmem:[#allocation2 + $0x1c8] sm:$0xff] %vm1451_vm5, %v1374_v42  ;;  %v7394_v42 = vld [vmem:[#allocation97_spill] sm:$0xff] }
 0x1ee   :  { %v1372_v55 = vpop.permute.xlu0 %1371  ;;  %1819 = vrot.lane.b32.xlu1 %v7392_v19, %s3670_s18 }
 0x1ef   :  { %1508 = vst.msk [vmem:[#allocation2 + $0x1c0] sm:$0xff] %vm1451_vm5, %v1372_v55 }
 0x1f0   :  { %1817 = vrot.lane.b32.xlu0 %v7393_v48, %s3670_s18  ;;  %v1378_v37 = vpop.permute.xlu1 %1377  ;;  %v7395_v48 = vld [vmem:[#allocation98_spill] sm:$0xff] }
 0x1f1   :  { %1511 = vst.msk [vmem:[#allocation2 + $0x1d8] sm:$0xff] %vm1451_vm5, %v1378_v37 }
 0x1f2   :  { %v1376_v2 = vpop.permute.xlu0 %1375  ;;  %2116 = vrot.lane.b32.xlu1 %v7326_v13, %s3671_s19 }
 0x1f3   :  { %1510 = vst.msk [vmem:[#allocation2 + $0x1d0] sm:$0xff] %vm1451_vm5, %v1376_v2 }
 0x1f4   :  { %2114 = vrot.lane.b32.xlu0 %v7327_v5, %s3671_s19  ;;  %v1382_v55 = vpop.permute.xlu1 %1381 }
 0x1f5   :  { %1513 = vst.msk [vmem:[#allocation2 + $0x1e8] sm:$0xff] %vm1451_vm5, %v1382_v55 }
 0x1f6   :  { %v1380_v19 = vpop.permute.xlu0 %1379  ;;  %1638 = vrot.lane.b32.xlu1 %v7394_v42, %s3669_s13 }
 0x1f7   :  { %1512 = vst.msk [vmem:[#allocation2 + $0x1e0] sm:$0xff] %vm1451_vm5, %v1380_v19 }
 0x1f8   :  { %1636 = vrot.lane.b32.xlu0 %v7395_v48, %s3669_s13  ;;  %v1386_v2 = vpop.permute.xlu1 %1385 }
 0x1f9   :  { %1515 = vst.msk [vmem:[#allocation2 + $0x1f8] sm:$0xff] %vm1451_vm5, %v1386_v2  ;;  %v7396_v2 = vld [vmem:[#allocation118_spill] sm:$0xff] }
 0x1fa   :  { %v1384_v37 = vpop.permute.xlu0 %1383  ;;  %2084 = vrot.lane.b32.xlu1 %v3806_v41, %s3671_s19 }
 0x1fb   :  { %1514 = vst.msk [vmem:[#allocation2 + $0x1f0] sm:$0xff] %vm1451_vm5, %v1384_v37  ;;  %v7397_v37 = vld [vmem:[#allocation51_spill] sm:$0xff] }
 0x1fc   :  { %2082 = vrot.lane.b32.xlu0 %v3811_v43, %s3671_s19  ;;  %v1543_v13 = vpop.permute.xlu1 %1542 }
 0x1fd   :  { %1734 = vst.msk [vmem:[#allocation2 + $0x8] sm:$0xff] %vm1732_vm6, %v1543_v13 }
 0x1fe   :  { %v1541_v5 = vpop.permute.xlu0 %1540  ;;  %2397 = vrot.lane.b32.xlu1 %v7360_v11, %s3672_s20 }
 0x1ff   :  { %1733 = vst.msk [vmem:[#allocation2] sm:$0xff] %vm1732_vm6, %v1541_v5 }
 0x200   :  { %2395 = vrot.lane.b32.xlu0 %v7361_v35, %s3672_s20  ;;  %v1547_v55 = vpop.permute.xlu1 %1546 }
 0x201   :  { %1736 = vst.msk [vmem:[#allocation2 + $0x18] sm:$0xff] %vm1732_vm6, %v1547_v55 }
 0x202   :  { %v1545_v41 = vpop.permute.xlu0 %1544  ;;  %1915 = vrot.lane.b32.xlu1 %v5187_v60, %s3670_s18 }
 0x203   :  { %1735 = vst.msk [vmem:[#allocation2 + $0x10] sm:$0xff] %vm1732_vm6, %v1545_v41 }
 0x204   :  { %1913 = vrot.lane.b32.xlu0 %v5193_v61, %s3670_s18  ;;  %v1551_v43 = vpop.permute.xlu1 %1550 }
 0x205   :  { %1738 = vst.msk [vmem:[#allocation2 + $0x28] sm:$0xff] %vm1732_vm6, %v1551_v43 }
 0x206   :  { %v1549_v19 = vpop.permute.xlu0 %1548  ;;  %2365 = vrot.lane.b32.xlu1 %v7344_v22, %s3672_s20 }
 0x207   :  { %1737 = vst.msk [vmem:[#allocation2 + $0x20] sm:$0xff] %vm1732_vm6, %v1549_v19 }
 0x208   :  { %2363 = vrot.lane.b32.xlu0 %v7345_v20, %s3672_s20  ;;  %v1555_v11 = vpop.permute.xlu1 %1554 }
 0x209   :  { %1740 = vst.msk [vmem:[#allocation2 + $0x38] sm:$0xff] %vm1732_vm6, %v1555_v11  ;;  %v7400_v11 = vld [vmem:[#allocation102_spill] sm:$0xff] }
 0x20a   :  { %v1553_v35 = vpop.permute.xlu0 %1552  ;;  %2674 = vrot.lane.b32.xlu1 %v7396_v2, %s3673_s21 }
 0x20b   :  { %1739 = vst.msk [vmem:[#allocation2 + $0x30] sm:$0xff] %vm1732_vm6, %v1553_v35  ;;  %v7401_v35 = vld [vmem:[#allocation103_spill] sm:$0xff] }
 0x20c   :  { %2672 = vrot.lane.b32.xlu0 %v7397_v37, %s3673_s21  ;;  %v1559_v13 = vpop.permute.xlu1 %1558 }
 0x20d   :  { %1742 = vst.msk [vmem:[#allocation2 + $0x48] sm:$0xff] %vm1732_vm6, %v1559_v13 }
 0x20e   :  { %v1557_v22 = vpop.permute.xlu0 %1556  ;;  %1883 = vrot.lane.b32.xlu1 %v5059_v29, %s3670_s18  ;;  %v7398_v29 = vld [vmem:[#allocation114_spill] sm:$0xff] }
 0x20f   :  { %1741 = vst.msk [vmem:[#allocation2 + $0x40] sm:$0xff] %vm1732_vm6, %v1557_v22 }
 0x210   :  { %1881 = vrot.lane.b32.xlu0 %v5065_v44, %s3670_s18  ;;  %v1563_v20 = vpop.permute.xlu1 %1562  ;;  %v7399_v44 = vld [vmem:[#allocation3_spill] sm:$0xff] }
 0x211   :  { %1744 = vst.msk [vmem:[#allocation2 + $0x58] sm:$0xff] %vm1732_vm6, %v1563_v20 }
 0x212   :  { %v1561_v5 = vpop.permute.xlu0 %1560  ;;  %2180 = vrot.lane.b32.xlu1 %v4378_v1, %s3671_s19 }
 0x213   :  { %1743 = vst.msk [vmem:[#allocation2 + $0x50] sm:$0xff] %vm1732_vm6, %v1561_v5 }
 0x214   :  { %2178 = vrot.lane.b32.xlu0 %v7308_v18, %s3671_s19  ;;  %v1567_v55 = vpop.permute.xlu1 %1566 }
 0x215   :  { %1746 = vst.msk [vmem:[#allocation2 + $0x68] sm:$0xff] %vm1732_vm6, %v1567_v55  ;;  %v7402_v55 = vld [vmem:[#allocation117_spill] sm:$0xff] }
 0x216   :  { %v1565_v41 = vpop.permute.xlu0 %1564  ;;  %2642 = vrot.lane.b32.xlu1 %v7398_v29, %s3673_s21 }
 0x217   :  { %1745 = vst.msk [vmem:[#allocation2 + $0x60] sm:$0xff] %vm1732_vm6, %v1565_v41  ;;  %v7403_v41 = vld [vmem:[#allocation48_spill] sm:$0xff] }
 0x218   :  { %2640 = vrot.lane.b32.xlu0 %v7399_v44, %s3673_s21  ;;  %v1571_v43 = vpop.permute.xlu1 %1570 }
 0x219   :  { %1748 = vst.msk [vmem:[#allocation2 + $0x78] sm:$0xff] %vm1732_vm6, %v1571_v43 }
 0x21a   :  { %v1569_v19 = vpop.permute.xlu0 %1568  ;;  %2148 = vrot.lane.b32.xlu1 %v4186_v36, %s3671_s19 }
 0x21b   :  { %1747 = vst.msk [vmem:[#allocation2 + $0x70] sm:$0xff] %vm1732_vm6, %v1569_v19 }
 0x21c   :  { %2146 = vrot.lane.b32.xlu0 %v7285_v59, %s3671_s19  ;;  %v1575_v1 = vpop.permute.xlu1 %1574 }
 0x21d   :  { %1750 = vst.msk [vmem:[#allocation2 + $0x88] sm:$0xff] %vm1732_vm6, %v1575_v1  ;;  %v7404_v1 = vld [vmem:[#allocation112_spill] sm:$0xff] }
 0x21e   :  { %v1573_v18 = vpop.permute.xlu0 %1572  ;;  %2461 = vrot.lane.b32.xlu1 %v7400_v11, %s3672_s20 }
 0x21f   :  { %1749 = vst.msk [vmem:[#allocation2 + $0x80] sm:$0xff] %vm1732_vm6, %v1573_v18  ;;  %v7405_v18 = vld [vmem:[#allocation113_spill] sm:$0xff] }
 0x220   :  { %2459 = vrot.lane.b32.xlu0 %v7401_v35, %s3672_s20  ;;  %v1579_v13 = vpop.permute.xlu1 %1578 }
 0x221   :  { %1752 = vst.msk [vmem:[#allocation2 + $0x98] sm:$0xff] %vm1732_vm6, %v1579_v13 }
 0x222   :  { %v1577_v22 = vpop.permute.xlu0 %1576  ;;  %2429 = vrot.lane.b32.xlu1 %v7378_v12, %s3672_s20 }
 0x223   :  { %1751 = vst.msk [vmem:[#allocation2 + $0x90] sm:$0xff] %vm1732_vm6, %v1577_v22 }
 0x224   :  { %2427 = vrot.lane.b32.xlu0 %v7379_v46, %s3672_s20  ;;  %v1583_v36 = vpop.permute.xlu1 %1582 }
 0x225   :  { %1754 = vst.msk [vmem:[#allocation2 + $0xa8] sm:$0xff] %vm1732_vm6, %v1583_v36 }
 0x226   :  { %v1581_v59 = vpop.permute.xlu0 %1580  ;;  %2738 = vrot.lane.b32.xlu1 %v5219_v56, %s3673_s21 }
 0x227   :  { %1753 = vst.msk [vmem:[#allocation2 + $0xa0] sm:$0xff] %vm1732_vm6, %v1581_v59 }
 0x228   :  { %2736 = vrot.lane.b32.xlu0 %v5225_v54, %s3673_s21  ;;  %v1587_v20 = vpop.permute.xlu1 %1586 }
 0x229   :  { %1756 = vst.msk [vmem:[#allocation2 + $0xb8] sm:$0xff] %vm1732_vm6, %v1587_v20  ;;  %v7406_v20 = vld [vmem:[#allocation100_spill] sm:$0xff] }
 0x22a   :  { %v1585_v5 = vpop.permute.xlu0 %1584  ;;  %2706 = vrot.lane.b32.xlu1 %v5091_v51, %s3673_s21 }
 0x22b   :  { %1755 = vst.msk [vmem:[#allocation2 + $0xb0] sm:$0xff] %vm1732_vm6, %v1585_v5  ;;  %v7407_v5 = vld [vmem:[#allocation101_spill] sm:$0xff] }
 0x22c   :  { %2704 = vrot.lane.b32.xlu0 %v5097_v38, %s3673_s21  ;;  %v1591_v12 = vpop.permute.xlu1 %1590 }
 0x22d   :  { %1758 = vst.msk [vmem:[#allocation2 + $0xc8] sm:$0xff] %vm1732_vm6, %v1591_v12 }
 0x22e   :  { %v1589_v46 = vpop.permute.xlu0 %1588  ;;  %1855 = vrot.lane.b32.xlu1 %v7402_v55, %s3670_s18 }
 0x22f   :  { %1757 = vst.msk [vmem:[#allocation2 + $0xc0] sm:$0xff] %vm1732_vm6, %v1589_v46 }
 0x230   :  { %1853 = vrot.lane.b32.xlu0 %v7403_v41, %s3670_s18  ;;  %v1595_v43 = vpop.permute.xlu1 %1594 }
 0x231   :  { %1760 = vst.msk [vmem:[#allocation2 + $0xd8] sm:$0xff] %vm1732_vm6, %v1595_v43 }
 0x232   :  { %v1593_v19 = vpop.permute.xlu0 %1592  ;;  %1823 = vrot.lane.b32.xlu1 %v7404_v1, %s3670_s18  ;;  %v7408_v1 = vld [vmem:[#allocation119_spill] sm:$0xff] }
 0x233   :  { %1759 = vst.msk [vmem:[#allocation2 + $0xd0] sm:$0xff] %vm1732_vm6, %v1593_v19 }
 0x234   :  { %1821 = vrot.lane.b32.xlu0 %v7405_v18, %s3670_s18  ;;  %v1599_v13 = vpop.permute.xlu1 %1598  ;;  %v7409_v18 = vld [vmem:[#allocation58_spill] sm:$0xff] }
 0x235   :  { %1762 = vst.msk [vmem:[#allocation2 + $0xe8] sm:$0xff] %vm1732_vm6, %v1599_v13 }
 0x236   :  { %v1597_v22 = vpop.permute.xlu0 %1596  ;;  %2120 = vrot.lane.b32.xlu1 %v7328_v39, %s3671_s19 }
 0x237   :  { %1761 = vst.msk [vmem:[#allocation2 + $0xe0] sm:$0xff] %vm1732_vm6, %v1597_v22 }
 0x238   :  { %2118 = vrot.lane.b32.xlu0 %v7329_v28, %s3671_s19  ;;  %v1603_v36 = vpop.permute.xlu1 %1602 }
 0x239   :  { %1764 = vst.msk [vmem:[#allocation2 + $0xf8] sm:$0xff] %vm1732_vm6, %v1603_v36 }
 0x23a   :  { %v1601_v59 = vpop.permute.xlu0 %1600  ;;  %1642 = vrot.lane.b32.xlu1 %v7406_v20, %s3669_s13 }
 0x23b   :  { %1763 = vst.msk [vmem:[#allocation2 + $0xf0] sm:$0xff] %vm1732_vm6, %v1601_v59 }
 0x23c   :  { %1640 = vrot.lane.b32.xlu0 %v7407_v5, %s3669_s13  ;;  %v1607_v12 = vpop.permute.xlu1 %1606 }
 0x23d   :  { %1766 = vst.msk [vmem:[#allocation2 + $0x108] sm:$0xff] %vm1732_vm6, %v1607_v12 }
 0x23e   :  { %v1605_v46 = vpop.permute.xlu0 %1604  ;;  %2088 = vrot.lane.b32.xlu1 %v7213_v31, %s3671_s19 }
 0x23f   :  { %1765 = vst.msk [vmem:[#allocation2 + $0x100] sm:$0xff] %vm1732_vm6, %v1605_v46 }
 0x240   :  { %2086 = vrot.lane.b32.xlu0 %v7217_v63, %s3671_s19  ;;  %v1611_v39 = vpop.permute.xlu1 %1610 }
 0x241   :  { %1768 = vst.msk [vmem:[#allocation2 + $0x118] sm:$0xff] %vm1732_vm6, %v1611_v39  ;;  %v7412_v39 = vld [vmem:[#allocation7_spill] sm:$0xff] }
 0x242   :  { %v1609_v28 = vpop.permute.xlu0 %1608  ;;  %2401 = vrot.lane.b32.xlu1 %v7363_v30, %s3672_s20 }
 0x243   :  { %1767 = vst.msk [vmem:[#allocation2 + $0x110] sm:$0xff] %vm1732_vm6, %v1609_v28  ;;  %v7413_v28 = vld [vmem:[#allocation5_spill] sm:$0xff] }
 0x244   :  { %2399 = vrot.lane.b32.xlu0 %v7364_v52, %s3672_s20  ;;  %v1615_v43 = vpop.permute.xlu1 %1614 }
 0x245   :  { %1770 = vst.msk [vmem:[#allocation2 + $0x128] sm:$0xff] %vm1732_vm6, %v1615_v43 }
 0x246   :  { %v1613_v19 = vpop.permute.xlu0 %1612  ;;  %1919 = vrot.lane.b32.xlu1 %v5203_v3, %s3670_s18 }
 0x247   :  { %1769 = vst.msk [vmem:[#allocation2 + $0x120] sm:$0xff] %vm1732_vm6, %v1613_v19 }
 0x248   :  { %1917 = vrot.lane.b32.xlu0 %v5209_v32, %s3670_s18  ;;  %v1619_v63 = vpop.permute.xlu1 %1618 }
 0x249   :  { %1772 = vst.msk [vmem:[#allocation2 + $0x138] sm:$0xff] %vm1732_vm6, %v1619_v63  ;;  %v7414_v63 = vld [vmem:[#allocation104_spill] sm:$0xff] }
 0x24a   :  { %v1617_v31 = vpop.permute.xlu0 %1616  ;;  %2369 = vrot.lane.b32.xlu1 %v7346_v10, %s3672_s20  ;;  %v7410_v10 = vld [vmem:[#allocation123_spill] sm:$0xff] }
 0x24b   :  { %1771 = vst.msk [vmem:[#allocation2 + $0x130] sm:$0xff] %vm1732_vm6, %v1617_v31  ;;  %v7415_v31 = vld [vmem:[#allocation105_spill] sm:$0xff] }
 0x24c   :  { %2367 = vrot.lane.b32.xlu0 %v7347_v14, %s3672_s20  ;;  %v1623_v30 = vpop.permute.xlu1 %1622  ;;  %v7411_v14 = vld [vmem:[#allocation124_spill] sm:$0xff] }
 0x24d   :  { %1774 = vst.msk [vmem:[#allocation2 + $0x148] sm:$0xff] %vm1732_vm6, %v1623_v30 }
 0x24e   :  { %v1621_v52 = vpop.permute.xlu0 %1620  ;;  %2678 = vrot.lane.b32.xlu1 %v7408_v1, %s3673_s21 }
 0x24f   :  { %1773 = vst.msk [vmem:[#allocation2 + $0x140] sm:$0xff] %vm1732_vm6, %v1621_v52 }
 0x250   :  { %2676 = vrot.lane.b32.xlu0 %v7409_v18, %s3673_s21  ;;  %v1627_v13 = vpop.permute.xlu1 %1626 }
 0x251   :  { %1776 = vst.msk [vmem:[#allocation2 + $0x158] sm:$0xff] %vm1732_vm6, %v1627_v13  ;;  %v7416_v13 = vld [vmem:[#allocation72_spill] sm:$0xff] }
 0x252   :  { %v1625_v22 = vpop.permute.xlu0 %1624  ;;  %1887 = vrot.lane.b32.xlu1 %v7410_v10, %s3670_s18 }
 0x253   :  { %1775 = vst.msk [vmem:[#allocation2 + $0x150] sm:$0xff] %vm1732_vm6, %v1625_v22 }
 0x254   :  { %1885 = vrot.lane.b32.xlu0 %v7411_v14, %s3670_s18  ;;  %v1631_v36 = vpop.permute.xlu1 %1630 }
 0x255   :  { %1778 = vst.msk [vmem:[#allocation2 + $0x168] sm:$0xff] %vm1732_vm6, %v1631_v36 }
 0x256   :  { %v1629_v59 = vpop.permute.xlu0 %1628  ;;  %2184 = vrot.lane.b32.xlu1 %v4397_v57, %s3671_s19 }
 0x257   :  { %1777 = vst.msk [vmem:[#allocation2 + $0x160] sm:$0xff] %vm1732_vm6, %v1629_v59 }
 0x258   :  { %2182 = vrot.lane.b32.xlu0 %v7311_v40, %s3671_s19  ;;  %v1635_v12 = vpop.permute.xlu1 %1634 }
 0x259   :  { %1780 = vst.msk [vmem:[#allocation2 + $0x178] sm:$0xff] %vm1732_vm6, %v1635_v12 }
 0x25a   :  { %v1633_v46 = vpop.permute.xlu0 %1632  ;;  %2646 = vrot.lane.b32.xlu1 %v7412_v39, %s3673_s21 }
 0x25b   :  { %1779 = vst.msk [vmem:[#allocation2 + $0x170] sm:$0xff] %vm1732_vm6, %v1633_v46 }
 0x25c   :  { %2644 = vrot.lane.b32.xlu0 %v7413_v28, %s3673_s21  ;;  %v1852_v43 = vpop.permute.xlu1 %1851 }
 0x25d   :  { %2027 = vst.msk [vmem:[#allocation2 + $0x88] sm:$0xff] %vm2009_vm7, %v1852_v43 }
 0x25e   :  { %v1850_v57 = vpop.permute.xlu0 %1849  ;;  %2152 = vrot.lane.b32.xlu1 %v7286_v6, %s3671_s19 }
 0x25f   :  { %2026 = vst.msk [vmem:[#allocation2 + $0x80] sm:$0xff] %vm2009_vm7, %v1850_v57 }
 0x260   :  { %2150 = vrot.lane.b32.xlu0 %v4223_v23, %s3671_s19  ;;  %v1820_v40 = vpop.permute.xlu1 %1819 }
 0x261   :  { %2011 = vst.msk [vmem:[#allocation2 + $0x8] sm:$0xff] %vm2009_vm7, %v1820_v40 }
 0x262   :  { %v1818_v19 = vpop.permute.xlu0 %1817  ;;  %2465 = vrot.lane.b32.xlu1 %v7414_v63, %s3672_s20 }
 0x263   :  { %2010 = vst.msk [vmem:[#allocation2] sm:$0xff] %vm2009_vm7, %v1818_v19 }
 0x264   :  { %2463 = vrot.lane.b32.xlu0 %v7415_v31, %s3672_s20  ;;  %v2117_v30 = vpop.permute.xlu1 %2116 }
 0x265   :  { %2292 = vst.msk [vmem:[#allocation2 + $0x88] sm:$0xff] %vm2274_vm8, %v2117_v30 }
 0x266   :  { %v2115_v6 = vpop.permute.xlu0 %2114  ;;  %2433 = vrot.lane.b32.xlu1 %v7380_v9, %s3672_s20  ;;  %v7417_v9 = vld [vmem:[#allocation49_spill] sm:$0xff] }
 0x267   :  { %2291 = vst.msk [vmem:[#allocation2 + $0x80] sm:$0xff] %vm2274_vm8, %v2115_v6 }
 0x268   :  { %2431 = vrot.lane.b32.xlu0 %v7381_v0, %s3672_s20  ;;  %v1639_v23 = vpop.permute.xlu1 %1638  ;;  %v7418_v0 = vld [vmem:[#allocation52_spill] sm:$0xff] }
 0x269   :  { %1782 = vst.msk [vmem:[#allocation2 + $0x188] sm:$0xff] %vm1732_vm6, %v1639_v23 }
 0x26a   :  { %v1637_v52 = vpop.permute.xlu0 %1636  ;;  %2742 = vrot.lane.b32.xlu1 %v7416_v13, %s3673_s21 }
 0x26b   :  { %1781 = vst.msk [vmem:[#allocation2 + $0x180] sm:$0xff] %vm1732_vm6, %v1637_v52  ;;  %v7422_v52 = vld [vmem:[#allocation65_spill] sm:$0xff] }
 0x26c   :  { %2740 = vrot.lane.b32.xlu0 %v5241_v4, %s3673_s21  ;;  %v2085_v22 = vpop.permute.xlu1 %2084 }
 0x26d   :  { %2276 = vst.msk [vmem:[#allocation2 + $0x8] sm:$0xff] %vm2274_vm8, %v2085_v22 }
 0x26e   :  { %v2083_v10 = vpop.permute.xlu0 %2082  ;;  %2710 = vrot.lane.b32.xlu1 %v7417_v9, %s3673_s21 }
 0x26f   :  { %2275 = vst.msk [vmem:[#allocation2] sm:$0xff] %vm2274_vm8, %v2083_v10 }
 0x270   :  { %2708 = vrot.lane.b32.xlu0 %v7418_v0, %s3673_s21  ;;  %v2398_v14 = vpop.permute.xlu1 %2397 }
 0x271   :  { %2573 = vst.msk [vmem:[#allocation2 + $0x88] sm:$0xff] %vm2555_vm9, %v2398_v14 }
 0x272   :  { %v2396_v36 = vpop.permute.xlu0 %2395  ;;  %1859 = vrot.lane.b32.xlu1 %v7396_v2, %s3670_s18 }
 0x273   :  { %2572 = vst.msk [vmem:[#allocation2 + $0x80] sm:$0xff] %vm2555_vm9, %v2396_v36 }
 0x274   :  { %1857 = vrot.lane.b32.xlu0 %v7397_v37, %s3670_s18  ;;  %v1916_v59 = vpop.permute.xlu1 %1915 }
 0x275   :  { %2059 = vst.msk [vmem:[#allocation2 + $0x188] sm:$0xff] %vm2009_vm7, %v1916_v59 }
 0x276   :  { %v1914_v12 = vpop.permute.xlu0 %1913  ;;  %1827 = vrot.lane.b32.xlu1 %v7398_v29, %s3670_s18 }
 0x277   :  { %2058 = vst.msk [vmem:[#allocation2 + $0x180] sm:$0xff] %vm2009_vm7, %v1914_v12 }
 0x278   :  { %1825 = vrot.lane.b32.xlu0 %v7399_v44, %s3670_s18  ;;  %v2366_v46 = vpop.permute.xlu1 %2365 }
 0x279   :  { %2557 = vst.msk [vmem:[#allocation2 + $0x8] sm:$0xff] %vm2555_vm9, %v2366_v46 }
 0x27a   :  { %v2364_v43 = vpop.permute.xlu0 %2363  ;;  %2124 = vrot.lane.b32.xlu1 %v7330_v26, %s3671_s19 }
 0x27b   :  { %2556 = vst.msk [vmem:[#allocation2] sm:$0xff] %vm2555_vm9, %v2364_v43 }
 0x27c   :  { %2122 = vrot.lane.b32.xlu0 %v7331_v7, %s3671_s19  ;;  %v2675_v2 = vpop.permute.xlu1 %2674 }
 0x27d   :  { %2850 = vst.msk [vmem:[#allocation2 + $0x88] sm:$0xff] %vm2832_vm10, %v2675_v2 }
 0x27e   :  { %v2673_v37 = vpop.permute.xlu0 %2672  ;;  %1646 = vrot.lane.b32.xlu1 %v7400_v11, %s3669_s13 }
 0x27f   :  { %2849 = vst.msk [vmem:[#allocation2 + $0x80] sm:$0xff] %vm2832_vm10, %v2673_v37 }
 0x280   :  { %1644 = vrot.lane.b32.xlu0 %v7401_v35, %s3669_s13  ;;  %v1884_v29 = vpop.permute.xlu1 %1883 }
 0x281   :  { %2043 = vst.msk [vmem:[#allocation2 + $0x108] sm:$0xff] %vm2009_vm7, %v1884_v29 }
 0x282   :  { %v1882_v26 = vpop.permute.xlu0 %1881  ;;  %2092 = vrot.lane.b32.xlu1 %v7219_v17, %s3671_s19 }
 0x283   :  { %2042 = vst.msk [vmem:[#allocation2 + $0x100] sm:$0xff] %vm2009_vm7, %v1882_v26  ;;  %v7425_v26 = vld [vmem:[#allocation106_spill] sm:$0xff] }
 0x284   :  { %2090 = vrot.lane.b32.xlu0 %v7223_v27, %s3671_s19  ;;  %v2181_v7 = vpop.permute.xlu1 %2180  ;;  %v2916_v44 = vld [vmem:[#allocation2 + $0x88] sm:$0xff] }
 0x285   :  { %2324 = vst.msk [vmem:[#allocation2 + $0x188] sm:$0xff] %vm2274_vm8, %v2181_v7 }
 0x286   :  { %v2179_v11 = vpop.permute.xlu0 %2178  ;;  %v2915_v57 = vld [vmem:[#allocation2 + $0x80] sm:$0xff]  ;;  %2405 = vrot.lane.b32.xlu1 %v7366_v21, %s3672_s20 }
 0x287   :  { %2323 = vst.msk [vmem:[#allocation2 + $0x180] sm:$0xff] %vm2274_vm8, %v2179_v11  ;;  %v3552_v17 = vpack.c.bf16 %v2916_v44, %v2915_v57 }
 0x288   :  { %2403 = vrot.lane.b32.xlu0 %v7367_v34, %s3672_s20  ;;  %v2643_v27 = vpop.permute.xlu1 %2642 }
 0x289   :  { %3554 = vmatprep.subr.msk.bf16.mxu0 %vm5923_vm12, %v3552_v17  ;;  %2834 = vst.msk [vmem:[#allocation2 + $0x8] sm:$0xff] %vm2832_vm10, %v2643_v27 }
 0x28a   :  { %v2641_v40 = vpop.permute.xlu0 %2640  ;;  %1923 = vrot.lane.b32.xlu1 %v5219_v56, %s3670_s18 }
 0x28b   :  { %2833 = vst.msk [vmem:[#allocation2] sm:$0xff] %vm2832_vm10, %v2641_v40 }
 0x28c   :  { %1921 = vrot.lane.b32.xlu0 %v5225_v54, %s3670_s18  ;;  %v2149_v21 = vpop.permute.xlu1 %2148  ;;  %v7421_v54 = vld [vmem:[#allocation120_spill] sm:$0xff] }
 0x28d   :  { %2308 = vst.msk [vmem:[#allocation2 + $0x108] sm:$0xff] %vm2274_vm8, %v2149_v21 }
 0x28e   :  { %v2147_v19 = vpop.permute.xlu0 %2146  ;;  %2373 = vrot.lane.b32.xlu1 %v7348_v58, %s3672_s20 }
 0x28f   :  { %2307 = vst.msk [vmem:[#allocation2 + $0x100] sm:$0xff] %vm2274_vm8, %v2147_v19 }
 0x290   :  { %2371 = vrot.lane.b32.xlu0 %v7349_v53, %s3672_s20  ;;  %v2462_v34 = vpop.permute.xlu1 %2461  ;;  %v2900_v30 = vld [vmem:[#allocation2 + $0x8] sm:$0xff] }
 0x291   :  { %2605 = vst.msk [vmem:[#allocation2 + $0x188] sm:$0xff] %vm2555_vm9, %v2462_v34 }
 0x292   :  { %v2460_v56 = vpop.permute.xlu0 %2459  ;;  %v2899_v6 = vld [vmem:[#allocation2] sm:$0xff]  ;;  %2682 = vrot.lane.b32.xlu1 %v7421_v54, %s3673_s21 }
 0x293   :  { %2604 = vst.msk [vmem:[#allocation2 + $0x180] sm:$0xff] %vm2555_vm9, %v2460_v56  ;;  %v3555_v23 = vpack.c.bf16 %v2900_v30, %v2899_v6 }
 0x294   :  { %2680 = vrot.lane.b32.xlu0 %v7422_v52, %s3673_s21  ;;  %v2430_v58 = vpop.permute.xlu1 %2429 }
 0x295   :  { %3557 = vmatpush3.bf16.xpose.msk.msra.mxu0 %vm5923_vm12, %v3555_v23  ;;  %2589 = vst.msk [vmem:[#allocation2 + $0x108] sm:$0xff] %vm2555_vm9, %v2430_v58  ;;  %v7431_v58 = vld [vmem:[#allocation10_spill] sm:$0xff] }
 0x296   :  { %v2428_v53 = vpop.permute.xlu0 %2427  ;;  %1891 = vrot.lane.b32.xlu1 %v5091_v51, %s3670_s18  ;;  %v7423_v51 = vld [vmem:[#allocation8_spill] sm:$0xff] }
 0x297   :  { %2588 = vst.msk [vmem:[#allocation2 + $0x100] sm:$0xff] %vm2555_vm9, %v2428_v53  ;;  %v7432_v53 = vld [vmem:[#allocation12_spill] sm:$0xff] }
 0x298   :  { %1889 = vrot.lane.b32.xlu0 %v5097_v38, %s3670_s18  ;;  %v2739_v22 = vpop.permute.xlu1 %2738  ;;  %v7424_v38 = vld [vmem:[#allocation14_spill] sm:$0xff] }
 0x299   :  { %2882 = vst.msk [vmem:[#allocation2 + $0x188] sm:$0xff] %vm2832_vm10, %v2739_v22 }
 0x29a   :  { %v2737_v10 = vpop.permute.xlu0 %2736  ;;  %2188 = vrot.lane.b32.xlu1 %v4428_v50, %s3671_s19 }
 0x29b   :  { %2881 = vst.msk [vmem:[#allocation2 + $0x180] sm:$0xff] %vm2832_vm10, %v2737_v10 }
 0x29c   :  { %2186 = vrot.lane.b32.xlu0 %v4438_v16, %s3671_s19  ;;  %v2707_v14 = vpop.permute.xlu1 %2706 }
 0x29d   :  { %2866 = vst.msk [vmem:[#allocation2 + $0x108] sm:$0xff] %vm2832_vm10, %v2707_v14 }
 0x29e   :  { %v2705_v36 = vpop.permute.xlu0 %2704  ;;  %2650 = vrot.lane.b32.xlu1 %v7423_v51, %s3673_s21 }
 0x29f   :  { %2865 = vst.msk [vmem:[#allocation2 + $0x100] sm:$0xff] %vm2832_vm10, %v2705_v36 }
 0x2a0   :  { %2648 = vrot.lane.b32.xlu0 %v7424_v38, %s3673_s21  ;;  %v1856_v59 = vpop.permute.xlu1 %1855  ;;  %v2948_v12 = vld [vmem:[#allocation2 + $0x188] sm:$0xff] }
 0x2a1   :  { %2029 = vst.msk [vmem:[#allocation2 + $0x98] sm:$0xff] %vm2009_vm7, %v1856_v59 }
 0x2a2   :  { %v1854_v50 = vpop.permute.xlu0 %1853  ;;  %v2947_v46 = vld [vmem:[#allocation2 + $0x180] sm:$0xff]  ;;  %2156 = vrot.lane.b32.xlu1 %v4234_v47, %s3671_s19 }
 0x2a3   :  { %2028 = vst.msk [vmem:[#allocation2 + $0x90] sm:$0xff] %vm2009_vm7, %v1854_v50  ;;  %v3600_v16 = vpack.c.bf16 %v2948_v12, %v2947_v46  ;;  %v7426_v47 = vld [vmem:[#allocation107_spill] sm:$0xff] }
 0x2a4   :  { %2154 = vrot.lane.b32.xlu0 %v4241_v45, %s3671_s19  ;;  %v1824_v43 = vpop.permute.xlu1 %1823  ;;  %v2932_v2 = vld [vmem:[#allocation2 + $0x108] sm:$0xff] }
 0x2a5   :  { %3602 = vmatprep.subr.msk.bf16.mxu1 %vm5923_vm12, %v3600_v16  ;;  %2013 = vst.msk [vmem:[#allocation2 + $0x18] sm:$0xff] %vm2009_vm7, %v1824_v43  ;;  %v7435_v16 = vld [vmem:[#allocation42_spill] sm:$0xff] }
 0x2a6   :  { %v1822_v37 = vpop.permute.xlu0 %1821  ;;  %v2931_v29 = vld [vmem:[#allocation2 + $0x100] sm:$0xff]  ;;  %2469 = vrot.lane.b32.xlu1 %v7425_v26, %s3672_s20 }
 0x2a7   :  { %2012 = vst.msk [vmem:[#allocation2 + $0x10] sm:$0xff] %vm2009_vm7, %v1822_v37  ;;  %v3603_v7 = vpack.c.bf16 %v2932_v2, %v2931_v29 }
 0x2a8   :  { %2467 = vrot.lane.b32.xlu0 %v7426_v47, %s3672_s20  ;;  %v2121_v45 = vpop.permute.xlu1 %2120 }
 0x2a9   :  { %3605 = vmatpush3.bf16.xpose.msk.msra.mxu1 %vm5923_vm12, %v3603_v7  ;;  %2294 = vst.msk [vmem:[#allocation2 + $0x98] sm:$0xff] %vm2274_vm8, %v2121_v45  ;;  %v7437_v7 = vld [vmem:[#allocation122_spill] sm:$0xff] }
 0x2aa   :  { %v2119_v44 = vpop.permute.xlu0 %2118  ;;  %2437 = vrot.lane.b32.xlu1 %v7382_v33, %s3672_s20  ;;  %v7427_v33 = vld [vmem:[#allocation82_spill] sm:$0xff] }
 0x2ab   :  { %2293 = vst.msk [vmem:[#allocation2 + $0x90] sm:$0xff] %vm2274_vm8, %v2119_v44 }
 0x2ac   :  { %2435 = vrot.lane.b32.xlu0 %v7383_v25, %s3672_s20  ;;  %v1643_v11 = vpop.permute.xlu1 %1642  ;;  %v7428_v25 = vld [vmem:[#allocation125_spill] sm:$0xff] }
 0x2ad   :  { %1784 = vst.msk [vmem:[#allocation2 + $0x198] sm:$0xff] %vm1732_vm6, %v1643_v11 }
 0x2ae   :  { %v1641_v57 = vpop.permute.xlu0 %1640  ;;  %2746 = vrot.lane.b32.xlu1 %v5251_v8, %s3673_s21 }
 0x2af   :  { %1783 = vst.msk [vmem:[#allocation2 + $0x190] sm:$0xff] %vm1732_vm6, %v1641_v57 }
 0x2b0   :  { %2744 = vrot.lane.b32.xlu0 %v5257_v24, %s3673_s21  ;;  %v2089_v17 = vpop.permute.xlu1 %2088 }
 0x2b1   :  { %2278 = vst.msk [vmem:[#allocation2 + $0x18] sm:$0xff] %vm2274_vm8, %v2089_v17  ;;  %v7438_v17 = vld [vmem:[#allocation76_spill] sm:$0xff] }
 0x2b2   :  { %v2087_v27 = vpop.permute.xlu0 %2086  ;;  %2714 = vrot.lane.b32.xlu1 %v7427_v33, %s3673_s21 }
 0x2b3   :  { %2277 = vst.msk [vmem:[#allocation2 + $0x10] sm:$0xff] %vm2274_vm8, %v2087_v27  ;;  %v7439_v27 = vld [vmem:[#allocation78_spill] sm:$0xff] }
 0x2b4   :  { %2712 = vrot.lane.b32.xlu0 %v7428_v25, %s3673_s21  ;;  %v2402_v40 = vpop.permute.xlu1 %2401 }
 0x2b5   :  { %2575 = vst.msk [vmem:[#allocation2 + $0x98] sm:$0xff] %vm2555_vm9, %v2402_v40 }
 0x2b6   :  { %v2400_v21 = vpop.permute.xlu0 %2399  ;;  %1863 = vrot.lane.b32.xlu1 %v7408_v1, %s3670_s18  ;;  %v7429_v1 = vld [vmem:[#allocation40_spill] sm:$0xff] }
 0x2b7   :  { %2574 = vst.msk [vmem:[#allocation2 + $0x90] sm:$0xff] %vm2555_vm9, %v2400_v21 }
 0x2b8   :  { %1861 = vrot.lane.b32.xlu0 %v7409_v18, %s3670_s18  ;;  %v1920_v19 = vpop.permute.xlu1 %1919  ;;  %v7430_v18 = vld [vmem:[#allocation41_spill] sm:$0xff] }
 0x2b9   :  { %2061 = vst.msk [vmem:[#allocation2 + $0x198] sm:$0xff] %vm2009_vm7, %v1920_v19 }
 0x2ba   :  { %v1918_v34 = vpop.permute.xlu0 %1917  ;;  %1831 = vrot.lane.b32.xlu1 %v7412_v39, %s3670_s18 }
 0x2bb   :  { %2060 = vst.msk [vmem:[#allocation2 + $0x190] sm:$0xff] %vm2009_vm7, %v1918_v34 }
 0x2bc   :  { %1829 = vrot.lane.b32.xlu0 %v7413_v28, %s3670_s18  ;;  %v2370_v30 = vpop.permute.xlu1 %2369 }
 0x2bd   :  { %2559 = vst.msk [vmem:[#allocation2 + $0x18] sm:$0xff] %vm2555_vm9, %v2370_v30 }
 0x2be   :  { %v2368_v56 = vpop.permute.xlu0 %2367  ;;  %2128 = vrot.lane.b32.xlu1 %v7429_v1, %s3671_s19  ;;  %v7442_v1 = vld [vmem:[#allocation54_spill] sm:$0xff] }
 0x2bf   :  { %2558 = vst.msk [vmem:[#allocation2 + $0x10] sm:$0xff] %vm2555_vm9, %v2368_v56 }
 0x2c0   :  { %2126 = vrot.lane.b32.xlu0 %v7430_v18, %s3671_s19  ;;  %v2679_v6 = vpop.permute.xlu1 %2678 }
 0x2c1   :  { %2852 = vst.msk [vmem:[#allocation2 + $0x98] sm:$0xff] %vm2832_vm10, %v2679_v6  ;;  %v7443_v6 = vld [vmem:[#allocation56_spill] sm:$0xff] }
 0x2c2   :  { %v2677_v23 = vpop.permute.xlu0 %2676  ;;  %1650 = vrot.lane.b32.xlu1 %v7414_v63, %s3669_s13 }
 0x2c3   :  { %2851 = vst.msk [vmem:[#allocation2 + $0x90] sm:$0xff] %vm2832_vm10, %v2677_v23 }
 0x2c4   :  { %1648 = vrot.lane.b32.xlu0 %v7415_v31, %s3669_s13  ;;  %v1888_v39 = vpop.permute.xlu1 %1887  ;;  %v7433_v31 = vld [vmem:[#allocation77_spill] sm:$0xff] }
 0x2c5   :  { %2045 = vst.msk [vmem:[#allocation2 + $0x118] sm:$0xff] %vm2009_vm7, %v1888_v39 }
 0x2c6   :  { %v1886_v28 = vpop.permute.xlu0 %1885  ;;  %2096 = vrot.lane.b32.xlu1 %v7431_v58, %s3671_s19 }
 0x2c7   :  { %2044 = vst.msk [vmem:[#allocation2 + $0x110] sm:$0xff] %vm2009_vm7, %v1886_v28 }
 0x2c8   :  { %2094 = vrot.lane.b32.xlu0 %v7432_v53, %s3671_s19  ;;  %v2185_v22 = vpop.permute.xlu1 %2184  ;;  %v2918_v10 = vld [vmem:[#allocation2 + $0x98] sm:$0xff]  ;;  %v7444_v53 = vld [vmem:[#allocation108_spill] sm:$0xff] }
 0x2c9   :  { %2326 = vst.msk [vmem:[#allocation2 + $0x198] sm:$0xff] %vm2274_vm8, %v2185_v22 }
 0x2ca   :  { %v2183_v63 = vpop.permute.xlu0 %2182  ;;  %v2917_v14 = vld [vmem:[#allocation2 + $0x90] sm:$0xff]  ;;  %2409 = vrot.lane.b32.xlu1 %v7433_v31, %s3672_s20  ;;  %v7446_v31 = vld [vmem:[#allocation91_spill] sm:$0xff] }
 0x2cb   :  { %2325 = vst.msk [vmem:[#allocation2 + $0x190] sm:$0xff] %vm2274_vm8, %v2183_v63  ;;  %v3558_v36 = vpack.c.bf16 %v2918_v10, %v2917_v14  ;;  %v7445_v10 = vld [vmem:[#allocation109_spill] sm:$0xff] }
 0x2cc   :  { %2407 = vrot.lane.b32.xlu0 %v7369_v62, %s3672_s20  ;;  %v2647_v59 = vpop.permute.xlu1 %2646  ;;  %v7434_v62 = vld [vmem:[#allocation38_spill] sm:$0xff] }
 0x2cd   :  { %3560 = vmatprep.subr.msk.bf16.mxu0 %vm5923_vm12, %v3558_v36  ;;  %2836 = vst.msk [vmem:[#allocation2 + $0x18] sm:$0xff] %vm2832_vm10, %v2647_v59  ;;  %v7447_v36 = vld [vmem:[#allocation92_spill] sm:$0xff] }
 0x2ce   :  { %v2645_v12 = vpop.permute.xlu0 %2644  ;;  %1927 = vrot.lane.b32.xlu1 %v7416_v13, %s3670_s18 }
 0x2cf   :  { %2835 = vst.msk [vmem:[#allocation2 + $0x10] sm:$0xff] %vm2832_vm10, %v2645_v12 }
 0x2d0   :  { %1925 = vrot.lane.b32.xlu0 %v5241_v4, %s3670_s18  ;;  %v2153_v50 = vpop.permute.xlu1 %2152  ;;  %v7436_v4 = vld [vmem:[#allocation121_spill] sm:$0xff] }
 0x2d1   :  { %2310 = vst.msk [vmem:[#allocation2 + $0x118] sm:$0xff] %vm2274_vm8, %v2153_v50  ;;  %v7448_v50 = vld [vmem:[#allocation99_spill] sm:$0xff] }
 0x2d2   :  { %v2151_v46 = vpop.permute.xlu0 %2150  ;;  %2377 = vrot.lane.b32.xlu1 %v7434_v62, %s3672_s20 }
 0x2d3   :  { %2309 = vst.msk [vmem:[#allocation2 + $0x110] sm:$0xff] %vm2274_vm8, %v2151_v46  ;;  %v7449_v46 = vld [vmem:[#allocation74_spill] sm:$0xff] }
 0x2d4   :  { %2375 = vrot.lane.b32.xlu0 %v7435_v16, %s3672_s20  ;;  %v2466_v43 = vpop.permute.xlu1 %2465  ;;  %v2902_v2 = vld [vmem:[#allocation2 + $0x18] sm:$0xff] }
 0x2d5   :  { %2607 = vst.msk [vmem:[#allocation2 + $0x198] sm:$0xff] %vm2555_vm9, %v2466_v43  ;;  %v7450_v43 = vld [vmem:[#allocation126_spill] sm:$0xff] }
 0x2d6   :  { %v2464_v13 = vpop.permute.xlu0 %2463  ;;  %v2901_v37 = vld [vmem:[#allocation2 + $0x10] sm:$0xff]  ;;  %2686 = vrot.lane.b32.xlu1 %v7436_v4, %s3673_s21 }
 0x2d7   :  { %2606 = vst.msk [vmem:[#allocation2 + $0x190] sm:$0xff] %vm2555_vm9, %v2464_v13  ;;  %v3561_v29 = vpack.c.bf16 %v2902_v2, %v2901_v37  ;;  %v7451_v2 = vld [vmem:[#allocation127_spill] sm:$0xff] }
 0x2d8   :  { %2684 = vrot.lane.b32.xlu0 %v7437_v7, %s3673_s21  ;;  %v2434_v45 = vpop.permute.xlu1 %2433 }
 0x2d9   :  { %3563 = vmatpush3.bf16.xpose.msk.msra.mxu0 %vm5923_vm12, %v3561_v29  ;;  %2591 = vst.msk [vmem:[#allocation2 + $0x118] sm:$0xff] %vm2555_vm9, %v2434_v45 }
 0x2da   :  { %v2432_v44 = vpop.permute.xlu0 %2431  ;;  %1895 = vrot.lane.b32.xlu1 %v7417_v9, %s3670_s18  ;;  %v7440_v9 = vld [vmem:[#allocation9_spill] sm:$0xff] }
 0x2db   :  { %2590 = vst.msk [vmem:[#allocation2 + $0x110] sm:$0xff] %vm2555_vm9, %v2432_v44 }
 0x2dc   :  { %1893 = vrot.lane.b32.xlu0 %v7418_v0, %s3670_s18  ;;  %v2743_v11 = vpop.permute.xlu1 %2742  ;;  %v7441_v0 = vld [vmem:[#allocation19_spill] sm:$0xff] }
 0x2dd   :  { %2884 = vst.msk [vmem:[#allocation2 + $0x198] sm:$0xff] %vm2832_vm10, %v2743_v11 }
 0x2de   :  { %v2741_v57 = vpop.permute.xlu0 %2740  ;;  %2192 = vrot.lane.b32.xlu1 %v7438_v17, %s3671_s19 }
 0x2df   :  { %2883 = vst.msk [vmem:[#allocation2 + $0x190] sm:$0xff] %vm2832_vm10, %v2741_v57 }
 0x2e0   :  { %2190 = vrot.lane.b32.xlu0 %v7439_v27, %s3671_s19  ;;  %v2711_v40 = vpop.permute.xlu1 %2710  ;;  %v7454_v27 = vld [vmem:[#allocation15_spill] sm:$0xff] }
 0x2e1   :  { %2868 = vst.msk [vmem:[#allocation2 + $0x118] sm:$0xff] %vm2832_vm10, %v2711_v40  ;;  %v7455_v40 = vld [vmem:[#allocation16_spill] sm:$0xff] }
 0x2e2   :  { %v2709_v21 = vpop.permute.xlu0 %2708  ;;  %2654 = vrot.lane.b32.xlu1 %v7440_v9, %s3673_s21 }
 0x2e3   :  { %2867 = vst.msk [vmem:[#allocation2 + $0x110] sm:$0xff] %vm2832_vm10, %v2709_v21 }
 0x2e4   :  { %2652 = vrot.lane.b32.xlu0 %v7441_v0, %s3673_s21  ;;  %v1860_v19 = vpop.permute.xlu1 %1859  ;;  %v2950_v34 = vld [vmem:[#allocation2 + $0x198] sm:$0xff] }
 0x2e5   :  { %2031 = vst.msk [vmem:[#allocation2 + $0xa8] sm:$0xff] %vm2009_vm7, %v1860_v19 }
 0x2e6   :  { %v1858_v30 = vpop.permute.xlu0 %1857  ;;  %v2949_v56 = vld [vmem:[#allocation2 + $0x190] sm:$0xff]  ;;  %2160 = vrot.lane.b32.xlu1 %v7442_v1, %s3671_s19 }
 0x2e7   :  { %2030 = vst.msk [vmem:[#allocation2 + $0xa0] sm:$0xff] %vm2009_vm7, %v1858_v30  ;;  %v3606_v18 = vpack.c.bf16 %v2950_v34, %v2949_v56  ;;  %v7457_v56 = vld [vmem:[#allocation13_spill] sm:$0xff] }
 0x2e8   :  { %2158 = vrot.lane.b32.xlu0 %v7443_v6, %s3671_s19  ;;  %v1828_v23 = vpop.permute.xlu1 %1827  ;;  %v2934_v39 = vld [vmem:[#allocation2 + $0x118] sm:$0xff] }
 0x2e9   :  { %3608 = vmatprep.subr.msk.bf16.mxu1 %vm5923_vm12, %v3606_v18  ;;  %2015 = vst.msk [vmem:[#allocation2 + $0x28] sm:$0xff] %vm2009_vm7, %v1828_v23  ;;  %v7458_v23 = vld [vmem:[#allocation4_spill] sm:$0xff] }
 0x2ea   :  { %v1826_v28 = vpop.permute.xlu0 %1825  ;;  %v2933_v58 = vld [vmem:[#allocation2 + $0x110] sm:$0xff]  ;;  %2473 = vrot.lane.b32.xlu1 %v7444_v53, %s3672_s20 }
 0x2eb   :  { %2014 = vst.msk [vmem:[#allocation2 + $0x20] sm:$0xff] %vm2009_vm7, %v1826_v28  ;;  %v3609_v22 = vpack.c.bf16 %v2934_v39, %v2933_v58  ;;  %v7459_v39 = vmax.f32 %v7458_v23, 0.0 }
 0x2ec   :  { %2471 = vrot.lane.b32.xlu0 %v7445_v10, %s3672_s20  ;;  %v2125_v63 = vpop.permute.xlu1 %2124 }
 0x2ed   :  { %3611 = vmatpush3.bf16.xpose.msk.msra.mxu1 %vm5923_vm12, %v3609_v22  ;;  %2296 = vst.msk [vmem:[#allocation2 + $0xa8] sm:$0xff] %vm2274_vm8, %v2125_v63  ;;  %v1800_v28 = vrot.slane %v7459_v39, 4 }
 0x2ee   :  { %v2123_v14 = vpop.permute.xlu0 %2122  ;;  %2441 = vrot.lane.b32.xlu1 %v7446_v31, %s3672_s20 }
 0x2ef   :  { %2295 = vst.msk [vmem:[#allocation2 + $0xa0] sm:$0xff] %vm2274_vm8, %v2123_v14  ;;  %v7460_v14 = vld [vmem:[#allocation43_spill] sm:$0xff] }
 0x2f0   :  { %2439 = vrot.lane.b32.xlu0 %v7447_v36, %s3672_s20  ;;  %v1647_v59 = vpop.permute.xlu1 %1646 }
 0x2f1   :  { %1786 = vst.msk [vmem:[#allocation2 + $0x1a8] sm:$0xff] %vm1732_vm6, %v1647_v59 }
 0x2f2   :  { %v1645_v12 = vpop.permute.xlu0 %1644  ;;  %2750 = vrot.lane.b32.xlu1 %v7448_v50, %s3673_s21 }
 0x2f3   :  { %1785 = vst.msk [vmem:[#allocation2 + $0x1a0] sm:$0xff] %vm1732_vm6, %v1645_v12 }
 0x2f4   :  { %2748 = vrot.lane.b32.xlu0 %v7449_v46, %s3673_s21  ;;  %v2093_v62 = vpop.permute.xlu1 %2092 }
 0x2f5   :  { %2280 = vst.msk [vmem:[#allocation2 + $0x28] sm:$0xff] %vm2274_vm8, %v2093_v62 }
 0x2f6   :  { %v2091_v16 = vpop.permute.xlu0 %2090  ;;  %2718 = vrot.lane.b32.xlu1 %v7450_v43, %s3673_s21 }
 0x2f7   :  { %2279 = vst.msk [vmem:[#allocation2 + $0x20] sm:$0xff] %vm2274_vm8, %v2091_v16 }
 0x2f8   :  { %2716 = vrot.lane.b32.xlu0 %v7451_v2, %s3673_s21  ;;  %v2406_v13 = vpop.permute.xlu1 %2405 }
 0x2f9   :  { %2577 = vst.msk [vmem:[#allocation2 + $0xa8] sm:$0xff] %vm2555_vm9, %v2406_v13 }
 0x2fa   :  { %v2404_v37 = vpop.permute.xlu0 %2403  ;;  %1867 = vrot.lane.b32.xlu1 %v7421_v54, %s3670_s18  ;;  %v7452_v54 = vld [vmem:[#allocation29_spill] sm:$0xff] }
 0x2fb   :  { %2576 = vst.msk [vmem:[#allocation2 + $0xa0] sm:$0xff] %vm2555_vm9, %v2404_v37  ;;  %v1798_v6 = vrot.slane %v7452_v54, 4 }
 0x2fc   :  { %1865 = vrot.lane.b32.xlu0 %v7422_v52, %s3670_s18  ;;  %v1924_v29 = vpop.permute.xlu1 %1923  ;;  %v7453_v52 = vld [vmem:[#allocation30_spill] sm:$0xff] }
 0x2fd   :  { %2063 = vst.msk [vmem:[#allocation2 + $0x1a8] sm:$0xff] %vm2009_vm7, %v1924_v29  ;;  %v1797_v22 = vrot.slane %v7453_v52, 4 }
 0x2fe   :  { %v1922_v45 = vpop.permute.xlu0 %1921  ;;  %1835 = vrot.lane.b32.xlu1 %v7423_v51, %s3670_s18 }
 0x2ff   :  { %2062 = vst.msk [vmem:[#allocation2 + $0x1a0] sm:$0xff] %vm2009_vm7, %v1922_v45  ;;  %v6174_v36 = vsel %vm833_vm2, %v1797_v22, %v1798_v6  ;;  %v124_v45 = vld [vmem:[%s6766_s0 + $0x370] sm:$0xf] }
 0x300   :  { %1833 = vrot.lane.b32.xlu0 %v7424_v38, %s3670_s18  ;;  %v2374_v44 = vpop.permute.xlu1 %2373 }
 0x301   :  { %2561 = vst.msk [vmem:[#allocation2 + $0x28] sm:$0xff] %vm2555_vm9, %v2374_v44 }
 0x302   :  { %v2372_v11 = vpop.permute.xlu0 %2371  ;;  %2132 = vrot.lane.b32.xlu1 %v7452_v54, %s3671_s19  ;;  %v7463_v54 = vld [vmem:[#allocation37_spill] sm:$0xff] }
 0x303   :  { %2560 = vst.msk [vmem:[#allocation2 + $0x20] sm:$0xff] %vm2555_vm9, %v2372_v11  ;;  %v7462_v11 = vld [vmem:[#allocation36_spill] sm:$0xff] }
 0x304   :  { %2130 = vrot.lane.b32.xlu0 %v7453_v52, %s3671_s19  ;;  %v2683_v57 = vpop.permute.xlu1 %2682 }
 0x305   :  { %2854 = vst.msk [vmem:[#allocation2 + $0xa8] sm:$0xff] %vm2832_vm10, %v2683_v57  ;;  %v7464_v57 = vld [vmem:[#allocation28_spill] sm:$0xff] }
 0x306   :  { %v2681_v17 = vpop.permute.xlu0 %2680  ;;  %1654 = vrot.lane.b32.xlu1 %v7425_v26, %s3669_s13 }
 0x307   :  { %2853 = vst.msk [vmem:[#allocation2 + $0xa0] sm:$0xff] %vm2832_vm10, %v2681_v17  ;;  %v7465_v17 = vld [vmem:[#allocation35_spill] sm:$0xff] }
 0x308   :  { %1652 = vrot.lane.b32.xlu0 %v7426_v47, %s3669_s13  ;;  %v1892_v51 = vpop.permute.xlu1 %1891  ;;  %v7456_v47 = vld [vmem:[#allocation11_spill] sm:$0xff] }
 0x309   :  { %2047 = vst.msk [vmem:[#allocation2 + $0x128] sm:$0xff] %vm2009_vm7, %v1892_v51  ;;  %v1531_v51 = vrot.slane %v7462_v11, 2 }
 0x30a   :  { %v1890_v38 = vpop.permute.xlu0 %1889  ;;  %2100 = vrot.lane.b32.xlu1 %v7454_v27, %s3671_s19 }
 0x30b   :  { %2046 = vst.msk [vmem:[#allocation2 + $0x120] sm:$0xff] %vm2009_vm7, %v1890_v38 }
 0x30c   :  { %2098 = vrot.lane.b32.xlu0 %v7455_v40, %s3671_s19  ;;  %v2189_v21 = vpop.permute.xlu1 %2188  ;;  %v2920_v19 = vld [vmem:[#allocation2 + $0xa8] sm:$0xff] }
 0x30d   :  { %2328 = vst.msk [vmem:[#allocation2 + $0x1a8] sm:$0xff] %vm2274_vm8, %v2189_v21  ;;  %v1530_v21 = vrot.slane %v7463_v54, 2 }
 0x30e   :  { %v2187_v26 = vpop.permute.xlu0 %2186  ;;  %v2919_v34 = vld [vmem:[#allocation2 + $0xa0] sm:$0xff]  ;;  %2413 = vrot.lane.b32.xlu1 %v7456_v47, %s3672_s20 }
 0x30f   :  { %2327 = vst.msk [vmem:[#allocation2 + $0x1a0] sm:$0xff] %vm2274_vm8, %v2187_v26  ;;  %v3564_v30 = vpack.c.bf16 %v2920_v19, %v2919_v34  ;;  %v7466_v34 = vld [vmem:[#allocation59_spill] sm:$0xff] }
 0x310   :  { %2411 = vrot.lane.b32.xlu0 %v7457_v56, %s3672_s20  ;;  %v2651_v1 = vpop.permute.xlu1 %2650 }
 0x311   :  { %3566 = vmatprep.subr.msk.bf16.mxu0 %vm5923_vm12, %v3564_v30  ;;  %2838 = vst.msk [vmem:[#allocation2 + $0x28] sm:$0xff] %vm2832_vm10, %v2651_v1  ;;  %v7467_v30 = vld [vmem:[#allocation60_spill] sm:$0xff] }
 0x312   :  { %v2649_v18 = vpop.permute.xlu0 %2648  ;;  %1931 = vrot.lane.b32.xlu1 %v5251_v8, %s3670_s18  ;;  %v7461_v8 = vld [vmem:[#allocation44_spill] sm:$0xff] }
 0x313   :  { %2837 = vst.msk [vmem:[#allocation2 + $0x20] sm:$0xff] %vm2832_vm10, %v2649_v18  ;;  %v6219_v18 = vsel %vm415_vm0, %v1530_v21, %v1531_v51  ;;  %v7475_v21 = vld [vmem:[#allocation20_spill] sm:$0xff] }
 0x314   :  { %1929 = vrot.lane.b32.xlu0 %v5257_v24, %s3670_s18  ;;  %v2157_v58 = vpop.permute.xlu1 %2156  ;;  %v6171_v24 = vsel %vm833_vm2, %v1798_v6, %v1800_v28 }
 0x315   :  { %2312 = vst.msk [vmem:[#allocation2 + $0x128] sm:$0xff] %vm2274_vm8, %v2157_v58  ;;  %v1808_v58 = vrot.slane %v7462_v11, 4 }
 0x316   :  { %v2155_v63 = vpop.permute.xlu0 %2154  ;;  %2381 = vrot.lane.b32.xlu1 %v7460_v14, %s3672_s20  ;;  %v1807_v14 = vrot.slane %v7463_v54, 4 }
 0x317   :  { %2311 = vst.msk [vmem:[#allocation2 + $0x120] sm:$0xff] %vm2274_vm8, %v2155_v63 }
 0x318   :  { %2379 = vrot.lane.b32.xlu0 %v7461_v8, %s3672_s20  ;;  %v2470_v31 = vpop.permute.xlu1 %2469  ;;  %v2904_v59 = vld [vmem:[#allocation2 + $0x28] sm:$0xff] }
 0x319   :  { %2609 = vst.msk [vmem:[#allocation2 + $0x1a8] sm:$0xff] %vm2555_vm9, %v2470_v31  ;;  %v7468_v31 = vld [vmem:[#allocation93_spill] sm:$0xff] }
 0x31a   :  { %v2468_v12 = vpop.permute.xlu0 %2467  ;;  %v2903_v62 = vld [vmem:[#allocation2 + $0x20] sm:$0xff]  ;;  %2690 = vrot.lane.b32.xlu1 %v6171_v24, %s3673_s21 }
 0x31b   :  { %2608 = vst.msk [vmem:[#allocation2 + $0x1a0] sm:$0xff] %vm2555_vm9, %v2468_v12  ;;  %v3567_v16 = vpack.c.bf16 %v2904_v59, %v2903_v62  ;;  %v7469_v59 = vld [vmem:[#allocation94_spill] sm:$0xff] }
 0x31c   :  { %2688 = vrot.lane.b32.xlu0 %v6174_v36, %s3673_s21  ;;  %v2438_v13 = vpop.permute.xlu1 %2437 }
 0x31d   :  { %3569 = vmatpush3.bf16.xpose.msk.msra.mxu0 %vm5923_vm12, %v3567_v16  ;;  %2593 = vst.msk [vmem:[#allocation2 + $0x128] sm:$0xff] %vm2555_vm9, %v2438_v13  ;;  %v6241_v16 = vsel %vm833_vm2, %v1807_v14, %v1808_v58 }
 0x31e   :  { %v2436_v37 = vpop.permute.xlu0 %2435  ;;  %1899 = vrot.lane.b32.xlu1 %v7427_v33, %s3670_s18  ;;  %v244_v33 = vmax.f32 %v124_v45, 0.0  ;;  %v7470_v45 = vld [vmem:[#allocation128_spill] sm:$0xff] }
 0x31f   :  { %2592 = vst.msk [vmem:[#allocation2 + $0x120] sm:$0xff] %vm2555_vm9, %v2436_v37 }
 0x320   :  { %1897 = vrot.lane.b32.xlu0 %v7428_v25, %s3670_s18  ;;  %v2747_v29 = vpop.permute.xlu1 %2746  ;;  %v1533_v38 = vrot.slane %v244_v33, 2  ;;  %v1810_v22 = vrot.slane %v244_v33, 4 }
 0x321   :  { %2886 = vst.msk [vmem:[#allocation2 + $0x1a8] sm:$0xff] %vm2832_vm10, %v2747_v29 }
 0x322   :  { %v2745_v44 = vpop.permute.xlu0 %2744  ;;  %2196 = vrot.lane.b32.xlu1 %v7462_v11, %s3671_s19  ;;  %v6214_v56 = vsel %vm415_vm0, %v1531_v51, %v1533_v38  ;;  %v6238_v12 = vsel %vm833_vm2, %v1808_v58, %v1810_v22 }
 0x323   :  { %2885 = vst.msk [vmem:[#allocation2 + $0x1a0] sm:$0xff] %vm2832_vm10, %v2745_v44  ;;  %v7471_v44 = vld [vmem:[#allocation129_spill] sm:$0xff] }
 0x324   :  { %2194 = vrot.lane.b32.xlu0 %v7463_v54, %s3671_s19  ;;  %v2715_v52 = vpop.permute.xlu1 %2714 }
 0x325   :  { %2870 = vst.msk [vmem:[#allocation2 + $0x128] sm:$0xff] %vm2832_vm10, %v2715_v52 }
 0x326   :  { %v2713_v25 = vpop.permute.xlu0 %2712  ;;  %2658 = vrot.lane.b32.xlu1 %v7464_v57, %s3673_s21 }
 0x327   :  { %2869 = vst.msk [vmem:[#allocation2 + $0x120] sm:$0xff] %vm2832_vm10, %v2713_v25 }
 0x328   :  { %2656 = vrot.lane.b32.xlu0 %v7465_v17, %s3673_s21  ;;  %v1864_v27 = vpop.permute.xlu1 %1863  ;;  %v2952_v40 = vld [vmem:[#allocation2 + $0x1a8] sm:$0xff] }
 0x329   :  { %2033 = vst.msk [vmem:[#allocation2 + $0xb8] sm:$0xff] %vm2009_vm7, %v1864_v27 }
 0x32a   :  { %v1862_v19 = vpop.permute.xlu0 %1861  ;;  %v2951_v26 = vld [vmem:[#allocation2 + $0x1a0] sm:$0xff]  ;;  %2164 = vrot.lane.b32.xlu1 %v7466_v34, %s3671_s19 }
 0x32b   :  { %2032 = vst.msk [vmem:[#allocation2 + $0xb0] sm:$0xff] %vm2009_vm7, %v1862_v19  ;;  %v3612_v47 = vpack.c.bf16 %v2952_v40, %v2951_v26  ;;  %v7474_v40 = vld [vmem:[#allocation17_spill] sm:$0xff] }
 0x32c   :  { %2162 = vrot.lane.b32.xlu0 %v7467_v30, %s3671_s19  ;;  %v1832_v1 = vpop.permute.xlu1 %1831  ;;  %v2936_v6 = vld [vmem:[#allocation2 + $0x128] sm:$0xff]  ;;  %v7477_v30 = vld [vmem:[#allocation21_spill] sm:$0xff] }
 0x32d   :  { %3614 = vmatprep.subr.msk.bf16.mxu1 %vm5923_vm12, %v3612_v47  ;;  %2017 = vst.msk [vmem:[#allocation2 + $0x38] sm:$0xff] %vm2009_vm7, %v1832_v1 }
 0x32e   :  { %v1830_v23 = vpop.permute.xlu0 %1829  ;;  %v2935_v39 = vld [vmem:[#allocation2 + $0x120] sm:$0xff]  ;;  %2477 = vrot.lane.b32.xlu1 %v6214_v56, %s3672_s20 }
 0x32f   :  { %2016 = vst.msk [vmem:[#allocation2 + $0x30] sm:$0xff] %vm2009_vm7, %v1830_v23  ;;  %v3615_v28 = vpack.c.bf16 %v2936_v6, %v2935_v39  ;;  %v7478_v39 = vld [vmem:[#allocation6_spill] sm:$0xff] }
 0x330   :  { %2475 = vrot.lane.b32.xlu0 %v6219_v18, %s3672_s20  ;;  %v2129_v63 = vpop.permute.xlu1 %2128 }
 0x331   :  { %3617 = vmatpush3.bf16.xpose.msk.msra.mxu1 %vm5923_vm12, %v3615_v28  ;;  %2298 = vst.msk [vmem:[#allocation2 + $0xb8] sm:$0xff] %vm2274_vm8, %v2129_v63  ;;  %v7479_v28 = vmax.f32 %v7478_v39, 0.0 }
 0x332   :  { %v2127_v8 = vpop.permute.xlu0 %2126  ;;  %2445 = vrot.lane.b32.xlu1 %v7468_v31, %s3672_s20 }
 0x333   :  { %2297 = vst.msk [vmem:[#allocation2 + $0xb0] sm:$0xff] %vm2274_vm8, %v2127_v8  ;;  %v1805_v58 = vrot.slane %v7479_v28, 4  ;;  %v7480_v8 = vld [vmem:[#allocation46_spill] sm:$0xff] }
 0x334   :  { %2443 = vrot.lane.b32.xlu0 %v7469_v59, %s3672_s20  ;;  %v1651_v62 = vpop.permute.xlu1 %1650 }
 0x335   :  { %1788 = vst.msk [vmem:[#allocation2 + $0x1b8] sm:$0xff] %vm1732_vm6, %v1651_v62 }
 0x336   :  { %v1649_v13 = vpop.permute.xlu0 %1648  ;;  %2754 = vrot.lane.b32.xlu1 %v6238_v12, %s3673_s21 }
 0x337   :  { %1787 = vst.msk [vmem:[#allocation2 + $0x1b0] sm:$0xff] %vm1732_vm6, %v1649_v13 }
 0x338   :  { %2752 = vrot.lane.b32.xlu0 %v6241_v16, %s3673_s21  ;;  %v2097_v37 = vpop.permute.xlu1 %2096 }
 0x339   :  { %2282 = vst.msk [vmem:[#allocation2 + $0x38] sm:$0xff] %vm2274_vm8, %v2097_v37 }
 0x33a   :  { %v2095_v29 = vpop.permute.xlu0 %2094  ;;  %2722 = vrot.lane.b32.xlu1 %v7470_v45, %s3673_s21 }
 0x33b   :  { %2281 = vst.msk [vmem:[#allocation2 + $0x30] sm:$0xff] %vm2274_vm8, %v2095_v29 }
 0x33c   :  { %2720 = vrot.lane.b32.xlu0 %v7471_v44, %s3673_s21  ;;  %v2410_v11 = vpop.permute.xlu1 %2409 }
 0x33d   :  { %2579 = vst.msk [vmem:[#allocation2 + $0xb8] sm:$0xff] %vm2555_vm9, %v2410_v11 }
 0x33e   :  { %v2408_v54 = vpop.permute.xlu0 %2407  ;;  %1871 = vrot.lane.b32.xlu1 %v7436_v4, %s3670_s18  ;;  %v7472_v4 = vld [vmem:[#allocation31_spill] sm:$0xff] }
 0x33f   :  { %2578 = vst.msk [vmem:[#allocation2 + $0xb0] sm:$0xff] %vm2555_vm9, %v2408_v54  ;;  %v1803_v23 = vrot.slane %v7472_v4, 4 }
 0x340   :  { %1869 = vrot.lane.b32.xlu0 %v7437_v7, %s3670_s18  ;;  %v1928_v33 = vpop.permute.xlu1 %1927  ;;  %v7473_v7 = vld [vmem:[#allocation33_spill] sm:$0xff] }
 0x341   :  { %2065 = vst.msk [vmem:[#allocation2 + $0x1b8] sm:$0xff] %vm2009_vm7, %v1928_v33  ;;  %v1802_v63 = vrot.slane %v7473_v7, 4 }
 0x342   :  { %v1926_v52 = vpop.permute.xlu0 %1925  ;;  %1839 = vrot.lane.b32.xlu1 %v7440_v9, %s3670_s18 }
 0x343   :  { %2064 = vst.msk [vmem:[#allocation2 + $0x1b0] sm:$0xff] %vm2009_vm7, %v1926_v52  ;;  %v6313_v59 = vsel %vm833_vm2, %v1802_v63, %v1803_v23  ;;  %v127_v52 = vld [vmem:[%s6766_s0 + $0x388] sm:$0xf] }
 0x344   :  { %1837 = vrot.lane.b32.xlu0 %v7441_v0, %s3670_s18  ;;  %v2378_v25 = vpop.permute.xlu1 %2377 }
 0x345   :  { %2563 = vst.msk [vmem:[#allocation2 + $0x38] sm:$0xff] %vm2555_vm9, %v2378_v25 }
 0x346   :  { %v2376_v51 = vpop.permute.xlu0 %2375  ;;  %2136 = vrot.lane.b32.xlu1 %v7472_v4, %s3671_s19  ;;  %v7483_v4 = vld [vmem:[#allocation133_spill] sm:$0xff] }
 0x347   :  { %2562 = vst.msk [vmem:[#allocation2 + $0x30] sm:$0xff] %vm2555_vm9, %v2376_v51  ;;  %v7482_v51 = vld [vmem:[#allocation132_spill] sm:$0xff] }
 0x348   :  { %2134 = vrot.lane.b32.xlu0 %v7473_v7, %s3671_s19  ;;  %v2687_v38 = vpop.permute.xlu1 %2686 }
 0x349   :  { %2856 = vst.msk [vmem:[#allocation2 + $0xb8] sm:$0xff] %vm2832_vm10, %v2687_v38  ;;  %v7484_v38 = vld [vmem:[#allocation115_spill] sm:$0xff] }
 0x34a   :  { %v2685_v27 = vpop.permute.xlu0 %2684  ;;  %1658 = vrot.lane.b32.xlu1 %v7444_v53, %s3669_s13 }
 0x34b   :  { %2855 = vst.msk [vmem:[#allocation2 + $0xb0] sm:$0xff] %vm2832_vm10, %v2685_v27  ;;  %v7485_v27 = vld [vmem:[#allocation39_spill] sm:$0xff] }
 0x34c   :  { %1656 = vrot.lane.b32.xlu0 %v7445_v10, %s3669_s13  ;;  %v1896_v9 = vpop.permute.xlu1 %1895  ;;  %v7476_v10 = vld [vmem:[#allocation18_spill] sm:$0xff] }
 0x34d   :  { %2049 = vst.msk [vmem:[#allocation2 + $0x138] sm:$0xff] %vm2009_vm7, %v1896_v9  ;;  %v1536_v9 = vrot.slane %v7482_v51, 2 }
 0x34e   :  { %v1894_v0 = vpop.permute.xlu0 %1893  ;;  %2104 = vrot.lane.b32.xlu1 %v7474_v40, %s3671_s19 }
 0x34f   :  { %2048 = vst.msk [vmem:[#allocation2 + $0x130] sm:$0xff] %vm2009_vm7, %v1894_v0 }
 0x350   :  { %2102 = vrot.lane.b32.xlu0 %v7475_v21, %s3671_s19  ;;  %v2193_v19 = vpop.permute.xlu1 %2192  ;;  %v2922_v26 = vld [vmem:[#allocation2 + $0xb8] sm:$0xff] }
 0x351   :  { %2330 = vst.msk [vmem:[#allocation2 + $0x1b8] sm:$0xff] %vm2274_vm8, %v2193_v19  ;;  %v1535_v19 = vrot.slane %v7483_v4, 2 }
 0x352   :  { %v2191_v53 = vpop.permute.xlu0 %2190  ;;  %v2921_v34 = vld [vmem:[#allocation2 + $0xb0] sm:$0xff]  ;;  %2417 = vrot.lane.b32.xlu1 %v7476_v10, %s3672_s20 }
 0x353   :  { %2329 = vst.msk [vmem:[#allocation2 + $0x1b0] sm:$0xff] %vm2274_vm8, %v2191_v53  ;;  %v3570_v47 = vpack.c.bf16 %v2922_v26, %v2921_v34  ;;  %v7486_v34 = vld [vmem:[#allocation61_spill] sm:$0xff] }
 0x354   :  { %2415 = vrot.lane.b32.xlu0 %v7477_v30, %s3672_s20  ;;  %v2655_v1 = vpop.permute.xlu1 %2654 }
 0x355   :  { %3572 = vmatprep.subr.msk.bf16.mxu0 %vm5923_vm12, %v3570_v47  ;;  %2840 = vst.msk [vmem:[#allocation2 + $0x38] sm:$0xff] %vm2832_vm10, %v2655_v1  ;;  %v7487_v47 = vld [vmem:[#allocation63_spill] sm:$0xff] }
 0x356   :  { %v2653_v6 = vpop.permute.xlu0 %2652  ;;  %1935 = vrot.lane.b32.xlu1 %v7448_v50, %s3670_s18  ;;  %v7481_v50 = vld [vmem:[#allocation47_spill] sm:$0xff] }
 0x357   :  { %2839 = vst.msk [vmem:[#allocation2 + $0x30] sm:$0xff] %vm2832_vm10, %v2653_v6  ;;  %v6358_v6 = vsel %vm415_vm0, %v1535_v19, %v1536_v9 }
 0x358   :  { %1933 = vrot.lane.b32.xlu0 %v7449_v46, %s3670_s18  ;;  %v2161_v22 = vpop.permute.xlu1 %2160  ;;  %v6310_v46 = vsel %vm833_vm2, %v1803_v23, %v1805_v58 }
 0x359   :  { %2314 = vst.msk [vmem:[#allocation2 + $0x138] sm:$0xff] %vm2274_vm8, %v2161_v22  ;;  %v1813_v22 = vrot.slane %v7482_v51, 4 }
 0x35a   :  { %v2159_v14 = vpop.permute.xlu0 %2158  ;;  %2385 = vrot.lane.b32.xlu1 %v7480_v8, %s3672_s20  ;;  %v1812_v8 = vrot.slane %v7483_v4, 4 }
 0x35b   :  { %2313 = vst.msk [vmem:[#allocation2 + $0x130] sm:$0xff] %vm2274_vm8, %v2159_v14 }
 0x35c   :  { %2383 = vrot.lane.b32.xlu0 %v7481_v50, %s3672_s20  ;;  %v2474_v31 = vpop.permute.xlu1 %2473  ;;  %v2906_v62 = vld [vmem:[#allocation2 + $0x38] sm:$0xff] }
 0x35d   :  { %2611 = vst.msk [vmem:[#allocation2 + $0x1b8] sm:$0xff] %vm2555_vm9, %v2474_v31  ;;  %v7488_v31 = vld [vmem:[#allocation95_spill] sm:$0xff] }
 0x35e   :  { %v2472_v13 = vpop.permute.xlu0 %2471  ;;  %v2905_v37 = vld [vmem:[#allocation2 + $0x30] sm:$0xff]  ;;  %2694 = vrot.lane.b32.xlu1 %v6310_v46, %s3673_s21 }
 0x35f   :  { %2610 = vst.msk [vmem:[#allocation2 + $0x1b0] sm:$0xff] %vm2555_vm9, %v2472_v13  ;;  %v3573_v29 = vpack.c.bf16 %v2906_v62, %v2905_v37  ;;  %v7489_v62 = vld [vmem:[#allocation96_spill] sm:$0xff] }
 0x360   :  { %2692 = vrot.lane.b32.xlu0 %v6313_v59, %s3673_s21  ;;  %v2442_v11 = vpop.permute.xlu1 %2441 }
 0x361   :  { %3575 = vmatpush3.bf16.xpose.msk.msra.mxu0 %vm5923_vm12, %v3573_v29  ;;  %2595 = vst.msk [vmem:[#allocation2 + $0x138] sm:$0xff] %vm2555_vm9, %v2442_v11  ;;  %v6380_v29 = vsel %vm833_vm2, %v1812_v8, %v1813_v22 }
 0x362   :  { %v2440_v54 = vpop.permute.xlu0 %2439  ;;  %1903 = vrot.lane.b32.xlu1 %v7450_v43, %s3670_s18  ;;  %v247_v43 = vmax.f32 %v127_v52, 0.0  ;;  %v7490_v52 = vld [vmem:[#allocation130_spill] sm:$0xff] }
 0x363   :  { %2594 = vst.msk [vmem:[#allocation2 + $0x130] sm:$0xff] %vm2555_vm9, %v2440_v54 }
 0x364   :  { %1901 = vrot.lane.b32.xlu0 %v7451_v2, %s3670_s18  ;;  %v2751_v33 = vpop.permute.xlu1 %2750  ;;  %v1538_v0 = vrot.slane %v247_v43, 2  ;;  %v1815_v63 = vrot.slane %v247_v43, 4  ;;  %v69_v43 = vld [vmem:[%s6766_s0 + $0x1b8] sm:$0xff] }
 0x365   :  { %2888 = vst.msk [vmem:[#allocation2 + $0x1b8] sm:$0xff] %vm2832_vm10, %v2751_v33 }
 0x366   :  { %v2749_v25 = vpop.permute.xlu0 %2748  ;;  %2200 = vrot.lane.b32.xlu1 %v7482_v51, %s3671_s19  ;;  %v6353_v30 = vsel %vm415_vm0, %v1536_v9, %v1538_v0  ;;  %v6377_v13 = vsel %vm833_vm2, %v1813_v22, %v1815_v63 }
 0x367   :  { %2887 = vst.msk [vmem:[#allocation2 + $0x1b0] sm:$0xff] %vm2832_vm10, %v2749_v25  ;;  %v7491_v25 = vld [vmem:[#allocation131_spill] sm:$0xff] }
 0x368   :  { %2198 = vrot.lane.b32.xlu0 %v7483_v4, %s3671_s19  ;;  %v2719_v7 = vpop.permute.xlu1 %2718 }
 0x369   :  { %2872 = vst.msk [vmem:[#allocation2 + $0x138] sm:$0xff] %vm2832_vm10, %v2719_v7 }
 0x36a   :  { %v2717_v2 = vpop.permute.xlu0 %2716  ;;  %2662 = vrot.lane.b32.xlu1 %v7484_v38, %s3673_s21 }
 0x36b   :  { %2871 = vst.msk [vmem:[#allocation2 + $0x130] sm:$0xff] %vm2832_vm10, %v2717_v2  ;;  %v68_v2 = vld [vmem:[%s6766_s0 + $0x1b0] sm:$0xff] }
 0x36c   :  { %2660 = vrot.lane.b32.xlu0 %v7485_v27, %s3673_s21  ;;  %v1868_v40 = vpop.permute.xlu1 %1867  ;;  %v2954_v21 = vld [vmem:[#allocation2 + $0x1b8] sm:$0xff] }
 0x36d   :  { %2035 = vst.msk [vmem:[#allocation2 + $0xc8] sm:$0xff] %vm2009_vm7, %v1868_v40  ;;  %v70_v40 = vld [vmem:[%s6766_s0 + $0x1c0] sm:$0xf] }
 0x36e   :  { %v1866_v26 = vpop.permute.xlu0 %1865  ;;  %v2953_v53 = vld [vmem:[#allocation2 + $0x1b0] sm:$0xff]  ;;  %2168 = vrot.lane.b32.xlu1 %v7486_v34, %s3671_s19 }
 0x36f   :  { %2034 = vst.msk [vmem:[#allocation2 + $0xc0] sm:$0xff] %vm2009_vm7, %v1866_v26  ;;  %v3618_v10 = vpack.c.bf16 %v2954_v21, %v2953_v53 }
 0x370   :  { %2166 = vrot.lane.b32.xlu0 %v7487_v47, %s3671_s19  ;;  %v1836_v1 = vpop.permute.xlu1 %1835  ;;  %v2938_v23 = vld [vmem:[#allocation2 + $0x138] sm:$0xff] }
 0x371   :  { %3620 = vmatprep.subr.msk.bf16.mxu1 %vm5923_vm12, %v3618_v10  ;;  %2019 = vst.msk [vmem:[#allocation2 + $0x48] sm:$0xff] %vm2009_vm7, %v1836_v1  ;;  %v7492_v1 = vld [vmem:[#allocation22_spill] sm:$0xff] }
 0x372   :  { %v1834_v39 = vpop.permute.xlu0 %1833  ;;  %v2937_v28 = vld [vmem:[#allocation2 + $0x130] sm:$0xff]  ;;  %2481 = vrot.lane.b32.xlu1 %v6353_v30, %s3672_s20 }
 0x373   :  { %2018 = vst.msk [vmem:[#allocation2 + $0x40] sm:$0xff] %vm2009_vm7, %v1834_v39  ;;  %v3621_v58 = vpack.c.bf16 %v2938_v23, %v2937_v28  ;;  %v7493_v23 = vld [vmem:[#allocation23_spill] sm:$0xff] }
 0x374   :  { %2479 = vrot.lane.b32.xlu0 %v6358_v6, %s3672_s20  ;;  %v2133_v14 = vpop.permute.xlu1 %2132 }
 0x375   :  { %3623 = vmatpush3.bf16.xpose.msk.msra.mxu1 %vm5923_vm12, %v3621_v58  ;;  %2300 = vst.msk [vmem:[#allocation2 + $0xc8] sm:$0xff] %vm2274_vm8, %v2133_v14 }
 0x376   :  { %v2131_v50 = vpop.permute.xlu0 %2130  ;;  %2449 = vrot.lane.b32.xlu1 %v7488_v31, %s3672_s20 }
 0x377   :  { %2299 = vst.msk [vmem:[#allocation2 + $0xc0] sm:$0xff] %vm2274_vm8, %v2131_v50 }
 0x378   :  { %2447 = vrot.lane.b32.xlu0 %v7489_v62, %s3672_s20  ;;  %v1655_v37 = vpop.permute.xlu1 %1654 }
 0x379   :  { %1790 = vst.msk [vmem:[#allocation2 + $0x1c8] sm:$0xff] %vm1732_vm6, %v1655_v37 }
 0x37a   :  { %v1653_v11 = vpop.permute.xlu0 %1652  ;;  %2758 = vrot.lane.b32.xlu1 %v6377_v13, %s3673_s21 }
 0x37b   :  { %1789 = vst.msk [vmem:[#allocation2 + $0x1c0] sm:$0xff] %vm1732_vm6, %v1653_v11 }
 0x37c   :  { %2756 = vrot.lane.b32.xlu0 %v6380_v29, %s3673_s21  ;;  %v2101_v54 = vpop.permute.xlu1 %2100 }
 0x37d   :  { %2284 = vst.msk [vmem:[#allocation2 + $0x48] sm:$0xff] %vm2274_vm8, %v2101_v54  ;;  %v7494_v54 = vld [vmem:[#allocation50_spill] sm:$0xff] }
 0x37e   :  { %v2099_v33 = vpop.permute.xlu0 %2098  ;;  %2726 = vrot.lane.b32.xlu1 %v7490_v52, %s3673_s21 }
 0x37f   :  { %2283 = vst.msk [vmem:[#allocation2 + $0x40] sm:$0xff] %vm2274_vm8, %v2099_v33  ;;  %v7495_v33 = vld [vmem:[#allocation53_spill] sm:$0xff] }
 0x380   :  { %2724 = vrot.lane.b32.xlu0 %v7491_v25, %s3673_s21  ;;  %v2414_v51 = vpop.permute.xlu1 %2413 }
 0x381   :  { %2581 = vst.msk [vmem:[#allocation2 + $0xc8] sm:$0xff] %vm2555_vm9, %v2414_v51 }
 0x382   :  { %v2412_v4 = vpop.permute.xlu0 %2411  ;;  %1875 = vrot.lane.b32.xlu1 %v6171_v24, %s3670_s18  ;;  %v189_v24 = vmax.f32 %v69_v43, 0.0 }
 0x383   :  { %2580 = vst.msk [vmem:[#allocation2 + $0xc0] sm:$0xff] %vm2555_vm9, %v2412_v4 }
 0x384   :  { %1873 = vrot.lane.b32.xlu0 %v6174_v36, %s3670_s18  ;;  %v1932_v7 = vpop.permute.xlu1 %1931  ;;  %v188_v36 = vmax.f32 %v68_v2, 0.0  ;;  %v2344_v26 = vrot.slane %v189_v24, 2  ;;  %v2621_v50 = vrot.slane %v189_v24, 4 }
 0x385   :  { %2067 = vst.msk [vmem:[#allocation2 + $0x1c8] sm:$0xff] %vm2009_vm7, %v1932_v7 }
 0x386   :  { %v1930_v9 = vpop.permute.xlu0 %1929  ;;  %1843 = vrot.lane.b32.xlu1 %v7464_v57, %s3670_s18  ;;  %v190_v57 = vmax.f32 %v70_v40, 0.0  ;;  %v2343_v10 = vrot.slane %v188_v36, 2  ;;  %v2620_v37 = vrot.slane %v188_v36, 4 }
 0x387   :  { %2066 = vst.msk [vmem:[#allocation2 + $0x1c0] sm:$0xff] %vm2009_vm7, %v1930_v9  ;;  %v129_v9 = vld [vmem:[%s6766_s0 + $0x398] sm:$0xff] }
 0x388   :  { %1841 = vrot.lane.b32.xlu0 %v7465_v17, %s3670_s18  ;;  %v2382_v0 = vpop.permute.xlu1 %2381  ;;  %v2346_v53 = vrot.slane %v190_v57, 2  ;;  %v2623_v31 = vrot.slane %v190_v57, 4  ;;  %v249_v40 = vmax.f32 %v129_v9, 0.0  ;;  %v73_v9 = vld [vmem:[%s6766_s0 + $0x1d8] sm:$0xf] }
 0x389   :  { %2565 = vst.msk [vmem:[#allocation2 + $0x48] sm:$0xff] %vm2555_vm9, %v2382_v0 }
 0x38a   :  { %v2380_v21 = vpop.permute.xlu0 %2379  ;;  %2140 = vrot.lane.b32.xlu1 %v189_v24, %s3671_s19 }
 0x38b   :  { %2564 = vst.msk [vmem:[#allocation2 + $0x40] sm:$0xff] %vm2555_vm9, %v2380_v21 }
 0x38c   :  { %2138 = vrot.lane.b32.xlu0 %v188_v36, %s3671_s19  ;;  %v2691_v19 = vpop.permute.xlu1 %2690  ;;  %v128_v36 = vld [vmem:[%s6766_s0 + $0x390] sm:$0xff] }
 0x38d   :  { %2858 = vst.msk [vmem:[#allocation2 + $0xc8] sm:$0xff] %vm2832_vm10, %v2691_v19  ;;  %v248_v21 = vmax.f32 %v128_v36, 0.0  ;;  %v130_v19 = vld [vmem:[%s6766_s0 + $0x3a0] sm:$0xf] }
 0x38e   :  { %v2689_v17 = vpop.permute.xlu0 %2688  ;;  %1662 = vrot.lane.b32.xlu1 %v6214_v56, %s3669_s13  ;;  %v2347_v56 = vsel %vm415_vm0, %v2344_v26, %v2346_v53  ;;  %v2354_v53 = vrot.slane %v249_v40, 2 }
 0x38f   :  { %2857 = vst.msk [vmem:[#allocation2 + $0xc0] sm:$0xff] %vm2832_vm10, %v2689_v17 }
 0x390   :  { %1660 = vrot.lane.b32.xlu0 %v6219_v18, %s3669_s13  ;;  %v1900_v34 = vpop.permute.xlu1 %1899  ;;  %v2345_v18 = vsel %vm415_vm0, %v2343_v10, %v2344_v26 }
 0x391   :  { %2051 = vst.msk [vmem:[#allocation2 + $0x148] sm:$0xff] %vm2009_vm7, %v1900_v34 }
 0x392   :  { %v1898_v47 = vpop.permute.xlu0 %1897  ;;  %2108 = vrot.lane.b32.xlu1 %v7492_v1, %s3671_s19  ;;  %v2353_v1 = vrot.slane %v248_v21, 2 }
 0x393   :  { %2050 = vst.msk [vmem:[#allocation2 + $0x140] sm:$0xff] %vm2009_vm7, %v1898_v47 }
 0x394   :  { %2106 = vrot.lane.b32.xlu0 %v7493_v23, %s3671_s19  ;;  %v2197_v39 = vpop.permute.xlu1 %2196  ;;  %v2924_v28 = vld [vmem:[#allocation2 + $0xc8] sm:$0xff] }
 0x395   :  { %2332 = vst.msk [vmem:[#allocation2 + $0x1c8] sm:$0xff] %vm2274_vm8, %v2197_v39  ;;  %v7496_v39 = vld [vmem:[#allocation66_spill] sm:$0xff] }
 0x396   :  { %v2195_v58 = vpop.permute.xlu0 %2194  ;;  %v2923_v22 = vld [vmem:[#allocation2 + $0xc0] sm:$0xff]  ;;  %2421 = vrot.lane.b32.xlu1 %v2347_v56, %s3672_s20 }
 0x397   :  { %2331 = vst.msk [vmem:[#allocation2 + $0x1c0] sm:$0xff] %vm2274_vm8, %v2195_v58  ;;  %v3576_v63 = vpack.c.bf16 %v2924_v28, %v2923_v22  ;;  %v2355_v58 = vsel %vm415_vm0, %v2353_v1, %v2354_v53 }
 0x398   :  { %2419 = vrot.lane.b32.xlu0 %v2345_v18, %s3672_s20  ;;  %v2659_v14 = vpop.permute.xlu1 %2658 }
 0x399   :  { %3578 = vmatprep.subr.msk.bf16.mxu0 %vm5923_vm12, %v3576_v63  ;;  %2842 = vst.msk [vmem:[#allocation2 + $0x48] sm:$0xff] %vm2832_vm10, %v2659_v14 }
 0x39a   :  { %v2657_v8 = vpop.permute.xlu0 %2656  ;;  %1939 = vrot.lane.b32.xlu1 %v6238_v12, %s3670_s18  ;;  %v2624_v12 = vsel %vm833_vm2, %v2621_v50, %v2623_v31 }
 0x39b   :  { %2841 = vst.msk [vmem:[#allocation2 + $0x40] sm:$0xff] %vm2832_vm10, %v2657_v8 }
 0x39c   :  { %1937 = vrot.lane.b32.xlu0 %v6241_v16, %s3670_s18  ;;  %v2165_v62 = vpop.permute.xlu1 %2164  ;;  %v2622_v16 = vsel %vm833_vm2, %v2620_v37, %v2621_v50  ;;  %v2631_v50 = vrot.slane %v249_v40, 4  ;;  %v2630_v37 = vrot.slane %v248_v21, 4 }
 0x39d   :  { %2316 = vst.msk [vmem:[#allocation2 + $0x148] sm:$0xff] %vm2274_vm8, %v2165_v62 }
 0x39e   :  { %v2163_v11 = vpop.permute.xlu0 %2162  ;;  %2389 = vrot.lane.b32.xlu1 %v7494_v54, %s3672_s20 }
 0x39f   :  { %2315 = vst.msk [vmem:[#allocation2 + $0x140] sm:$0xff] %vm2274_vm8, %v2163_v11 }
 0x3a0   :  { %2387 = vrot.lane.b32.xlu0 %v7495_v33, %s3672_s20  ;;  %v2478_v51 = vpop.permute.xlu1 %2477  ;;  %v2908_v4 = vld [vmem:[#allocation2 + $0x48] sm:$0xff] }
 0x3a1   :  { %2613 = vst.msk [vmem:[#allocation2 + $0x1c8] sm:$0xff] %vm2555_vm9, %v2478_v51 }
 0x3a2   :  { %v2476_v43 = vpop.permute.xlu0 %2475  ;;  %v2907_v7 = vld [vmem:[#allocation2 + $0x40] sm:$0xff]  ;;  %2698 = vrot.lane.b32.xlu1 %v2624_v12, %s3673_s21  ;;  %v2632_v12 = vsel %vm833_vm2, %v2630_v37, %v2631_v50 }
 0x3a3   :  { %2612 = vst.msk [vmem:[#allocation2 + $0x1c0] sm:$0xff] %vm2555_vm9, %v2476_v43  ;;  %v3579_v2 = vpack.c.bf16 %v2908_v4, %v2907_v7  ;;  %v72_v43 = vld [vmem:[%s6766_s0 + $0x1d0] sm:$0xff] }
 0x3a4   :  { %2696 = vrot.lane.b32.xlu0 %v2622_v16, %s3673_s21  ;;  %v2446_v24 = vpop.permute.xlu1 %2445 }
 0x3a5   :  { %3581 = vmatpush3.bf16.xpose.msk.msra.mxu0 %vm5923_vm12, %v3579_v2  ;;  %2597 = vst.msk [vmem:[#allocation2 + $0x148] sm:$0xff] %vm2555_vm9, %v2446_v24 }
 0x3a6   :  { %v2444_v0 = vpop.permute.xlu0 %2443  ;;  %1907 = vrot.lane.b32.xlu1 %v7470_v45, %s3670_s18  ;;  %v250_v45 = vmax.f32 %v130_v19, 0.0 }
 0x3a7   :  { %2596 = vst.msk [vmem:[#allocation2 + $0x140] sm:$0xff] %vm2555_vm9, %v2444_v0 }
 0x3a8   :  { %1905 = vrot.lane.b32.xlu0 %v7471_v44, %s3670_s18  ;;  %v2755_v57 = vpop.permute.xlu1 %2754  ;;  %v2356_v34 = vrot.slane %v250_v45, 2  ;;  %v2633_v31 = vrot.slane %v250_v45, 4  ;;  %v7499_v45 = vld [vmem:[#allocation26_spill] sm:$0xff] }
 0x3a9   :  { %2890 = vst.msk [vmem:[#allocation2 + $0x1c8] sm:$0xff] %vm2832_vm10, %v2755_v57 }
 0x3aa   :  { %v2753_v17 = vpop.permute.xlu0 %2752  ;;  %2204 = vrot.lane.b32.xlu1 %v249_v40, %s3671_s19  ;;  %v2634_v54 = vsel %vm833_vm2, %v2631_v50, %v2633_v31  ;;  %v132_v50 = vld [vmem:[%s6766_s0 + $0x3b0] sm:$0xff] }
 0x3ab   :  { %2889 = vst.msk [vmem:[#allocation2 + $0x1c0] sm:$0xff] %vm2832_vm10, %v2753_v17  ;;  %v7498_v17 = vld [vmem:[#allocation24_spill] sm:$0xff] }
 0x3ac   :  { %2202 = vrot.lane.b32.xlu0 %v248_v21, %s3671_s19  ;;  %v2723_v26 = vpop.permute.xlu1 %2722 }
 0x3ad   :  { %2874 = vst.msk [vmem:[#allocation2 + $0x148] sm:$0xff] %vm2832_vm10, %v2723_v26 }
 0x3ae   :  { %v2721_v44 = vpop.permute.xlu0 %2720  ;;  %2666 = vrot.lane.b32.xlu1 %v7390_v49, %s3673_s21  ;;  %v7497_v49 = vld [vmem:[#allocation67_spill] sm:$0xff] }
 0x3af   :  { %2873 = vst.msk [vmem:[#allocation2 + $0x140] sm:$0xff] %vm2832_vm10, %v2721_v44 }
 0x3b0   :  { %2664 = vrot.lane.b32.xlu0 %v7391_v15, %s3673_s21  ;;  %v1872_v10 = vpop.permute.xlu1 %1871  ;;  %v2956_v47 = vld [vmem:[#allocation2 + $0x1c8] sm:$0xff]  ;;  %v2357_v15 = vsel %vm415_vm0, %v2354_v53, %v2356_v34 }
 0x3b1   :  { %2037 = vst.msk [vmem:[#allocation2 + $0xd8] sm:$0xff] %vm2009_vm7, %v1872_v10 }
 0x3b2   :  { %v1870_v23 = vpop.permute.xlu0 %1869  ;;  %v2955_v56 = vld [vmem:[#allocation2 + $0x1c0] sm:$0xff]  ;;  %2172 = vrot.lane.b32.xlu1 %v7496_v39, %s3671_s19 }
 0x3b3   :  { %2036 = vst.msk [vmem:[#allocation2 + $0xd0] sm:$0xff] %vm2009_vm7, %v1870_v23  ;;  %v3624_v18 = vpack.c.bf16 %v2956_v47, %v2955_v56 }
 0x3b4   :  { %2170 = vrot.lane.b32.xlu0 %v7497_v49, %s3671_s19  ;;  %v1840_v28 = vpop.permute.xlu1 %1839  ;;  %v2940_v22 = vld [vmem:[#allocation2 + $0x148] sm:$0xff] }
 0x3b5   :  { %3626 = vmatprep.subr.msk.bf16.mxu1 %vm5923_vm12, %v3624_v18  ;;  %2021 = vst.msk [vmem:[#allocation2 + $0x58] sm:$0xff] %vm2009_vm7, %v1840_v28  ;;  %v7501_v28 = vld [vmem:[#allocation57_spill] sm:$0xff] }
 0x3b6   :  { %v1838_v63 = vpop.permute.xlu0 %1837  ;;  %v2939_v14 = vld [vmem:[#allocation2 + $0x140] sm:$0xff]  ;;  %2485 = vrot.lane.b32.xlu1 %v2357_v15, %s3672_s20 }
 0x3b7   :  { %2020 = vst.msk [vmem:[#allocation2 + $0x50] sm:$0xff] %vm2009_vm7, %v1838_v63  ;;  %v3627_v8 = vpack.c.bf16 %v2940_v22, %v2939_v14  ;;  %v7500_v15 = vld [vmem:[#allocation55_spill] sm:$0xff] }
 0x3b8   :  { %2483 = vrot.lane.b32.xlu0 %v2355_v58, %s3672_s20  ;;  %v2137_v62 = vpop.permute.xlu1 %2136 }
 0x3b9   :  { %3629 = vmatpush3.bf16.xpose.msk.msra.mxu1 %vm5923_vm12, %v3627_v8  ;;  %2302 = vst.msk [vmem:[#allocation2 + $0xd8] sm:$0xff] %vm2274_vm8, %v2137_v62  ;;  %v131_v62 = vld [vmem:[%s6766_s0 + $0x3a8] sm:$0xff] }
 0x3ba   :  { %v2135_v11 = vpop.permute.xlu0 %2134  ;;  %2453 = vrot.lane.b32.xlu1 %v7394_v42, %s3672_s20 }
 0x3bb   :  { %2301 = vst.msk [vmem:[#allocation2 + $0xd0] sm:$0xff] %vm2274_vm8, %v2135_v11  ;;  %v252_v11 = vmax.f32 %v132_v50, 0.0 }
 0x3bc   :  { %2451 = vrot.lane.b32.xlu0 %v7395_v48, %s3672_s20  ;;  %v1659_v33 = vpop.permute.xlu1 %1658 }
 0x3bd   :  { %1792 = vst.msk [vmem:[#allocation2 + $0x1d8] sm:$0xff] %vm1732_vm6, %v1659_v33 }
 0x3be   :  { %v1657_v51 = vpop.permute.xlu0 %1656  ;;  %2762 = vrot.lane.b32.xlu1 %v2634_v54, %s3673_s21  ;;  %v251_v54 = vmax.f32 %v131_v62, 0.0 }
 0x3bf   :  { %1791 = vst.msk [vmem:[#allocation2 + $0x1d0] sm:$0xff] %vm1732_vm6, %v1657_v51 }
 0x3c0   :  { %2760 = vrot.lane.b32.xlu0 %v2632_v12, %s3673_s21  ;;  %v2105_v16 = vpop.permute.xlu1 %2104  ;;  %v133_v12 = vld [vmem:[%s6766_s0 + $0x3b8] sm:$0xf] }
 0x3c1   :  { %2286 = vst.msk [vmem:[#allocation2 + $0x58] sm:$0xff] %vm2274_vm8, %v2105_v16 }
 0x3c2   :  { %v2103_v42 = vpop.permute.xlu0 %2102  ;;  %2730 = vrot.lane.b32.xlu1 %v5187_v60, %s3673_s21 }
 0x3c3   :  { %2285 = vst.msk [vmem:[#allocation2 + $0x50] sm:$0xff] %vm2274_vm8, %v2103_v42  ;;  %v2359_v42 = vrot.slane %v252_v11, 2 }
 0x3c4   :  { %2728 = vrot.lane.b32.xlu0 %v5193_v61, %s3673_s21  ;;  %v2418_v48 = vpop.permute.xlu1 %2417  ;;  %v71_v61 = vld [vmem:[%s6766_s0 + $0x1c8] sm:$0xff] }
 0x3c5   :  { %2583 = vst.msk [vmem:[#allocation2 + $0xd8] sm:$0xff] %vm2555_vm9, %v2418_v48 }
 0x3c6   :  { %v2416_v4 = vpop.permute.xlu0 %2415  ;;  %1879 = vrot.lane.b32.xlu1 %v6310_v46, %s3670_s18  ;;  %v192_v46 = vmax.f32 %v72_v43, 0.0 }
 0x3c7   :  { %2582 = vst.msk [vmem:[#allocation2 + $0xd0] sm:$0xff] %vm2555_vm9, %v2416_v4 }
 0x3c8   :  { %1877 = vrot.lane.b32.xlu0 %v6313_v59, %s3670_s18  ;;  %v1936_v60 = vpop.permute.xlu1 %1935  ;;  %v191_v59 = vmax.f32 %v71_v61, 0.0  ;;  %v2349_v0 = vrot.slane %v192_v46, 2  ;;  %v2626_v23 = vrot.slane %v192_v46, 4 }
 0x3c9   :  { %2069 = vst.msk [vmem:[#allocation2 + $0x1d8] sm:$0xff] %vm2009_vm7, %v1936_v60  ;;  %v2358_v60 = vrot.slane %v251_v54, 2 }
 0x3ca   :  { %v1934_v7 = vpop.permute.xlu0 %1933  ;;  %1847 = vrot.lane.b32.xlu1 %v7484_v38, %s3670_s18  ;;  %v193_v38 = vmax.f32 %v73_v9, 0.0  ;;  %v2348_v57 = vrot.slane %v191_v59, 2  ;;  %v2625_v18 = vrot.slane %v191_v59, 4 }
 0x3cb   :  { %2068 = vst.msk [vmem:[#allocation2 + $0x1d0] sm:$0xff] %vm2009_vm7, %v1934_v7  ;;  %v2360_v9 = vsel %vm415_vm0, %v2358_v60, %v2359_v42 }
 0x3cc   :  { %1845 = vrot.lane.b32.xlu0 %v7485_v27, %s3670_s18  ;;  %v2386_v2 = vpop.permute.xlu1 %2385  ;;  %v2351_v40 = vrot.slane %v193_v38, 2  ;;  %v2628_v56 = vrot.slane %v193_v38, 4 }
 0x3cd   :  { %2567 = vst.msk [vmem:[#allocation2 + $0x58] sm:$0xff] %vm2555_vm9, %v2386_v2 }
 0x3ce   :  { %v2384_v24 = vpop.permute.xlu0 %2383  ;;  %2144 = vrot.lane.b32.xlu1 %v192_v46, %s3671_s19  ;;  %v7502_v46 = vld [vmem:[#allocation69_spill] sm:$0xff] }
 0x3cf   :  { %2566 = vst.msk [vmem:[#allocation2 + $0x50] sm:$0xff] %vm2555_vm9, %v2384_v24 }
 0x3d0   :  { %2142 = vrot.lane.b32.xlu0 %v191_v59, %s3671_s19  ;;  %v2695_v36 = vpop.permute.xlu1 %2694 }
 0x3d1   :  { %2860 = vst.msk [vmem:[#allocation2 + $0xd8] sm:$0xff] %vm2832_vm10, %v2695_v36 }
 0x3d2   :  { %v2693_v27 = vpop.permute.xlu0 %2692  ;;  %1666 = vrot.lane.b32.xlu1 %v6353_v30, %s3669_s13  ;;  %v2352_v30 = vsel %vm415_vm0, %v2349_v0, %v2351_v40 }
 0x3d3   :  { %2859 = vst.msk [vmem:[#allocation2 + $0xd0] sm:$0xff] %vm2832_vm10, %v2693_v27 }
 0x3d4   :  { %1664 = vrot.lane.b32.xlu0 %v6358_v6, %s3669_s13  ;;  %v1904_v21 = vpop.permute.xlu1 %1903  ;;  %v2350_v6 = vsel %vm415_vm0, %v2348_v57, %v2349_v0  ;;  %v2636_v0 = vrot.slane %v252_v11, 4  ;;  %v2635_v57 = vrot.slane %v251_v54, 4 }
 0x3d5   :  { %2053 = vst.msk [vmem:[#allocation2 + $0x158] sm:$0xff] %vm2009_vm7, %v1904_v21 }
 0x3d6   :  { %v1902_v19 = vpop.permute.xlu0 %1901  ;;  %2112 = vrot.lane.b32.xlu1 %v7498_v17, %s3671_s19 }
 0x3d7   :  { %2052 = vst.msk [vmem:[#allocation2 + $0x150] sm:$0xff] %vm2009_vm7, %v1902_v19 }
 0x3d8   :  { %2110 = vrot.lane.b32.xlu0 %v7499_v45, %s3671_s19  ;;  %v2201_v26 = vpop.permute.xlu1 %2200  ;;  %v2926_v44 = vld [vmem:[#allocation2 + $0xd8] sm:$0xff] }
 0x3d9   :  { %2334 = vst.msk [vmem:[#allocation2 + $0x1d8] sm:$0xff] %vm2274_vm8, %v2201_v26 }
 0x3da   :  { %v2199_v53 = vpop.permute.xlu0 %2198  ;;  %v2925_v34 = vld [vmem:[#allocation2 + $0xd0] sm:$0xff]  ;;  %2425 = vrot.lane.b32.xlu1 %v2352_v30, %s3672_s20  ;;  %v2637_v30 = vsel %vm833_vm2, %v2635_v57, %v2636_v0 }
 0x3db   :  { %2333 = vst.msk [vmem:[#allocation2 + $0x1d0] sm:$0xff] %vm2274_vm8, %v2199_v53  ;;  %v3582_v10 = vpack.c.bf16 %v2926_v44, %v2925_v34 }
 0x3dc   :  { %2423 = vrot.lane.b32.xlu0 %v2350_v6, %s3672_s20  ;;  %v2663_v47 = vpop.permute.xlu1 %2662 }
 0x3dd   :  { %3584 = vmatprep.subr.msk.bf16.mxu0 %vm5923_vm12, %v3582_v10  ;;  %2844 = vst.msk [vmem:[#allocation2 + $0x58] sm:$0xff] %vm2832_vm10, %v2663_v47 }
 0x3de   :  { %v2661_v1 = vpop.permute.xlu0 %2660  ;;  %1943 = vrot.lane.b32.xlu1 %v6377_v13, %s3670_s18  ;;  %v2629_v13 = vsel %vm833_vm2, %v2626_v23, %v2628_v56 }
 0x3df   :  { %2843 = vst.msk [vmem:[#allocation2 + $0x50] sm:$0xff] %vm2832_vm10, %v2661_v1 }
 0x3e0   :  { %1941 = vrot.lane.b32.xlu0 %v6380_v29, %s3670_s18  ;;  %v2169_v39 = vpop.permute.xlu1 %2168  ;;  %v2627_v29 = vsel %vm833_vm2, %v2625_v18, %v2626_v23 }
 0x3e1   :  { %2318 = vst.msk [vmem:[#allocation2 + $0x158] sm:$0xff] %vm2274_vm8, %v2169_v39 }
 0x3e2   :  { %v2167_v49 = vpop.permute.xlu0 %2166  ;;  %2393 = vrot.lane.b32.xlu1 %v7500_v15, %s3672_s20 }
 0x3e3   :  { %2317 = vst.msk [vmem:[#allocation2 + $0x150] sm:$0xff] %vm2274_vm8, %v2167_v49 }
 0x3e4   :  { %2391 = vrot.lane.b32.xlu0 %v7501_v28, %s3672_s20  ;;  %v2482_v58 = vpop.permute.xlu1 %2481  ;;  %v2910_v22 = vld [vmem:[#allocation2 + $0x58] sm:$0xff] }
 0x3e5   :  { %2615 = vst.msk [vmem:[#allocation2 + $0x1d8] sm:$0xff] %vm2555_vm9, %v2482_v58 }
 0x3e6   :  { %v2480_v63 = vpop.permute.xlu0 %2479  ;;  %v2909_v14 = vld [vmem:[#allocation2 + $0x50] sm:$0xff]  ;;  %2702 = vrot.lane.b32.xlu1 %v2629_v13, %s3673_s21 }
 0x3e7   :  { %2614 = vst.msk [vmem:[#allocation2 + $0x1d0] sm:$0xff] %vm2555_vm9, %v2480_v63  ;;  %v3585_v8 = vpack.c.bf16 %v2910_v22, %v2909_v14 }
 0x3e8   :  { %2700 = vrot.lane.b32.xlu0 %v2627_v29, %s3673_s21  ;;  %v2450_v31 = vpop.permute.xlu1 %2449 }
 0x3e9   :  { %3587 = vmatpush3.bf16.xpose.msk.msra.mxu0 %vm5923_vm12, %v3585_v8  ;;  %2599 = vst.msk [vmem:[#allocation2 + $0x158] sm:$0xff] %vm2555_vm9, %v2450_v31 }
 0x3ea   :  { %v2448_v37 = vpop.permute.xlu0 %2447  ;;  %1911 = vrot.lane.b32.xlu1 %v7490_v52, %s3670_s18  ;;  %v253_v52 = vmax.f32 %v133_v12, 0.0 }
 0x3eb   :  { %2598 = vst.msk [vmem:[#allocation2 + $0x150] sm:$0xff] %vm2555_vm9, %v2448_v37 }
 0x3ec   :  { %1909 = vrot.lane.b32.xlu0 %v7491_v25, %s3670_s18  ;;  %v2759_v33 = vpop.permute.xlu1 %2758  ;;  %v2361_v48 = vrot.slane %v253_v52, 2  ;;  %v2638_v40 = vrot.slane %v253_v52, 4 }
 0x3ed   :  { %2892 = vst.msk [vmem:[#allocation2 + $0x1d8] sm:$0xff] %vm2832_vm10, %v2759_v33 }
 0x3ee   :  { %v2757_v51 = vpop.permute.xlu0 %2756  ;;  %2208 = vrot.lane.b32.xlu1 %v252_v11, %s3671_s19  ;;  %v2639_v17 = vsel %vm833_vm2, %v2636_v0, %v2638_v40 }
 0x3ef   :  { %2891 = vst.msk [vmem:[#allocation2 + $0x1d0] sm:$0xff] %vm2832_vm10, %v2757_v51 }
 0x3f0   :  { %2206 = vrot.lane.b32.xlu0 %v251_v54, %s3671_s19  ;;  %v2727_v16 = vpop.permute.xlu1 %2726 }
 0x3f1   :  { %2876 = vst.msk [vmem:[#allocation2 + $0x158] sm:$0xff] %vm2832_vm10, %v2727_v16 }
 0x3f2   :  { %v2725_v25 = vpop.permute.xlu0 %2724  ;;  %2670 = vrot.lane.b32.xlu1 %v7402_v55, %s3673_s21  ;;  %v7503_v55 = vld [vmem:[#allocation70_spill] sm:$0xff] }
 0x3f3   :  { %2875 = vst.msk [vmem:[#allocation2 + $0x150] sm:$0xff] %vm2832_vm10, %v2725_v25 }
 0x3f4   :  { %2668 = vrot.lane.b32.xlu0 %v7403_v41, %s3673_s21  ;;  %v1876_v4 = vpop.permute.xlu1 %1875  ;;  %v2958_v43 = vld [vmem:[#allocation2 + $0x1d8] sm:$0xff]  ;;  %v2362_v41 = vsel %vm415_vm0, %v2359_v42, %v2361_v48 }
 0x3f5   :  { %2039 = vst.msk [vmem:[#allocation2 + $0xe8] sm:$0xff] %vm2009_vm7, %v1876_v4 }
 0x3f6   :  { %v1874_v61 = vpop.permute.xlu0 %1873  ;;  %v2957_v7 = vld [vmem:[#allocation2 + $0x1d0] sm:$0xff]  ;;  %2176 = vrot.lane.b32.xlu1 %v7502_v46, %s3671_s19 }
 0x3f7   :  { %2038 = vst.msk [vmem:[#allocation2 + $0xe0] sm:$0xff] %vm2009_vm7, %v1874_v61  ;;  %v3630_v59 = vpack.c.bf16 %v2958_v43, %v2957_v7 }
 0x3f8   :  { %2174 = vrot.lane.b32.xlu0 %v7503_v55, %s3671_s19  ;;  %v1844_v2 = vpop.permute.xlu1 %1843  ;;  %v2942_v24 = vld [vmem:[#allocation2 + $0x158] sm:$0xff] }
 0x3f9   :  { %3632 = vmatprep.subr.msk.bf16.mxu1 %vm5923_vm12, %v3630_v59  ;;  %2023 = vst.msk [vmem:[#allocation2 + $0x68] sm:$0xff] %vm2009_vm7, %v1844_v2 }
 0x3fa   :  { %v1842_v38 = vpop.permute.xlu0 %1841  ;;  %v2941_v36 = vld [vmem:[#allocation2 + $0x150] sm:$0xff]  ;;  %2489 = vrot.lane.b32.xlu1 %v2362_v41, %s3672_s20 }
 0x3fb   :  { %2022 = vst.msk [vmem:[#allocation2 + $0x60] sm:$0xff] %vm2009_vm7, %v1842_v38  ;;  %v3633_v27 = vpack.c.bf16 %v2942_v24, %v2941_v36 }
 0x3fc   :  { %2487 = vrot.lane.b32.xlu0 %v2360_v9, %s3672_s20  ;;  %v2141_v21 = vpop.permute.xlu1 %2140 }
 0x3fd   :  { %3635 = vmatpush3.bf16.xpose.msk.msra.mxu1 %vm5923_vm12, %v3633_v27  ;;  %2304 = vst.msk [vmem:[#allocation2 + $0xe8] sm:$0xff] %vm2274_vm8, %v2141_v21 }
 0x3fe   :  { %v2139_v19 = vpop.permute.xlu0 %2138  ;;  %2457 = vrot.lane.b32.xlu1 %v7406_v20, %s3672_s20 }
 0x3ff   :  { %2303 = vst.msk [vmem:[#allocation2 + $0xe0] sm:$0xff] %vm2274_vm8, %v2139_v19 }
 0x400   :  { %2455 = vrot.lane.b32.xlu0 %v7407_v5, %s3672_s20  ;;  %v1663_v45 = vpop.permute.xlu1 %1662  ;;  %v6640_v5 = vld [vmem:[%s6767_s1] sm:$0xff] }
 0x401   :  { %1794 = vst.msk [vmem:[#allocation2 + $0x1e8] sm:$0xff] %vm1732_vm6, %v1663_v45  ;;  %3512 = vmatprep.mubr.msk.f32.mxu0 %vm2963_vm11, %v6640_v5  ;;  %3548 = vmatprep.mubr.msk.f32.mxu1 %vm2963_vm11, %v6640_v5 }
 0x402   :  { %v1661_v26 = vpop.permute.xlu0 %1660  ;;  %2766 = vrot.lane.b32.xlu1 %v2639_v17, %s3673_s21 }
 0x403   :  { %1793 = vst.msk [vmem:[#allocation2 + $0x1e0] sm:$0xff] %vm1732_vm6, %v1661_v26 }
 0x404   :  { %2764 = vrot.lane.b32.xlu0 %v2637_v30, %s3673_s21  ;;  %v2109_v6 = vpop.permute.xlu1 %2108 }
 0x405   :  { %2288 = vst.msk [vmem:[#allocation2 + $0x68] sm:$0xff] %vm2274_vm8, %v2109_v6 }
 0x406   :  { %v2107_v20 = vpop.permute.xlu0 %2106  ;;  %2734 = vrot.lane.b32.xlu1 %v5203_v3, %s3673_s21 }
 0x407   :  { %2287 = vst.msk [vmem:[#allocation2 + $0x60] sm:$0xff] %vm2274_vm8, %v2107_v20 }
 0x408   :  { %2732 = vrot.lane.b32.xlu0 %v5209_v32, %s3673_s21  ;;  %v2422_v44 = vpop.permute.xlu1 %2421 }
 0x409   :  { %2585 = vst.msk [vmem:[#allocation2 + $0xe8] sm:$0xff] %vm2555_vm9, %v2422_v44 }
 0x40a   :  { %v2420_v53 = vpop.permute.xlu0 %2419 }
 0x40b   :  { %2584 = vst.msk [vmem:[#allocation2 + $0xe0] sm:$0xff] %vm2555_vm9, %v2420_v53 }
 0x40c   :  { %v1940_v34 = vpop.permute.xlu1 %1939 }
 0x40d   :  { %2071 = vst.msk [vmem:[#allocation2 + $0x1e8] sm:$0xff] %vm2009_vm7, %v1940_v34 }
 0x40e   :  { %v1938_v10 = vpop.permute.xlu0 %1937 }
 0x40f   :  { %2070 = vst.msk [vmem:[#allocation2 + $0x1e0] sm:$0xff] %vm2009_vm7, %v1938_v10 }
 0x410   :  { %v2390_v3 = vpop.permute.xlu1 %2389 }
 0x411   :  { %2569 = vst.msk [vmem:[#allocation2 + $0x68] sm:$0xff] %vm2555_vm9, %v2390_v3 }
 0x412   :  { %v2388_v47 = vpop.permute.xlu0 %2387 }
 0x413   :  { %2568 = vst.msk [vmem:[#allocation2 + $0x60] sm:$0xff] %vm2555_vm9, %v2388_v47 }
 0x414   :  { %v2699_v32 = vpop.permute.xlu1 %2698 }
 0x415   :  { %2862 = vst.msk [vmem:[#allocation2 + $0xe8] sm:$0xff] %vm2832_vm10, %v2699_v32 }
 0x416   :  { %v2697_v1 = vpop.permute.xlu0 %2696 }
 0x417   :  { %2861 = vst.msk [vmem:[#allocation2 + $0xe0] sm:$0xff] %vm2832_vm10, %v2697_v1 }
 0x418   :  { %v1908_v23 = vpop.permute.xlu1 %1907 }
 0x419   :  { %2055 = vst.msk [vmem:[#allocation2 + $0x168] sm:$0xff] %vm2009_vm7, %v1908_v23 }
 0x41a   :  { %v1906_v56 = vpop.permute.xlu0 %1905 }
 0x41b   :  { %2054 = vst.msk [vmem:[#allocation2 + $0x160] sm:$0xff] %vm2009_vm7, %v1906_v56 }
 0x41c   :  { %v2205_v39 = vpop.permute.xlu1 %2204  ;;  %v2928_v18 = vld [vmem:[#allocation2 + $0xe8] sm:$0xff] }
 0x41d   :  { %2336 = vst.msk [vmem:[#allocation2 + $0x1e8] sm:$0xff] %vm2274_vm8, %v2205_v39 }
 0x41e   :  { %v2203_v49 = vpop.permute.xlu0 %2202  ;;  %v2927_v15 = vld [vmem:[#allocation2 + $0xe0] sm:$0xff] }
 0x41f   :  { %2335 = vst.msk [vmem:[#allocation2 + $0x1e0] sm:$0xff] %vm2274_vm8, %v2203_v49  ;;  %v3588_v28 = vpack.c.bf16 %v2928_v18, %v2927_v15  ;;  %v2898_v49 = vld [vmem:[%s6767_s1 + $0x8] sm:$0xff] }
 0x420   :  { %v2667_v13 = vpop.permute.xlu1 %2666 }
 0x421   :  { %3590 = vmatprep.subr.msk.bf16.mxu0 %vm5923_vm12, %v3588_v28  ;;  %2846 = vst.msk [vmem:[#allocation2 + $0x68] sm:$0xff] %vm2832_vm10, %v2667_v13 }
 0x422   :  { %v2665_v58 = vpop.permute.xlu0 %2664 }
 0x423   :  { %2845 = vst.msk [vmem:[#allocation2 + $0x60] sm:$0xff] %vm2832_vm10, %v2665_v58 }
 0x424   :  { %v2173_v29 = vpop.permute.xlu1 %2172 }
 0x425   :  { %2320 = vst.msk [vmem:[#allocation2 + $0x168] sm:$0xff] %vm2274_vm8, %v2173_v29 }
 0x426   :  { %v2171_v22 = vpop.permute.xlu0 %2170 }
 0x427   :  { %2319 = vst.msk [vmem:[#allocation2 + $0x160] sm:$0xff] %vm2274_vm8, %v2171_v22 }
 0x428   :  { %v2486_v63 = vpop.permute.xlu1 %2485  ;;  %v2912_v14 = vld [vmem:[#allocation2 + $0x68] sm:$0xff] }
 0x429   :  { %2617 = vst.msk [vmem:[#allocation2 + $0x1e8] sm:$0xff] %vm2555_vm9, %v2486_v63 }
 0x42a   :  { %v2484_v8 = vpop.permute.xlu0 %2483  ;;  %v2911_v50 = vld [vmem:[#allocation2 + $0x60] sm:$0xff] }
 0x42b   :  { %2616 = vst.msk [vmem:[#allocation2 + $0x1e0] sm:$0xff] %vm2555_vm9, %v2484_v8  ;;  %v3591_v31 = vpack.c.bf16 %v2912_v14, %v2911_v50 }
 0x42c   :  { %v2454_v62 = vpop.permute.xlu1 %2453 }
 0x42d   :  { %3593 = vmatpush3.bf16.xpose.msk.msra.mxu0 %vm5923_vm12, %v3591_v31  ;;  %2601 = vst.msk [vmem:[#allocation2 + $0x168] sm:$0xff] %vm2555_vm9, %v2454_v62 }
 0x42e   :  { %v2452_v37 = vpop.permute.xlu0 %2451 }
 0x42f   :  { %2600 = vst.msk [vmem:[#allocation2 + $0x160] sm:$0xff] %vm2555_vm9, %v2452_v37 }
 0x430   :  { %v2763_v11 = vpop.permute.xlu1 %2762 }
 0x431   :  { %2894 = vst.msk [vmem:[#allocation2 + $0x1e8] sm:$0xff] %vm2832_vm10, %v2763_v11 }
 0x432   :  { %v2761_v54 = vpop.permute.xlu0 %2760 }
 0x433   :  { %2893 = vst.msk [vmem:[#allocation2 + $0x1e0] sm:$0xff] %vm2832_vm10, %v2761_v54 }
 0x434   :  { %v2731_v33 = vpop.permute.xlu1 %2730 }
 0x435   :  { %2878 = vst.msk [vmem:[#allocation2 + $0x168] sm:$0xff] %vm2832_vm10, %v2731_v33 }
 0x436   :  { %v2729_v12 = vpop.permute.xlu0 %2728 }
 0x437   :  { %2877 = vst.msk [vmem:[#allocation2 + $0x160] sm:$0xff] %vm2832_vm10, %v2729_v12 }
 0x438   :  { %v1880_v51 = vpop.permute.xlu1 %1879  ;;  %v2960_v52 = vld [vmem:[#allocation2 + $0x1e8] sm:$0xff] }
 0x439   :  { %2041 = vst.msk [vmem:[#allocation2 + $0xf8] sm:$0xff] %vm2009_vm7, %v1880_v51 }
 0x43a   :  { %v1878_v16 = vpop.permute.xlu0 %1877  ;;  %v2959_v25 = vld [vmem:[#allocation2 + $0x1e0] sm:$0xff] }
 0x43b   :  { %2040 = vst.msk [vmem:[#allocation2 + $0xf0] sm:$0xff] %vm2009_vm7, %v1878_v16  ;;  %v3636_v42 = vpack.c.bf16 %v2960_v52, %v2959_v25 }
 0x43c   :  { %v1848_v48 = vpop.permute.xlu1 %1847  ;;  %v2944_v4 = vld [vmem:[#allocation2 + $0x168] sm:$0xff] }
 0x43d   :  { %3638 = vmatprep.subr.msk.bf16.mxu1 %vm5923_vm12, %v3636_v42  ;;  %2025 = vst.msk [vmem:[#allocation2 + $0x78] sm:$0xff] %vm2009_vm7, %v1848_v48 }
 0x43e   :  { %v1846_v43 = vpop.permute.xlu0 %1845  ;;  %v2943_v60 = vld [vmem:[#allocation2 + $0x160] sm:$0xff] }
 0x43f   :  { %2024 = vst.msk [vmem:[#allocation2 + $0x70] sm:$0xff] %vm2009_vm7, %v1846_v43  ;;  %v3639_v61 = vpack.c.bf16 %v2944_v4, %v2943_v60 }
 0x440   :  { %v2145_v7 = vpop.permute.xlu1 %2144 }
 0x441   :  { %3641 = vmatpush3.bf16.xpose.msk.msra.mxu1 %vm5923_vm12, %v3639_v61  ;;  %2306 = vst.msk [vmem:[#allocation2 + $0xf8] sm:$0xff] %vm2274_vm8, %v2145_v7 }
 0x442   :  { %v2143_v46 = vpop.permute.xlu0 %2142 }
 0x443   :  { %2305 = vst.msk [vmem:[#allocation2 + $0xf0] sm:$0xff] %vm2274_vm8, %v2143_v46 }
 0x444   :  { %v1667_v59 = vpop.permute.xlu1 %1666 }
 0x445   :  { %1796 = vst.msk [vmem:[#allocation2 + $0x1f8] sm:$0xff] %vm1732_vm6, %v1667_v59 }
 0x446   :  { %v1665_v55 = vpop.permute.xlu0 %1664 }
 0x447   :  { %1795 = vst.msk [vmem:[#allocation2 + $0x1f0] sm:$0xff] %vm1732_vm6, %v1665_v55 }
 0x448   :  { %v2113_v41 = vpop.permute.xlu1 %2112 }
 0x449   :  { %2290 = vst.msk [vmem:[#allocation2 + $0x78] sm:$0xff] %vm2274_vm8, %v2113_v41 }
 0x44a   :  { %v2111_v2 = vpop.permute.xlu0 %2110 }
 0x44b   :  { %2289 = vst.msk [vmem:[#allocation2 + $0x70] sm:$0xff] %vm2274_vm8, %v2111_v2 }
 0x44c   :  { %v2426_v9 = vpop.permute.xlu1 %2425 }
 0x44d   :  { %2587 = vst.msk [vmem:[#allocation2 + $0xf8] sm:$0xff] %vm2555_vm9, %v2426_v9 }
 0x44e   :  { %v2424_v24 = vpop.permute.xlu0 %2423 }
 0x44f   :  { %2586 = vst.msk [vmem:[#allocation2 + $0xf0] sm:$0xff] %vm2555_vm9, %v2424_v24 }
 0x450   :  { %v1944_v38 = vpop.permute.xlu1 %1943 }
 0x451   :  { %2073 = vst.msk [vmem:[#allocation2 + $0x1f8] sm:$0xff] %vm2009_vm7, %v1944_v38 }
 0x452   :  { %v1942_v36 = vpop.permute.xlu0 %1941 }
 0x453   :  { %2072 = vst.msk [vmem:[#allocation2 + $0x1f0] sm:$0xff] %vm2009_vm7, %v1942_v36 }
 0x454   :  { %v2394_v27 = vpop.permute.xlu1 %2393 }
 0x455   :  { %2571 = vst.msk [vmem:[#allocation2 + $0x78] sm:$0xff] %vm2555_vm9, %v2394_v27 }
 0x456   :  { %v2392_v0 = vpop.permute.xlu0 %2391 }
 0x457   :  { %2570 = vst.msk [vmem:[#allocation2 + $0x70] sm:$0xff] %vm2555_vm9, %v2392_v0 }
 0x458   :  { %v2703_v40 = vpop.permute.xlu1 %2702 }
 0x459   :  { %2864 = vst.msk [vmem:[#allocation2 + $0xf8] sm:$0xff] %vm2832_vm10, %v2703_v40 }
 0x45a   :  { %v2701_v21 = vpop.permute.xlu0 %2700 }
 0x45b   :  { %2863 = vst.msk [vmem:[#allocation2 + $0xf0] sm:$0xff] %vm2832_vm10, %v2701_v21 }
 0x45c   :  { %v1912_v57 = vpop.permute.xlu1 %1911 }
 0x45d   :  { %2057 = vst.msk [vmem:[#allocation2 + $0x178] sm:$0xff] %vm2009_vm7, %v1912_v57 }
 0x45e   :  { %v1910_v19 = vpop.permute.xlu0 %1909 }
 0x45f   :  { %2056 = vst.msk [vmem:[#allocation2 + $0x170] sm:$0xff] %vm2009_vm7, %v1910_v19 }
 0x460   :  { %v2209_v17 = vpop.permute.xlu1 %2208  ;;  %v2930_v45 = vld [vmem:[#allocation2 + $0xf8] sm:$0xff] }
 0x461   :  { %2338 = vst.msk [vmem:[#allocation2 + $0x1f8] sm:$0xff] %vm2274_vm8, %v2209_v17 }
 0x462   :  { %v2207_v30 = vpop.permute.xlu0 %2206  ;;  %v2929_v26 = vld [vmem:[#allocation2 + $0xf0] sm:$0xff] }
 0x463   :  { %2337 = vst.msk [vmem:[#allocation2 + $0x1f0] sm:$0xff] %vm2274_vm8, %v2207_v30  ;;  %v3594_v6 = vpack.c.bf16 %v2930_v45, %v2929_v26  ;;  %v3674_v26 = vmov 0  }
 0x464   :  { %v2671_v20 = vpop.permute.xlu1 %2670  ;;  %3658 = vset.pattern.permute.xlu1 %v3674_v26  ;;  %3659 = vset.pattern.permute.xlu0 %v3674_v26 }
 0x465   :  { %3596 = vmatprep.subr.msk.bf16.mxu0 %vm5923_vm12, %v3594_v6  ;;  %2848 = vst.msk [vmem:[#allocation2 + $0x78] sm:$0xff] %vm2832_vm10, %v2671_v20 }
 0x466   :  { %v2669_v44 = vpop.permute.xlu0 %2668 }
 0x467   :  { %2847 = vst.msk [vmem:[#allocation2 + $0x70] sm:$0xff] %vm2832_vm10, %v2669_v44 }
 0x468   :  { %v2177_v53 = vpop.permute.xlu1 %2176 }
 0x469   :  { %2322 = vst.msk [vmem:[#allocation2 + $0x178] sm:$0xff] %vm2274_vm8, %v2177_v53 }
 0x46a   :  { %v2175_v34 = vpop.permute.xlu0 %2174 }
 0x46b   :  { %2321 = vst.msk [vmem:[#allocation2 + $0x170] sm:$0xff] %vm2274_vm8, %v2175_v34 }
 0x46c   :  { %v2490_v10 = vpop.permute.xlu1 %2489  ;;  %v2914_v3 = vld [vmem:[#allocation2 + $0x78] sm:$0xff] }
 0x46d   :  { %2619 = vst.msk [vmem:[#allocation2 + $0x1f8] sm:$0xff] %vm2555_vm9, %v2490_v10 }
 0x46e   :  { %v2488_v47 = vpop.permute.xlu0 %2487  ;;  %v2913_v32 = vld [vmem:[#allocation2 + $0x70] sm:$0xff] }
 0x46f   :  { %2618 = vst.msk [vmem:[#allocation2 + $0x1f0] sm:$0xff] %vm2555_vm9, %v2488_v47  ;;  %v3597_v1 = vpack.c.bf16 %v2914_v3, %v2913_v32  ;;  %v3356_v3 = vld [vmem:[%s6768_s2] sm:$0xff] }
 0x470   :  { %v2458_v23 = vpop.permute.xlu1 %2457 }
 0x471   :  { %3599 = vmatpush3.bf16.xpose.msk.msra.mxu0 %vm5923_vm12, %v3597_v1  ;;  %2603 = vst.msk [vmem:[#allocation2 + $0x178] sm:$0xff] %vm2555_vm9, %v2458_v23  ;;  %v3357_v1 = vld [vmem:[%s6768_s2 + $0x8] sm:$0xff] }
 0x472   :  { %v2456_v56 = vpop.permute.xlu0 %2455 }
 0x473   :  { %2602 = vst.msk [vmem:[#allocation2 + $0x170] sm:$0xff] %vm2555_vm9, %v2456_v56 }
 0x474   :  { %v2767_v39 = vpop.permute.xlu1 %2766 }
 0x475   :  { %2896 = vst.msk [vmem:[#allocation2 + $0x1f8] sm:$0xff] %vm2832_vm10, %v2767_v39  ;;  %v3675_v39 = vmov 1  }
 0x476   :  { %v2765_v18 = vpop.permute.xlu0 %2764 }
 0x477   :  { %2895 = vst.msk [vmem:[#allocation2 + $0x1f0] sm:$0xff] %vm2832_vm10, %v2765_v18 }
 0x478   :  { %3513 = vmatmul.mubr.msk.f32.vlgmr.msra.gmra.mrb[0].mxu0 %vm2963_vm11, %v6640_v5  ;;  %v2735_v15 = vpop.permute.xlu1 %2734 }
 0x479   :  { %3514 = vmatprep.mubr.msk.f32.mxu0 %vm2963_vm11, %v2898_v49  ;;  %2880 = vst.msk [vmem:[#allocation2 + $0x178] sm:$0xff] %vm2832_vm10, %v2735_v15 }
 0x47a   :  { %v2733_v28 = vpop.permute.xlu0 %2732 }
 0x47b   :  { %2879 = vst.msk [vmem:[#allocation2 + $0x170] sm:$0xff] %vm2832_vm10, %v2733_v28 }
 0x47c   :  { %3515 = vmatmul.mubr.msk.f32.gmra.mrb[2].mxu0 %vm2963_vm11, %v2898_v49  ;;  %v2962_v13 = vld [vmem:[#allocation2 + $0x1f8] sm:$0xff] }
 0x47e   :  { %v2961_v58 = vld [vmem:[#allocation2 + $0x1f0] sm:$0xff] }
 0x47f   :  { %v3642_v29 = vpack.c.bf16 %v2962_v13, %v2961_v58 }
 0x480   :  { %v2946_v22 = vld [vmem:[#allocation2 + $0x178] sm:$0xff] }
 0x481   :  { %3644 = vmatprep.subr.msk.bf16.mxu1 %vm5923_vm12, %v3642_v29 }
 0x482   :  { %v2945_v63 = vld [vmem:[#allocation2 + $0x170] sm:$0xff] }
 0x483   :  { %v3645_v14 = vpack.c.bf16 %v2946_v22, %v2945_v63 }
 0x485   :  { %3647 = vmatpush3.bf16.xpose.msk.msra.mxu1 %vm5923_vm12, %v3645_v14 }
 0x48c   :  { %3549 = vmatmul.mubr.msk.f32.vlgmr.msra.gmra.mrb[0].mxu1 %vm2963_vm11, %v6640_v5 }
 0x48d   :  { %3550 = vmatprep.mubr.msk.f32.mxu1 %vm2963_vm11, %v2898_v49 }
 0x490   :  { %3551 = vmatmul.mubr.msk.f32.gmra.mrb[2].mxu1 %vm2963_vm11, %v2898_v49 }
 0x54b   :  { %v3228_v8 = vpop.f32.mrb[0].mxu0 }
 0x54c   :  { %v3230_v50 = vpop.f32.mrb[1].mxu0 }
 0x54d   :  { %v3316_v31 = vadd.f32 %v3230_v50, %v3228_v8 }
 0x54f   :  { %v3234_v62 = vpop.f32.mrb[2].mxu0 }
 0x550   :  { %v3236_v37 = vpop.f32.mrb[3].mxu0 }
 0x551   :  { %v3321_v11 = vadd.f32 %v3236_v37, %v3234_v62 }
 0x55f   :  { %v3305_v54 = vpop.f32.mrb[0].mxu1 }
 0x560   :  { %v3317_v33 = vadd.f32 %v3316_v31, %v3305_v54  ;;  %v3307_v12 = vpop.f32.mrb[1].mxu1 }
 0x562   :  { %v3318_v51 = vadd.f32 %v3317_v33, %v3307_v12 }
 0x563   :  { %v3311_v52 = vpop.f32.mrb[2].mxu1 }
 0x564   :  { %v3322_v35 = vadd.f32 %v3321_v11, %v3311_v52  ;;  %3319 = vadd.xlane.f32.xlu0 %v3318_v51  ;;  %v3313_v16 = vpop.f32.mrb[3].mxu1 }
 0x566   :  { %v3323_v25 = vadd.f32 %v3322_v35, %v3313_v16 }
 0x568   :  { %3324 = vadd.xlane.f32.xlu1 %v3323_v25 }
 0x5f1   :  { %v3320_v5 = vpop.xlane.xlu0 %3319 }
 0x5f2   :  { %v3326_v42 = vmul.f32 0.001953125, %v3320_v5 }
 0x5f4   :  { %v3328_v48 = vsub.f32 %v3228_v8, %v3326_v42  ;;  %v3329_v4 = vsub.f32 %v3230_v50, %v3326_v42  ;;  %v3330_v43 = vsub.f32 %v3305_v54, %v3326_v42  ;;  %v3331_v61 = vsub.f32 %v3307_v12, %v3326_v42 }
 0x5f5   :  { %v3325_v60 = vpop.xlane.xlu1 %3324 }
 0x5f6   :  { %v3327_v7 = vmul.f32 0.001953125, %v3325_v60  ;;  %v3336_v46 = vmul.f32 %v3328_v48, %v3328_v48  ;;  %v3337_v59 = vmul.f32 %v3329_v4, %v3329_v4  ;;  %v3338_v55 = vmul.f32 %v3330_v43, %v3330_v43 }
 0x5f7   :  { %v3339_v38 = vmul.f32 %v3331_v61, %v3331_v61 }
 0x5f8   :  { %v3332_v41 = vsub.f32 %v3234_v62, %v3327_v7  ;;  %v3333_v2 = vsub.f32 %v3236_v37, %v3327_v7  ;;  %v3334_v9 = vsub.f32 %v3311_v52, %v3327_v7  ;;  %v3344_v24 = vadd.f32 %v3337_v59, %v3336_v46 }
 0x5f9   :  { %v3335_v27 = vsub.f32 %v3313_v16, %v3327_v7 }
 0x5fa   :  { %v3345_v36 = vadd.f32 %v3344_v24, %v3338_v55  ;;  %v3340_v0 = vmul.f32 %v3332_v41, %v3332_v41  ;;  %v3341_v40 = vmul.f32 %v3333_v2, %v3333_v2  ;;  %v3342_v57 = vmul.f32 %v3334_v9, %v3334_v9 }
 0x5fb   :  { %v3343_v17 = vmul.f32 %v3335_v27, %v3335_v27 }
 0x5fc   :  { %v3346_v21 = vadd.f32 %v3345_v36, %v3339_v38  ;;  %v3349_v19 = vadd.f32 %v3341_v40, %v3340_v0 }
 0x5fe   :  { %3347 = vadd.xlane.f32.xlu0 %v3346_v21  ;;  %v3350_v45 = vadd.f32 %v3349_v19, %v3342_v57 }
 0x600   :  { %v3351_v30 = vadd.f32 %v3350_v45, %v3343_v17 }
 0x602   :  { %3352 = vadd.xlane.f32.xlu0 %v3351_v30 }
 0x68b   :  { %v3348_v6 = vpop.xlane.xlu0 %3347 }
 0x68c   :  { %v3354_v20 = vmul.f32 0.001953125, %v3348_v6 }
 0x68e   :  { %v3358_v44 = vadd.f32 1e-05, %v3354_v20 }
 0x68f   :  { %v3353_v53 = vpop.xlane.xlu0 %3352 }
 0x690   :  { %3662 = vrsqrt.f32 %v3358_v44  ;;  %v3355_v34 = vmul.f32 0.001953125, %v3353_v53 }
 0x692   :  { %v3359_v10 = vadd.f32 1e-05, %v3355_v34 }
 0x694   :  { %3664 = vrsqrt.f32 %v3359_v10 }
 0x69a   :  { %v3663_v47 = vpop.eup %3662 }
 0x69b   :  { %v3362_v32 = vmul.f32 %v3663_v47, %v3356_v3 }
 0x69d   :  { %3366 = vperm.xlu1 %3658, %v3362_v32  }
 0x69e   :  { %v3665_v23 = vpop.eup %3664 }
 0x69f   :  { %v3363_v56 = vmul.f32 %v3665_v23, %v3357_v1 }
 0x6a1   :  { %3660 = vset.pattern.permute.xlu1 %v3675_v39  ;;  %3371 = vperm.xlu0 %3659, %v3363_v56  }
 0x6a2   :  { %3384 = vperm.xlu1 %3660, %v3356_v3  }
 0x6a5   :  { %3661 = vset.pattern.permute.xlu0 %v3675_v39 }
 0x6a6   :  { %3389 = vperm.xlu1 %3660, %v3357_v1  }
 0x71c   :  { %v3367_v18 = vpop.permute.xlu1 %3366 }
 0x71d   :  { %v3374_v49 = vmul.f32 %v3367_v18, %v3328_v48  ;;  %v3375_v15 = vmul.f32 %v3367_v18, %v3329_v4  ;;  %v3376_v28 = vmul.f32 %v3367_v18, %v3330_v43  ;;  %v3377_v13 = vmul.f32 %v3367_v18, %v3331_v61 }
 0x720   :  { %v3372_v58 = vpop.permute.xlu0 %3371 }
 0x721   :  { %v3385_v29 = vpop.permute.xlu1 %3384  ;;  %v3378_v50 = vmul.f32 %v3372_v58, %v3332_v41  ;;  %v3379_v31 = vmul.f32 %v3372_v58, %v3333_v2  ;;  %v3380_v62 = vmul.f32 %v3372_v58, %v3334_v9  ;;  %v3381_v37 = vmul.f32 %v3372_v58, %v3335_v27 }
 0x722   :  { %v3392_v22 = vadd.f32 %v3385_v29, %v3374_v49  ;;  %v3393_v63 = vadd.f32 %v3385_v29, %v3375_v15  ;;  %v3394_v14 = vadd.f32 %v3385_v29, %v3376_v28  ;;  %v3395_v8 = vadd.f32 %v3385_v29, %v3377_v13 }
 0x724   :  { %3400 = vst [vmem:[%s6769_s3] sm:$0xff] %v3392_v22  ;;  %3401 = vst [vmem:[%s6769_s3 + $0x8] sm:$0xff] %v3393_v63 }
 0x725   :  { %3402 = vst [vmem:[%s6769_s3 + $0x10] sm:$0xff] %v3394_v14  ;;  %3403 = vst [vmem:[%s6769_s3 + $0x18] sm:$0xff] %v3395_v8  ;;  %v3390_v11 = vpop.permute.xlu1 %3389 }
 0x726   :  { %v3396_v54 = vadd.f32 %v3390_v11, %v3378_v50  ;;  %v3397_v33 = vadd.f32 %v3390_v11, %v3379_v31  ;;  %v3398_v12 = vadd.f32 %v3390_v11, %v3380_v62  ;;  %v3399_v51 = vadd.f32 %v3390_v11, %v3381_v37 }
 0x728   :  { %3404 = vst [vmem:[%s6769_s3 + $0x20] sm:$0xff] %v3396_v54  ;;  %3405 = vst [vmem:[%s6769_s3 + $0x28] sm:$0xff] %v3397_v33 }
 0x729   :  { %3406 = vst [vmem:[%s6769_s3 + $0x30] sm:$0xff] %v3398_v12  ;;  %3407 = vst [vmem:[%s6769_s3 + $0x38] sm:$0xff] %v3399_v51 }

</bundles_post_ra>
